<compile_context>
chip_gen: v5e
topology: v5e:2x2
jax: 0.10.0
libtpu: 0.0.40
codegen_flags: <defaults>
</compile_context>

<pallas_src>
import jax
import jax.numpy as jnp
import numpy as np
from jax.experimental import pallas as pl
from jax.experimental.pallas import tpu as pltpu

IN_F, OUT_F = 960, 768          # nn.Linear(960, 768)
C_IN, C_OUT = 16, 81            # nn.Conv2d(16, 81, kernel_size=1, bias=False)
H, W = 4, 12
HW = H * W                      # 48 pixels
LANE = 128
GROUPS = OUT_F // LANE          # 6 column groups of the fc output
PAIRS = GROUPS // 2             # fc groups fused in pairs (N=256 matmuls)
PIX_PER_GRP = LANE // C_IN      # 8 pixels per 128-lane group
PIX_PAD = 96                    # 81 conv channels padded to 96 (was 128)
GRP_OUT = PIX_PER_GRP * PIX_PAD   # 768 output lanes per group (multiple of 128)
OUT_PAD = HW * PIX_PAD          # 4608 padded flat output width


def _round_up(v, m):
    return ((v + m - 1) // m) * m


def lane_head_kernel(x_ref, wfc_ref, b_ref, wblk_ref, o_ref):
    """Fused fc + bias + relu + 1x1 conv for one batch tile."""
    x = x_ref[...]
    if x.dtype != jnp.bfloat16:          # no cast if the producer is already bf16
        x = x.astype(jnp.bfloat16)       # (TB, 960) bf16 operands, f32 accumulation
    w_blk = wblk_ref[...]                # (128, 768) bf16 block-diagonal conv weight

    for g2 in range(PAIRS):              # unrolled: 3 pairs of 128-lane groups
        c0 = g2 * 2 * LANE
        # fc for columns [c0, c0+256): pixel-major layout, so this holds pixels
        # 16*g2 .. 16*g2+15, all 16 input channels each.  N=256 fills the
        # 256-wide MXU on v6e/v7x.
        w_g = wfc_ref[:, c0:c0 + 2 * LANE]                            # (960, 256) bf16
        y = jnp.dot(x, w_g, preferred_element_type=jnp.float32)       # (TB, 256) f32
        y = jnp.maximum(y + b_ref[:, c0:c0 + 2 * LANE], 0.0)          # bias + relu (f32)

        for h in range(2):               # each 128-lane half -> one conv matmul
            y_h = y[:, h * LANE:(h + 1) * LANE].astype(jnp.bfloat16)  # (TB, 128)
            o_h = jnp.dot(y_h, w_blk, preferred_element_type=jnp.float32)  # (TB, 768)
            lo = (2 * g2 + h) * GRP_OUT  # multiple of 768 -> 128-aligned, unmasked vst
            o_ref[:, lo:lo + GRP_OUT] = o_h.astype(o_ref.dtype)


def prepare_lane_head_params(w_fc, b_fc, w_conv):
    """One-time parameter preprocessing (permute / pad / cast)."""
    # Permute fc weight/bias so the fc output is pixel-major: col p*16+c <- c*48+p.
    w_fc_p = (w_fc.reshape(IN_F, C_IN, HW).transpose(0, 2, 1)
              .reshape(IN_F, OUT_F).astype(jnp.bfloat16))
    b_fc_p = b_fc.reshape(C_IN, HW).T.reshape(1, OUT_F).astype(jnp.float32)

    # Zero-pad conv weight 81 -> 96 output lanes, then expand to a
    # (128, 768) block-diagonal so 8 pixels are processed per conv matmul.
    w_pad = jnp.zeros((C_IN, PIX_PAD), jnp.float32).at[:, :C_OUT].set(w_conv.T)
    eye = jnp.eye(PIX_PER_GRP, dtype=jnp.float32)
    w_blk = (eye[:, None, :, None] * w_pad[None, :, None, :]).reshape(
        PIX_PER_GRP * C_IN, PIX_PER_GRP * PIX_PAD).astype(jnp.bfloat16)
    return w_fc_p, b_fc_p, w_blk


def lane_head_forward(x, w_fc_p, b_fc_p, w_blk, out_dtype=jnp.float32, depad=True):
    B = x.shape[0]

    # Batch-tile selection:
    #  * B <= 128: single grid step (weight-fetch bound regime; splitting only
    #    duplicates the ~1 MB weight fetch per TensorCore).
    #  * 128 < B <= 512: split into >=2 "parallel" steps so both v7x TCs run.
    #  * Cap TB at 256 so the double-buffered output block (~9.4 MB at 96-pad,
    #    f32) plus x and weights stays inside v7x's default 32 MiB scoped VMEM.
    if B <= 128:
        TB = B
    else:
        TB = min(256, _round_up(pl.cdiv(B, 2), 8))
    grid = (pl.cdiv(B, TB),)

    out_itemsize = jnp.dtype(out_dtype).itemsize
    cost = pl.CostEstimate(
        flops=2 * B * (IN_F * OUT_F + HW * C_IN * C_OUT),
        transcendentals=0,
        bytes_accessed=(B * IN_F * x.dtype.itemsize
                        + IN_F * OUT_F * 2 + OUT_F * 4 + LANE * GRP_OUT * 2
                        + B * OUT_PAD * out_itemsize),
    )

    out = pl.pallas_call(
        lane_head_kernel,
        out_shape=jax.ShapeDtypeStruct((B, OUT_PAD), out_dtype),
        grid_spec=pltpu.PrefetchScalarGridSpec(
            num_scalar_prefetch=0,
            grid=grid,
            in_specs=[
                pl.BlockSpec((TB, IN_F), lambda i: (i, 0)),             # x tile
                pl.BlockSpec((IN_F, OUT_F), lambda i: (0, 0)),          # fc weight (bf16)
                pl.BlockSpec((1, OUT_F), lambda i: (0, 0)),             # fc bias (f32)
                pl.BlockSpec((LANE, GRP_OUT), lambda i: (0, 0)),        # conv block-diag
            ],
            out_specs=pl.BlockSpec((TB, OUT_PAD), lambda i: (i, 0)),
        ),
        compiler_params=pltpu.CompilerParams(
            dimension_semantics=("parallel",)),   # both TCs on v7x when grid >= 2
        cost_estimate=cost,
    )(x, w_fc_p, b_fc_p, w_blk)

    if not depad:
        # Padded (B, 48, 96) layout: the consumer should slice [:, :, :81]
        # lazily / fuse it, avoiding a separate full-tensor de-pad copy.
        return out.reshape(B, HW, PIX_PAD)

    # (B, 48, 96) -> drop zero padding -> NHWC (B, 4, 12, 81) == permute(0,2,3,1)
    return out.reshape(B, HW, PIX_PAD)[:, :, :C_OUT].reshape(B, H, W, C_OUT)


def lane_head_reference(x, w_fc, b_fc, w_conv):
    """Pure-f32 JAX reference matching the PyTorch module (eval mode)."""
    y = jnp.maximum(x @ w_fc + b_fc, 0.0)
    B = x.shape[0]
    y4 = y.reshape(B, C_IN, H, W)                      # NCHW
    out = jnp.einsum("oc,bchw->bohw", w_conv, y4)      # 1x1 conv, no bias
    return jnp.transpose(out, (0, 2, 3, 1))            # NHWC


if __name__ == "__main__":
    key = jax.random.PRNGKey(0)
    kx, kw1, kb1, kw2 = jax.random.split(key, 4)

    B = 8
    x = jax.random.normal(kx, (B, IN_F), jnp.float32)
    # Deterministic synthetic parameters (shapes per the PyTorch module).
    w_fc = jax.random.normal(kw1, (IN_F, OUT_F), jnp.float32) * 0.03   # Linear weight (stored transposed)
    b_fc = jax.random.normal(kb1, (OUT_F,), jnp.float32) * 0.01        # Linear bias
    w_conv = jax.random.normal(kw2, (C_OUT, C_IN), jnp.float32) * 0.1  # Conv2d weight (81,16,1,1) squeezed

    # One-time weight prep (permute / pad / bf16 cast).
    w_fc_p, b_fc_p, w_blk = prepare_lane_head_params(w_fc, b_fc, w_conv)

    fwd = jax.jit(lane_head_forward)
    out = fwd(x, w_fc_p, b_fc_p, w_blk)
    out = jax.block_until_ready(out)

    ref = lane_head_reference(x, w_fc, b_fc, w_conv)
    assert out.shape == (B, H, W, C_OUT), out.shape
    # Tolerance loosened slightly vs pure-f32 since the fc/conv matmuls use
    # bf16 operands with f32 accumulation.
    np.testing.assert_allclose(np.asarray(out), np.asarray(ref), rtol=1e-2, atol=1e-2)
    print("KERNEL_OK")
</pallas_src>

<mosaic_0001>
module attributes {stable_mosaic.version = 11 : i64} {
  func.func @lane_head_kernel(%arg0: i32, %arg1: memref<8x960xf32, #tpu.memory_space<vmem>>, %arg2: memref<960x768xbf16, #tpu.memory_space<vmem>>, %arg3: memref<1x768xf32, #tpu.memory_space<vmem>>, %arg4: memref<128x768xbf16, #tpu.memory_space<vmem>>, %arg5: memref<8x4608xf32, #tpu.memory_space<vmem>>) attributes {dimension_semantics = [#tpu.dimension_semantics<parallel>], iteration_bounds = array<i64: 1>, scalar_prefetch = 0 : i64, scratch_operands = 0 : i64, tpu.core_type = #tpu.core_type<tc>, window_params = [{transform_indices = @transform_0, window_bounds = array<i64: 8, 960>}, {pipeline_mode = #tpu.pipeline_mode<synchronous>, transform_indices = @transform_1, window_bounds = array<i64: 960, 768>}, {pipeline_mode = #tpu.pipeline_mode<synchronous>, transform_indices = @transform_2, window_bounds = array<i64: 1, 768>}, {pipeline_mode = #tpu.pipeline_mode<synchronous>, transform_indices = @transform_3, window_bounds = array<i64: 128, 768>}, {transform_indices = @transform_4, window_bounds = array<i64: 8, 4608>}]} {
    %c0 = arith.constant 0 : index
    %c0_0 = arith.constant 0 : index
    %0 = vector.load %arg1[%c0, %c0_0] : memref<8x960xf32, #tpu.memory_space<vmem>>, vector<8x960xf32>
    %1 = arith.truncf %0 : vector<8x960xf32> to vector<8x960xbf16>
    %c0_1 = arith.constant 0 : index
    %c0_2 = arith.constant 0 : index
    %2 = vector.load %arg4[%c0_1, %c0_2] : memref<128x768xbf16, #tpu.memory_space<vmem>>, vector<128x768xbf16>
    %c0_3 = arith.constant 0 : index
    %c0_4 = arith.constant 0 : index
    %3 = vector.load %arg2[%c0_3, %c0_4] : memref<960x768xbf16, #tpu.memory_space<vmem>>, vector<960x256xbf16>
    %cst = arith.constant dense<0.000000e+00> : vector<8x256xf32>
    %4 = tpu.matmul %1, %3, %cst {dimension_numbers = #tpu.dot_dimension_numbers<[1], [0], [0], [1], [0, 0, 1, 1], [], []>} : vector<8x960xbf16>, vector<960x256xbf16>, vector<8x256xf32> -> vector<8x256xf32>
    %c0_5 = arith.constant 0 : index
    %c0_6 = arith.constant 0 : index
    %5 = vector.load %arg3[%c0_5, %c0_6] : memref<1x768xf32, #tpu.memory_space<vmem>>, vector<1x256xf32>
    %6 = vector.broadcast %5 : vector<1x256xf32> to vector<8x256xf32>
    %7 = arith.addf %4, %6 : vector<8x256xf32>
    %cst_7 = arith.constant 0.000000e+00 : f32
    %8 = vector.broadcast %cst_7 : f32 to vector<8x256xf32>
    %9 = arith.maximumf %7, %8 : vector<8x256xf32>
    %10 = vector.extract_strided_slice %9 {offsets = [0, 0], sizes = [8, 128], strides = [1, 1]} : vector<8x256xf32> to vector<8x128xf32>
    %11 = arith.truncf %10 : vector<8x128xf32> to vector<8x128xbf16>
    %cst_8 = arith.constant dense<0.000000e+00> : vector<8x768xf32>
    %12 = tpu.matmul %11, %2, %cst_8 {dimension_numbers = #tpu.dot_dimension_numbers<[1], [0], [0], [1], [0, 0, 1, 1], [], []>} : vector<8x128xbf16>, vector<128x768xbf16>, vector<8x768xf32> -> vector<8x768xf32>
    %c0_9 = arith.constant 0 : index
    %c0_10 = arith.constant 0 : index
    %13 = vector.load %arg5[%c0_9, %c0_10] : memref<8x4608xf32, #tpu.memory_space<vmem>>, vector<8x768xf32>
    tpu.vector_store %arg5[%c0_9, %c0_10], %12 {strides = array<i32>} : memref<8x4608xf32, #tpu.memory_space<vmem>>, vector<8x768xf32>,
    %14 = vector.extract_strided_slice %9 {offsets = [0, 128], sizes = [8, 128], strides = [1, 1]} : vector<8x256xf32> to vector<8x128xf32>
    %15 = arith.truncf %14 : vector<8x128xf32> to vector<8x128xbf16>
    %cst_11 = arith.constant dense<0.000000e+00> : vector<8x768xf32>
    %16 = tpu.matmul %15, %2, %cst_11 {dimension_numbers = #tpu.dot_dimension_numbers<[1], [0], [0], [1], [0, 0, 1, 1], [], []>} : vector<8x128xbf16>, vector<128x768xbf16>, vector<8x768xf32> -> vector<8x768xf32>
    %c0_12 = arith.constant 0 : index
    %c768 = arith.constant 768 : index
    %17 = vector.load %arg5[%c0_12, %c768] : memref<8x4608xf32, #tpu.memory_space<vmem>>, vector<8x768xf32>
    tpu.vector_store %arg5[%c0_12, %c768], %16 {strides = array<i32>} : memref<8x4608xf32, #tpu.memory_space<vmem>>, vector<8x768xf32>,
    %c0_13 = arith.constant 0 : index
    %c256 = arith.constant 256 : index
    %18 = vector.load %arg2[%c0_13, %c256] : memref<960x768xbf16, #tpu.memory_space<vmem>>, vector<960x256xbf16>
    %cst_14 = arith.constant dense<0.000000e+00> : vector<8x256xf32>
    %19 = tpu.matmul %1, %18, %cst_14 {dimension_numbers = #tpu.dot_dimension_numbers<[1], [0], [0], [1], [0, 0, 1, 1], [], []>} : vector<8x960xbf16>, vector<960x256xbf16>, vector<8x256xf32> -> vector<8x256xf32>
    %c0_15 = arith.constant 0 : index
    %c256_16 = arith.constant 256 : index
    %20 = vector.load %arg3[%c0_15, %c256_16] : memref<1x768xf32, #tpu.memory_space<vmem>>, vector<1x256xf32>
    %21 = vector.broadcast %20 : vector<1x256xf32> to vector<8x256xf32>
    %22 = arith.addf %19, %21 : vector<8x256xf32>
    %cst_17 = arith.constant 0.000000e+00 : f32
    %23 = vector.broadcast %cst_17 : f32 to vector<8x256xf32>
    %24 = arith.maximumf %22, %23 : vector<8x256xf32>
    %25 = vector.extract_strided_slice %24 {offsets = [0, 0], sizes = [8, 128], strides = [1, 1]} : vector<8x256xf32> to vector<8x128xf32>
    %26 = arith.truncf %25 : vector<8x128xf32> to vector<8x128xbf16>
    %cst_18 = arith.constant dense<0.000000e+00> : vector<8x768xf32>
    %27 = tpu.matmul %26, %2, %cst_18 {dimension_numbers = #tpu.dot_dimension_numbers<[1], [0], [0], [1], [0, 0, 1, 1], [], []>} : vector<8x128xbf16>, vector<128x768xbf16>, vector<8x768xf32> -> vector<8x768xf32>
    %c0_19 = arith.constant 0 : index
    %c1536 = arith.constant 1536 : index
    %28 = vector.load %arg5[%c0_19, %c1536] : memref<8x4608xf32, #tpu.memory_space<vmem>>, vector<8x768xf32>
    tpu.vector_store %arg5[%c0_19, %c1536], %27 {strides = array<i32>} : memref<8x4608xf32, #tpu.memory_space<vmem>>, vector<8x768xf32>,
    %29 = vector.extract_strided_slice %24 {offsets = [0, 128], sizes = [8, 128], strides = [1, 1]} : vector<8x256xf32> to vector<8x128xf32>
    %30 = arith.truncf %29 : vector<8x128xf32> to vector<8x128xbf16>
    %cst_20 = arith.constant dense<0.000000e+00> : vector<8x768xf32>
    %31 = tpu.matmul %30, %2, %cst_20 {dimension_numbers = #tpu.dot_dimension_numbers<[1], [0], [0], [1], [0, 0, 1, 1], [], []>} : vector<8x128xbf16>, vector<128x768xbf16>, vector<8x768xf32> -> vector<8x768xf32>
    %c0_21 = arith.constant 0 : index
    %c2304 = arith.constant 2304 : index
    %32 = vector.load %arg5[%c0_21, %c2304] : memref<8x4608xf32, #tpu.memory_space<vmem>>, vector<8x768xf32>
    tpu.vector_store %arg5[%c0_21, %c2304], %31 {strides = array<i32>} : memref<8x4608xf32, #tpu.memory_space<vmem>>, vector<8x768xf32>,
    %c0_22 = arith.constant 0 : index
    %c512 = arith.constant 512 : index
    %33 = vector.load %arg2[%c0_22, %c512] : memref<960x768xbf16, #tpu.memory_space<vmem>>, vector<960x256xbf16>
    %cst_23 = arith.constant dense<0.000000e+00> : vector<8x256xf32>
    %34 = tpu.matmul %1, %33, %cst_23 {dimension_numbers = #tpu.dot_dimension_numbers<[1], [0], [0], [1], [0, 0, 1, 1], [], []>} : vector<8x960xbf16>, vector<960x256xbf16>, vector<8x256xf32> -> vector<8x256xf32>
    %c0_24 = arith.constant 0 : index
    %c512_25 = arith.constant 512 : index
    %35 = vector.load %arg3[%c0_24, %c512_25] : memref<1x768xf32, #tpu.memory_space<vmem>>, vector<1x256xf32>
    %36 = vector.broadcast %35 : vector<1x256xf32> to vector<8x256xf32>
    %37 = arith.addf %34, %36 : vector<8x256xf32>
    %cst_26 = arith.constant 0.000000e+00 : f32
    %38 = vector.broadcast %cst_26 : f32 to vector<8x256xf32>
    %39 = arith.maximumf %37, %38 : vector<8x256xf32>
    %40 = vector.extract_strided_slice %39 {offsets = [0, 0], sizes = [8, 128], strides = [1, 1]} : vector<8x256xf32> to vector<8x128xf32>
    %41 = arith.truncf %40 : vector<8x128xf32> to vector<8x128xbf16>
    %cst_27 = arith.constant dense<0.000000e+00> : vector<8x768xf32>
    %42 = tpu.matmul %41, %2, %cst_27 {dimension_numbers = #tpu.dot_dimension_numbers<[1], [0], [0], [1], [0, 0, 1, 1], [], []>} : vector<8x128xbf16>, vector<128x768xbf16>, vector<8x768xf32> -> vector<8x768xf32>
    %c0_28 = arith.constant 0 : index
    %c3072 = arith.constant 3072 : index
    %43 = vector.load %arg5[%c0_28, %c3072] : memref<8x4608xf32, #tpu.memory_space<vmem>>, vector<8x768xf32>
    tpu.vector_store %arg5[%c0_28, %c3072], %42 {strides = array<i32>} : memref<8x4608xf32, #tpu.memory_space<vmem>>, vector<8x768xf32>,
    %44 = vector.extract_strided_slice %39 {offsets = [0, 128], sizes = [8, 128], strides = [1, 1]} : vector<8x256xf32> to vector<8x128xf32>
    %45 = arith.truncf %44 : vector<8x128xf32> to vector<8x128xbf16>
    %cst_29 = arith.constant dense<0.000000e+00> : vector<8x768xf32>
    %46 = tpu.matmul %45, %2, %cst_29 {dimension_numbers = #tpu.dot_dimension_numbers<[1], [0], [0], [1], [0, 0, 1, 1], [], []>} : vector<8x128xbf16>, vector<128x768xbf16>, vector<8x768xf32> -> vector<8x768xf32>
    %c0_30 = arith.constant 0 : index
    %c3840 = arith.constant 3840 : index
    %47 = vector.load %arg5[%c0_30, %c3840] : memref<8x4608xf32, #tpu.memory_space<vmem>>, vector<8x768xf32>
    tpu.vector_store %arg5[%c0_30, %c3840], %46 {strides = array<i32>} : memref<8x4608xf32, #tpu.memory_space<vmem>>, vector<8x768xf32>,
    return
  }
  func.func @transform_0(%arg0: i32) -> (i32, i32) {
    %c0_i32 = arith.constant 0 : i32
    %c0_i32_0 = arith.constant 0 : i32
    return %arg0, %c0_i32 : i32, i32
  }
  func.func @transform_1(%arg0: i32) -> (i32, i32) {
    %c0_i32 = arith.constant 0 : i32
    %c0_i32_0 = arith.constant 0 : i32
    %c0_i32_1 = arith.constant 0 : i32
    return %c0_i32, %c0_i32_0 : i32, i32
  }
  func.func @transform_2(%arg0: i32) -> (i32, i32) {
    %c0_i32 = arith.constant 0 : i32
    %c0_i32_0 = arith.constant 0 : i32
    %c0_i32_1 = arith.constant 0 : i32
    return %c0_i32, %c0_i32_0 : i32, i32
  }
  func.func @transform_3(%arg0: i32) -> (i32, i32) {
    %c0_i32 = arith.constant 0 : i32
    %c0_i32_0 = arith.constant 0 : i32
    %c0_i32_1 = arith.constant 0 : i32
    return %c0_i32, %c0_i32_0 : i32, i32
  }
  func.func @transform_4(%arg0: i32) -> (i32, i32) {
    %c0_i32 = arith.constant 0 : i32
    %c0_i32_0 = arith.constant 0 : i32
    return %arg0, %c0_i32 : i32, i32
  }
}

</mosaic_0001>

<bundles_post_ra>
// kernel: lane_head_forward.1
= control target key start
LH: loop header
LB: loop body
LE: loop exit
PB: predicated region body
PF: predicated region fallthrough
CT: control target
= control target key end

     0   :  { %9 = vsyncpa [#allocation3], 0  ;;  %s6489_s0 = inlined_call_operand.hbm [shape: f32[8,960], index: 0, kind: input, shape index: {}]   ;;  %s6490_s1 = inlined_call_operand.hbm [shape: bf16[960,768], index: 1, kind: input, shape index: {}]   ;;  %s6491_s2 = inlined_call_operand.hbm [shape: f32[1,768], index: 2, kind: input, shape index: {}]   ;;  %s6492_s3 = inlined_call_operand.hbm [shape: bf16[128,768], index: 3, kind: input, shape index: {}]   ;;  %s6493_s4 = inlined_call_operand.vmem [shape: f32[8,4608], index: 4, kind: output, shape index: {}]  }
   0x1   :  { %10 = vsyncpa [#allocation5], 0  ;;  %s27_s17 = sshll.u32 %s6490_s1, 4  ;;  %s28_s17 = int_to_ptr.hbm [resolvable:$true] %s27_s17 }
   0x2   :  { %11 = vsyncpa [#allocation8], 0  ;;  %s5864_s18 = smov [#allocation4]   ;;  %s17_s22 = sshll.u32 %s6489_s0, 4  ;;  %s18_s22 = int_to_ptr.hbm [resolvable:$true] %s17_s22 }
   0x3   :  { %s29_s19 = sshll.u32 %s5864_s18, 4  ;;  %s5865_s23 = smov 384   ;;  %s30_s19 = int_to_ptr.vmem [resolvable:$true] %s29_s19 }
   0x4   :  { %s5866_s24 = smov 24   ;;  %s5867_s25 = smov [#allocation2]  }
   0x5   :  { %35 = dma.hbm_to_vmem [thread:$0]  %s28_s17, 46080, %s30_s19, [#allocation5], %s5865_s23, %s5865_s23, %s5866_s24  }
   0x6   :  { %s19_s26 = sshll.u32 %s5867_s25, 4  ;;  %s41_s29 = sshll.u32 %s6491_s2, 4  ;;  %s20_s26 = int_to_ptr.vmem [resolvable:$true] %s19_s26  ;;  %s42_s29 = int_to_ptr.hbm [resolvable:$true] %s41_s29 }
   0x7   :  { %22 = dma.hbm_to_vmem [thread:$0]  %s18_s22, 1024, %s20_s26, [#allocation3]  }
   0x8   :  { %s51_s5 = sshll.u32 %s6492_s3, 4  ;;  %s5868_s6 = smov [#allocation6]   ;;  %s52_s5 = int_to_ptr.hbm [resolvable:$true] %s51_s5 }
   0x9   :  { %s43_s7 = sshll.u32 %s5868_s6, 4  ;;  %s5869_s0 = smov [#allocation7]   ;;  %s44_s7 = int_to_ptr.vmem [resolvable:$true] %s43_s7 }
   0xa   :  { %46 = dma.hbm_to_vmem [thread:$0]  %s42_s29, 96, %s44_s7, [#allocation5]  }
   0xb   :  { %s53_s8 = sshll.u32 %s5869_s0, 4  ;;  %s54_s8 = int_to_ptr.vmem [resolvable:$true] %s53_s8 }
   0xc   :  { %59 = dma.hbm_to_vmem [thread:$0]  %s52_s5, 6144, %s54_s8, [#allocation8], %s5865_s23, %s5865_s23, %s5866_s24  }
   0xd   :  { %5858 = dma.done.wait [#allocation3], 1024  }
   0xe   :  { %5859 = vsyncadd [#allocation3], 4294966272 }
   0xf   :  { %5860 = dma.done.wait [#allocation5], 46176  }
  0x10   :  { %5861 = vsyncadd [#allocation5], 4294921120 }
  0x11   :  { %5862 = dma.done.wait [#allocation8], 6144  }
  0x12   :  { %5863 = vsyncadd [#allocation8], 4294961152  ;;  %v3768_v0 = vld [vmem:[#allocation4 + $0x150] sm:$0xf]  ;;  %v5411_v1 = vld [vmem:[#allocation4 + $0x164] sm:$0xf0] }
  0x13   :  { %v3832_v2 = vld [vmem:[#allocation4 + $0x2d0] sm:$0xf]  ;;  %v3769_v3 = vor.u32 %v5411_v1, %v3768_v0  ;;  %v5427_v4 = vld [vmem:[#allocation4 + $0x2e4] sm:$0xf0]  ;;  %v3760_v11 = vld [vmem:[#allocation4 + $0x120] sm:$0xf] }
  0x14   :  { %v3896_v5 = vld [vmem:[#allocation4 + $0x450] sm:$0xf]  ;;  %v5443_v6 = vld [vmem:[#allocation4 + $0x464] sm:$0xf0]  ;;  %v3833_v7 = vor.u32 %v5427_v4, %v3832_v2  ;;  %v5409_v13 = vld [vmem:[#allocation4 + $0x134] sm:$0xf0] }
  0x15   :  { %v3897_v8 = vor.u32 %v5443_v6, %v3896_v5  ;;  %v3960_v9 = vld [vmem:[#allocation4 + $0x5d0] sm:$0xf]  ;;  %v5459_v10 = vld [vmem:[#allocation4 + $0x5e4] sm:$0xf0]  ;;  %871 = vmatpush.bf16.msra.mxu0 %v3769_v3  ;;  %v3824_v14 = vld [vmem:[#allocation4 + $0x2a0] sm:$0xf]  ;;  %v3761_v16 = vor.u32 %v5409_v13, %v3760_v11 }
  0x16   :  { %v3961_v12 = vor.u32 %v5459_v10, %v3960_v9  ;;  %v5425_v15 = vld [vmem:[#allocation4 + $0x2b4] sm:$0xf0]  ;;  %884 = vmatpush.bf16.msra.mxu1 %v3833_v7  ;;  %v3888_v18 = vld [vmem:[#allocation4 + $0x420] sm:$0xf]  ;;  %v3752_v23 = vld [vmem:[#allocation4 + $0xf0] sm:$0xf] }
  0x17   :  { %897 = vmatpush.bf16.msra.mxu2 %v3897_v8  ;;  %v3825_v17 = vor.u32 %v5425_v15, %v3824_v14  ;;  %v5441_v19 = vld [vmem:[#allocation4 + $0x434] sm:$0xf0]  ;;  %v3952_v20 = vld [vmem:[#allocation4 + $0x5a0] sm:$0xf]  ;;  %v5407_v24 = vld [vmem:[#allocation4 + $0x104] sm:$0xf0] }
  0x18   :  { %910 = vmatpush.bf16.msra.mxu3 %v3961_v12  ;;  %v3889_v21 = vor.u32 %v5441_v19, %v3888_v18  ;;  %v5457_v22 = vld [vmem:[#allocation4 + $0x5b4] sm:$0xf0]  ;;  %v3816_v26 = vld [vmem:[#allocation4 + $0x270] sm:$0xf]  ;;  %v5423_v27 = vld [vmem:[#allocation4 + $0x284] sm:$0xf0]  ;;  %v3753_v29 = vor.u32 %v5407_v24, %v3752_v23 }
  0x19   :  { %v3953_v25 = vor.u32 %v5457_v22, %v3952_v20  ;;  %v3880_v28 = vld [vmem:[#allocation4 + $0x3f0] sm:$0xf]  ;;  %872 = vmatpush.bf16.msra.mxu0 %v3761_v16  ;;  %v5439_v30 = vld [vmem:[#allocation4 + $0x404] sm:$0xf0]  ;;  %v3817_v33 = vor.u32 %v5423_v27, %v3816_v26  ;;  %v3744_v35 = vld [vmem:[#allocation4 + $0xc0] sm:$0xf] }
  0x1a   :  { %v3944_v31 = vld [vmem:[#allocation4 + $0x570] sm:$0xf]  ;;  %v5455_v32 = vld [vmem:[#allocation4 + $0x584] sm:$0xf0]  ;;  %885 = vmatpush.bf16.msra.mxu1 %v3825_v17  ;;  %v3881_v34 = vor.u32 %v5439_v30, %v3880_v28  ;;  %v5405_v36 = vld [vmem:[#allocation4 + $0xd4] sm:$0xf0] }
  0x1b   :  { %898 = vmatpush.bf16.msra.mxu2 %v3889_v21  ;;  %v3808_v37 = vld [vmem:[#allocation4 + $0x240] sm:$0xf]  ;;  %v3945_v38 = vor.u32 %v5455_v32, %v3944_v31  ;;  %v5421_v39 = vld [vmem:[#allocation4 + $0x254] sm:$0xf0]  ;;  %v3745_v44 = vor.u32 %v5405_v36, %v3744_v35  ;;  %v3736_v47 = vld [vmem:[#allocation4 + $0x90] sm:$0xf] }
  0x1c   :  { %911 = vmatpush.bf16.msra.mxu3 %v3953_v25  ;;  %v3872_v40 = vld [vmem:[#allocation4 + $0x3c0] sm:$0xf]  ;;  %v5437_v41 = vld [vmem:[#allocation4 + $0x3d4] sm:$0xf0]  ;;  %v3809_v45 = vor.u32 %v5421_v39, %v3808_v37  ;;  %v5403_v48 = vld [vmem:[#allocation4 + $0xa4] sm:$0xf0] }
  0x1d   :  { %v3936_v42 = vld [vmem:[#allocation4 + $0x540] sm:$0xf]  ;;  %v5453_v43 = vld [vmem:[#allocation4 + $0x554] sm:$0xf0]  ;;  %873 = vmatpush.bf16.msra.mxu0 %v3753_v29  ;;  %v3873_v46 = vor.u32 %v5437_v41, %v3872_v40  ;;  %v3800_v49 = vld [vmem:[#allocation4 + $0x210] sm:$0xf]  ;;  %v3737_v56 = vor.u32 %v5403_v48, %v3736_v47 }
  0x1e   :  { %886 = vmatpush.bf16.msra.mxu1 %v3817_v33  ;;  %v3937_v50 = vor.u32 %v5453_v43, %v3936_v42  ;;  %v5419_v51 = vld [vmem:[#allocation4 + $0x224] sm:$0xf0]  ;;  %v3864_v52 = vld [vmem:[#allocation4 + $0x390] sm:$0xf]  ;;  %v3728_v59 = vld [vmem:[#allocation4 + $0x60] sm:$0xf] }
  0x1f   :  { %899 = vmatpush.bf16.msra.mxu2 %v3881_v34  ;;  %v5435_v53 = vld [vmem:[#allocation4 + $0x3a4] sm:$0xf0]  ;;  %v3928_v54 = vld [vmem:[#allocation4 + $0x510] sm:$0xf]  ;;  %v3801_v57 = vor.u32 %v5419_v51, %v3800_v49  ;;  %v5401_v60 = vld [vmem:[#allocation4 + $0x74] sm:$0xf0] }
  0x20   :  { %912 = vmatpush.bf16.msra.mxu3 %v3945_v38  ;;  %v5451_v55 = vld [vmem:[#allocation4 + $0x524] sm:$0xf0]  ;;  %v3865_v58 = vor.u32 %v5435_v53, %v3864_v52  ;;  %v3792_v61 = vld [vmem:[#allocation4 + $0x1e0] sm:$0xf]  ;;  %v5417_v63 = vld [vmem:[#allocation4 + $0x1f4] sm:$0xf0]  ;;  %v3729_v4 = vor.u32 %v5401_v60, %v3728_v59 }
  0x21   :  { %874 = vmatpush.bf16.msra.mxu0 %v3745_v44  ;;  %v3929_v62 = vor.u32 %v5451_v55, %v3928_v54  ;;  %v3856_v0 = vld [vmem:[#allocation4 + $0x360] sm:$0xf]  ;;  %v5433_v1 = vld [vmem:[#allocation4 + $0x374] sm:$0xf0]  ;;  %v3793_v5 = vor.u32 %v5417_v63, %v3792_v61  ;;  %v3720_v7 = vld [vmem:[#allocation4 + $0x30] sm:$0xf] }
  0x22   :  { %887 = vmatpush.bf16.msra.mxu1 %v3809_v45  ;;  %v3920_v2 = vld [vmem:[#allocation4 + $0x4e0] sm:$0xf]  ;;  %v5449_v3 = vld [vmem:[#allocation4 + $0x4f4] sm:$0xf0]  ;;  %v3857_v6 = vor.u32 %v5433_v1, %v3856_v0  ;;  %v5399_v8 = vld [vmem:[#allocation4 + $0x44] sm:$0xf0] }
  0x23   :  { %900 = vmatpush.bf16.msra.mxu2 %v3873_v46  ;;  %v3784_v9 = vld [vmem:[#allocation4 + $0x1b0] sm:$0xf]  ;;  %v3921_v10 = vor.u32 %v5449_v3, %v3920_v2  ;;  %v5415_v11 = vld [vmem:[#allocation4 + $0x1c4] sm:$0xf0]  ;;  %v3721_v16 = vor.u32 %v5399_v8, %v3720_v7  ;;  %v3712_v17 = vld [vmem:[#allocation4] sm:$0xf] }
  0x24   :  { %913 = vmatpush.bf16.msra.mxu3 %v3937_v50  ;;  %v3848_v12 = vld [vmem:[#allocation4 + $0x330] sm:$0xf]  ;;  %v5431_v13 = vld [vmem:[#allocation4 + $0x344] sm:$0xf0]  ;;  %v5397_v18 = vld [vmem:[#allocation4 + $0x14] sm:$0xf0]  ;;  %v3785_v19 = vor.u32 %v5415_v11, %v3784_v9 }
  0x25   :  { %875 = vmatpush.bf16.msra.mxu0 %v3737_v56  ;;  %v3912_v14 = vld [vmem:[#allocation4 + $0x4b0] sm:$0xf]  ;;  %v5447_v15 = vld [vmem:[#allocation4 + $0x4c4] sm:$0xf0]  ;;  %v3849_v20 = vor.u32 %v5431_v13, %v3848_v12  ;;  %v3776_v21 = vld [vmem:[#allocation4 + $0x180] sm:$0xf]  ;;  %v3713_v31 = vor.u32 %v5397_v18, %v3712_v17 }
  0x26   :  { %888 = vmatpush.bf16.msra.mxu1 %v3801_v57  ;;  %v5413_v22 = vld [vmem:[#allocation4 + $0x194] sm:$0xf0]  ;;  %v3840_v23 = vld [vmem:[#allocation4 + $0x300] sm:$0xf]  ;;  %v3913_v24 = vor.u32 %v5447_v15, %v3912_v14  ;;  %v4024_v28 = vld [vmem:[#allocation4 + $0x750] sm:$0xf] }
  0x27   :  { %901 = vmatpush.bf16.msra.mxu2 %v3865_v58  ;;  %v5429_v25 = vld [vmem:[#allocation4 + $0x314] sm:$0xf0]  ;;  %v3904_v26 = vld [vmem:[#allocation4 + $0x480] sm:$0xf]  ;;  %v5475_v29 = vld [vmem:[#allocation4 + $0x764] sm:$0xf0]  ;;  %v3777_v35 = vor.u32 %v5413_v22, %v3776_v21 }
  0x28   :  { %914 = vmatpush.bf16.msra.mxu3 %v3929_v62  ;;  %v5445_v27 = vld [vmem:[#allocation4 + $0x494] sm:$0xf0]  ;;  %v4088_v30 = vld [vmem:[#allocation4 + $0x8d0] sm:$0xf]  ;;  %v5491_v32 = vld [vmem:[#allocation4 + $0x8e4] sm:$0xf0]  ;;  %v3841_v36 = vor.u32 %v5429_v25, %v3840_v23  ;;  %v4025_v40 = vor.u32 %v5475_v29, %v4024_v28 }
  0x29   :  { %876 = vmatpush.bf16.msra.mxu0 %v3729_v4  ;;  %v4152_v33 = vld [vmem:[#allocation4 + $0xa50] sm:$0xf]  ;;  %v5507_v34 = vld [vmem:[#allocation4 + $0xa64] sm:$0xf0]  ;;  %v3905_v39 = vor.u32 %v5445_v27, %v3904_v26  ;;  %v4016_v41 = vld [vmem:[#allocation4 + $0x720] sm:$0xf]  ;;  %v4089_v43 = vor.u32 %v5491_v32, %v4088_v30 }
  0x2a   :  { %889 = vmatpush.bf16.msra.mxu1 %v3793_v5  ;;  %v4184_v37 = vld [vmem:[#allocation4 + $0xb10] sm:$0xf]  ;;  %v5515_v38 = vld [vmem:[#allocation4 + $0xb24] sm:$0xf0]  ;;  %v4153_v44 = vor.u32 %v5507_v34, %v4152_v33  ;;  %v5473_v45 = vld [vmem:[#allocation4 + $0x734] sm:$0xf0] }
  0x2b   :  { %902 = vmatpush.bf16.msra.mxu2 %v3857_v6  ;;  %v79_v42 = vld [vmem:[#allocation2 + $0x10] sm:$0xff]  ;;  %v4080_v46 = vld [vmem:[#allocation4 + $0x8a0] sm:$0xf]  ;;  %v5489_v47 = vld [vmem:[#allocation4 + $0x8b4] sm:$0xf0]  ;;  %v4185_v48 = vor.u32 %v5515_v38, %v4184_v37  ;;  %v4017_v55 = vor.u32 %v5473_v45, %v4016_v41  ;;  %vm867_vm0 = vcmask 523264  }
  0x2c   :  { %915 = vmatpush.bf16.msra.mxu3 %v3921_v10  ;;  %v4144_v49 = vld [vmem:[#allocation4 + $0xa20] sm:$0xf]  ;;  %v5505_v50 = vld [vmem:[#allocation4 + $0xa34] sm:$0xf0]  ;;  %v5907_v51 = vpack.c.bf16 %v79_v42, %v79_v42  ;;  %v4081_v56 = vor.u32 %v5489_v47, %v4080_v46  ;;  %v78_v59 = vld [vmem:[#allocation2 + $0x8] sm:$0xff] }
  0x2d   :  { %877 = vmatpush.bf16.msra.mxu0 %v3721_v16  ;;  %v4176_v52 = vld [vmem:[#allocation4 + $0xae0] sm:$0xf]  ;;  %v5513_v53 = vld [vmem:[#allocation4 + $0xaf4] sm:$0xf0]  ;;  %v4145_v60 = vor.u32 %v5505_v50, %v4144_v49  ;;  %v4008_v61 = vld [vmem:[#allocation4 + $0x6f0] sm:$0xf]  ;;  %v5913_v1 = vpack.c.bf16 %v78_v59, %v78_v59 }
  0x2e   :  { %890 = vmatpush.bf16.msra.mxu1 %v3785_v19  ;;  %6582 = vst [vmem:[#allocation12_spill] sm:$0xff] %v5907_v51  ;;  %v80_v54 = vld [vmem:[#allocation2 + $0x18] sm:$0xff]  ;;  %v77_v58 = vld [vmem:[#allocation2] sm:$0xff]  ;;  %v5471_v62 = vld [vmem:[#allocation4 + $0x704] sm:$0xf0]  ;;  %v4177_v2 = vor.u32 %v5513_v53, %v4176_v52 }
  0x2f   :  { %903 = vmatpush.bf16.msra.mxu2 %v3849_v20  ;;  %v5909_v57 = vpack.c.bf16 %v80_v54, %v80_v54  ;;  %v4072_v63 = vld [vmem:[#allocation4 + $0x870] sm:$0xf]  ;;  %v5911_v0 = vpack.c.bf16 %v77_v58, %v77_v58  ;;  %v5487_v3 = vld [vmem:[#allocation4 + $0x884] sm:$0xf0]  ;;  %v4009_v8 = vor.u32 %v5471_v62, %v4008_v61  ;;  %v4000_v11 = vld [vmem:[#allocation4 + $0x6c0] sm:$0xf] }
  0x30   :  { %916 = vmatpush.bf16.msra.mxu3 %v3913_v24  ;;  %v4136_v4 = vld [vmem:[#allocation4 + $0x9f0] sm:$0xf]  ;;  %v5503_v5 = vld [vmem:[#allocation4 + $0xa04] sm:$0xf0]  ;;  %v4073_v9 = vor.u32 %v5487_v3, %v4072_v63  ;;  %v5469_v12 = vld [vmem:[#allocation4 + $0x6d4] sm:$0xf0] }
  0x31   :  { %878 = vmatpush.bf16.msra.mxu0 %v3713_v31  ;;  %v4168_v6 = vld [vmem:[#allocation4 + $0xab0] sm:$0xf]  ;;  %v5511_v7 = vld [vmem:[#allocation4 + $0xac4] sm:$0xf0]  ;;  %v4137_v10 = vor.u32 %v5503_v5, %v4136_v4  ;;  %v4064_v13 = vld [vmem:[#allocation4 + $0x840] sm:$0xf]  ;;  %v4001_v20 = vor.u32 %v5469_v12, %v4000_v11 }
  0x32   :  { %891 = vmatpush.bf16.msra.mxu1 %v3777_v35  ;;  %v4169_v14 = vor.u32 %v5511_v7, %v4168_v6  ;;  %v5485_v15 = vld [vmem:[#allocation4 + $0x854] sm:$0xf0]  ;;  %v4128_v16 = vld [vmem:[#allocation4 + $0x9c0] sm:$0xf]  ;;  %v5410_v21 = vld [vmem:[#allocation4 + $0x154] sm:$0xf] }
  0x33   :  { %904 = vmatpush.bf16.msra.mxu2 %v3841_v36  ;;  %v5501_v17 = vld [vmem:[#allocation4 + $0x9d4] sm:$0xf0]  ;;  %v4160_v18 = vld [vmem:[#allocation4 + $0xa80] sm:$0xf]  ;;  %v3770_v22 = vld [vmem:[#allocation4 + $0x168] sm:$0xf0]  ;;  %v4065_v23 = vor.u32 %v5485_v15, %v4064_v13 }
  0x34   :  { %917 = vmatpush.bf16.msra.mxu3 %v3905_v39  ;;  %879 = vmatmul.bf16.vlgmr.msra.gmra.mxu0 %v5911_v0  ;;  %v5509_v19 = vld [vmem:[#allocation4 + $0xa94] sm:$0xf0]  ;;  %v4129_v24 = vor.u32 %v5501_v17, %v4128_v16  ;;  %v3992_v25 = vld [vmem:[#allocation4 + $0x690] sm:$0xf]  ;;  %v5467_v26 = vld [vmem:[#allocation4 + $0x6a4] sm:$0xf0]  ;;  %v3773_v32 = vor.u32 %v5410_v21, %v3770_v22 }
  0x35   :  { %923 = vmatpush.bf16.msrb.mxu0 %v4025_v40  ;;  %892 = vmatmul.bf16.vlgmr.msra.gmra.mxu1 %v5913_v1  ;;  %v4056_v27 = vld [vmem:[#allocation4 + $0x810] sm:$0xf]  ;;  %v4161_v28 = vor.u32 %v5509_v19, %v4160_v18  ;;  %v5483_v29 = vld [vmem:[#allocation4 + $0x824] sm:$0xf0]  ;;  %v3993_v33 = vor.u32 %v5467_v26, %v3992_v25  ;;  %v5408_v34 = vld [vmem:[#allocation4 + $0x124] sm:$0xf] }
  0x36   :  { %936 = vmatpush.bf16.msrb.mxu1 %v4089_v43  ;;  %905 = vmatmul.bf16.vlgmr.msra.gmra.mxu2 %v5907_v51  ;;  %v4120_v30 = vld [vmem:[#allocation4 + $0x990] sm:$0xf]  ;;  %v5499_v31 = vld [vmem:[#allocation4 + $0x9a4] sm:$0xf0]  ;;  %v3762_v35 = vld [vmem:[#allocation4 + $0x138] sm:$0xf0]  ;;  %v4057_v37 = vor.u32 %v5483_v29, %v4056_v27 }
  0x37   :  { %949 = vmatpush.bf16.msrb.mxu2 %v4153_v44  ;;  %918 = vmatmul.bf16.vlgmr.msra.gmra.mxu3 %v5909_v57  ;;  %v3984_v36 = vld [vmem:[#allocation4 + $0x660] sm:$0xf]  ;;  %v4121_v38 = vor.u32 %v5499_v31, %v4120_v30  ;;  %v5465_v39 = vld [vmem:[#allocation4 + $0x674] sm:$0xf0]  ;;  %v3765_v45 = vor.u32 %v5408_v34, %v3762_v35  ;;  %v5406_v47 = vld [vmem:[#allocation4 + $0xf4] sm:$0xf] }
  0x38   :  { %966 = vmatpush.bf16.msrb.mxu3 %v4185_v48  ;;  %v4048_v40 = vld [vmem:[#allocation4 + $0x7e0] sm:$0xf]  ;;  %v84_v41 = vld [vmem:[#allocation2 + $0x38] sm:$0xff]  ;;  %v3985_v46 = vor.u32 %v5465_v39, %v3984_v36  ;;  %v3754_v48 = vld [vmem:[#allocation4 + $0x108] sm:$0xf0] }
  0x39   :  { %924 = vmatpush.bf16.msrb.mxu0 %v4017_v55  ;;  %v5481_v42 = vld [vmem:[#allocation4 + $0x7f4] sm:$0xf0]  ;;  %v4112_v43 = vld [vmem:[#allocation4 + $0x960] sm:$0xf]  ;;  %v5919_v49 = vpack.c.bf16 %v84_v41, %v84_v41  ;;  %v3976_v53 = vld [vmem:[#allocation4 + $0x630] sm:$0xf] }
  0x3a   :  { %937 = vmatpush.bf16.msrb.mxu1 %v4081_v56  ;;  %v5497_v44 = vld [vmem:[#allocation4 + $0x974] sm:$0xf0]  ;;  %v4049_v50 = vor.u32 %v5481_v42, %v4048_v40  ;;  %v5463_v54 = vld [vmem:[#allocation4 + $0x644] sm:$0xf0]  ;;  %v4040_v55 = vld [vmem:[#allocation4 + $0x7b0] sm:$0xf] }
  0x3b   :  { %950 = vmatpush.bf16.msrb.mxu2 %v4145_v60  ;;  %6583 = vst [vmem:[#allocation13_spill] sm:$0xff] %v5919_v49  ;;  %v4113_v52 = vor.u32 %v5497_v44, %v4112_v43  ;;  %v5479_v56 = vld [vmem:[#allocation4 + $0x7c4] sm:$0xf0]  ;;  %v4104_v58 = vld [vmem:[#allocation4 + $0x930] sm:$0xf]  ;;  %v3757_v60 = vor.u32 %v5406_v47, %v3754_v48  ;;  %v3977_v61 = vor.u32 %v5463_v54, %v3976_v53  ;;  %v81_v18 = vld [vmem:[#allocation2 + $0x20] sm:$0xff] }
  0x3c   :  { %967 = vmatpush.bf16.msrb.mxu3 %v4177_v2  ;;  %v5495_v59 = vld [vmem:[#allocation4 + $0x944] sm:$0xf0]  ;;  %v5404_v62 = vld [vmem:[#allocation4 + $0xc4] sm:$0xf]  ;;  %v3746_v63 = vld [vmem:[#allocation4 + $0xd8] sm:$0xf0]  ;;  %v4041_v3 = vor.u32 %v5479_v56, %v4040_v55  ;;  %v5923_v29 = vpack.c.bf16 %v81_v18, %v81_v18 }
  0x3d   :  { %925 = vmatpush.bf16.msrb.mxu0 %v4009_v8  ;;  %v3968_v2 = vld [vmem:[#allocation4 + $0x600] sm:$0xf]  ;;  %v4105_v4 = vor.u32 %v5495_v59, %v4104_v58  ;;  %v5461_v5 = vld [vmem:[#allocation4 + $0x614] sm:$0xf0]  ;;  %v3749_v11 = vor.u32 %v5404_v62, %v3746_v63  ;;  %v3834_v12 = vld [vmem:[#allocation4 + $0x2e8] sm:$0xf0] }
  0x3e   :  { %938 = vmatpush.bf16.msrb.mxu1 %v4073_v9  ;;  %v4032_v6 = vld [vmem:[#allocation4 + $0x780] sm:$0xf]  ;;  %v5477_v7 = vld [vmem:[#allocation4 + $0x794] sm:$0xf0]  ;;  %v5442_v13 = vld [vmem:[#allocation4 + $0x454] sm:$0xf]  ;;  %v3969_v15 = vor.u32 %v5461_v5, %v3968_v2 }
  0x3f   :  { %951 = vmatpush.bf16.msrb.mxu2 %v4137_v10  ;;  %v4096_v8 = vld [vmem:[#allocation4 + $0x900] sm:$0xf]  ;;  %v5493_v9 = vld [vmem:[#allocation4 + $0x914] sm:$0xf0]  ;;  %v5426_v10 = vld [vmem:[#allocation4 + $0x2d4] sm:$0xf]  ;;  %v4033_v19 = vor.u32 %v5477_v7, %v4032_v6 }
  0x40   :  { %968 = vmatpush.bf16.msrb.mxu3 %v4169_v14  ;;  %v3898_v14 = vld [vmem:[#allocation4 + $0x468] sm:$0xf0]  ;;  %v5402_v16 = vld [vmem:[#allocation4 + $0x94] sm:$0xf]  ;;  %v5424_v27 = vld [vmem:[#allocation4 + $0x2a4] sm:$0xf] }
  0x41   :  { %926 = vmatpush.bf16.msrb.mxu0 %v4001_v20  ;;  %v3738_v17 = vld [vmem:[#allocation4 + $0xa8] sm:$0xf0]  ;;  %v4097_v20 = vor.u32 %v5493_v9, %v4096_v8  ;;  %v83_v21 = vld [vmem:[#allocation2 + $0x30] sm:$0xff]  ;;  %6584 = vst [vmem:[#allocation14_spill] sm:$0xff] %v5923_v29  ;;  %v3826_v30 = vld [vmem:[#allocation4 + $0x2b8] sm:$0xf0] }
  0x42   :  { %939 = vmatpush.bf16.msrb.mxu1 %v4065_v23  ;;  %v82_v22 = vld [vmem:[#allocation2 + $0x28] sm:$0xff]  ;;  %v3837_v23 = vor.u32 %v5426_v10, %v3834_v12  ;;  %v5458_v25 = vld [vmem:[#allocation4 + $0x5d4] sm:$0xf]  ;;  %v5440_v31 = vld [vmem:[#allocation4 + $0x424] sm:$0xf] }
  0x43   :  { %952 = vmatpush.bf16.msrb.mxu2 %v4129_v24  ;;  %v3901_v24 = vor.u32 %v5442_v13, %v3898_v14  ;;  %v3962_v26 = vld [vmem:[#allocation4 + $0x5e8] sm:$0xf0]  ;;  %v5927_v34 = vpack.c.bf16 %v82_v22, %v82_v22  ;;  %v5400_v35 = vld [vmem:[#allocation4 + $0x64] sm:$0xf]  ;;  %v3730_v36 = vld [vmem:[#allocation4 + $0x78] sm:$0xf0] }
  0x44   :  { %969 = vmatpush.bf16.msrb.mxu3 %v4161_v28  ;;  %v3741_v28 = vor.u32 %v5402_v16, %v3738_v17  ;;  %v5456_v40 = vld [vmem:[#allocation4 + $0x5a4] sm:$0xf]  ;;  %v3954_v41 = vld [vmem:[#allocation4 + $0x5b8] sm:$0xf0]  ;;  %v5422_v42 = vld [vmem:[#allocation4 + $0x274] sm:$0xf]  ;;  %v3733_v43 = vor.u32 %v5400_v35, %v3730_v36 }
  0x45   :  { %927 = vmatpush.bf16.msrb.mxu0 %v3993_v33  ;;  %v5925_v33 = vpack.c.bf16 %v83_v21, %v83_v21  ;;  %6586 = vst [vmem:[#allocation16_spill] sm:$0xff] %v5927_v34  ;;  %v3818_v44 = vld [vmem:[#allocation4 + $0x288] sm:$0xf0]  ;;  %v5398_v47 = vld [vmem:[#allocation4 + $0x34] sm:$0xf] }
  0x46   :  { %940 = vmatpush.bf16.msrb.mxu1 %v4057_v37  ;;  %v3965_v37 = vor.u32 %v5458_v25, %v3962_v26  ;;  %v3722_v48 = vld [vmem:[#allocation4 + $0x48] sm:$0xf0]  ;;  %v5454_v54 = vld [vmem:[#allocation4 + $0x574] sm:$0xf]  ;;  %v5420_v56 = vld [vmem:[#allocation4 + $0x244] sm:$0xf] }
  0x47   :  { %953 = vmatpush.bf16.msrb.mxu2 %v4121_v38  ;;  %4190 = vmatmul.msk.bf16.vlgmr.msrb.gmra.mxu3 %vm867_vm0, %v5919_v49  ;;  %6585 = vst [vmem:[#allocation15_spill] sm:$0xff] %v5925_v33  ;;  %v3829_v38 = vor.u32 %v5424_v27, %v3826_v30  ;;  %v3946_v55 = vld [vmem:[#allocation4 + $0x588] sm:$0xf0]  ;;  %v3725_v58 = vor.u32 %v5398_v47, %v3722_v48  ;;  %v3810_v59 = vld [vmem:[#allocation4 + $0x258] sm:$0xf0] }
  0x48   :  { %975 = vmatpush.bf16.msra.mxu3 %v3773_v32  ;;  %v3890_v32 = vld [vmem:[#allocation4 + $0x438] sm:$0xf0]  ;;  %v5396_v62 = vld [vmem:[#allocation4 + $0x4] sm:$0xf]  ;;  %v3949_v2 = vor.u32 %v5454_v54, %v3946_v55  ;;  %v3813_v5 = vor.u32 %v5420_v56, %v3810_v59  ;;  %v5418_v9 = vld [vmem:[#allocation4 + $0x214] sm:$0xf] }
  0x49   :  { %928 = vmatpush.bf16.msrb.mxu0 %v3985_v46  ;;  %v3893_v39 = vor.u32 %v5440_v31, %v3890_v32  ;;  %v3882_v46 = vld [vmem:[#allocation4 + $0x408] sm:$0xf0]  ;;  %v3714_v63 = vld [vmem:[#allocation4 + $0x18] sm:$0xf0]  ;;  %v5452_v7 = vld [vmem:[#allocation4 + $0x544] sm:$0xf] }
  0x4a   :  { %941 = vmatpush.bf16.msrb.mxu1 %v4049_v50  ;;  %v3957_v50 = vor.u32 %v5456_v40, %v3954_v41  ;;  %v3938_v8 = vld [vmem:[#allocation4 + $0x558] sm:$0xf0]  ;;  %v3717_v10 = vor.u32 %v5396_v62, %v3714_v63  ;;  %v5434_v12 = vld [vmem:[#allocation4 + $0x394] sm:$0xf]  ;;  %v3866_v13 = vld [vmem:[#allocation4 + $0x3a8] sm:$0xf0] }
  0x4b   :  { %954 = vmatpush.bf16.msrb.mxu2 %v4113_v52  ;;  %v3821_v52 = vor.u32 %v5422_v42, %v3818_v44  ;;  %v5472_v16 = vld [vmem:[#allocation4 + $0x724] sm:$0xf]  ;;  %v4018_v17 = vld [vmem:[#allocation4 + $0x738] sm:$0xf0]  ;;  %v3930_v21 = vld [vmem:[#allocation4 + $0x528] sm:$0xf0] }
  0x4c   :  { %976 = vmatpush.bf16.msra.mxu3 %v3765_v45  ;;  %v5438_v45 = vld [vmem:[#allocation4 + $0x3f4] sm:$0xf]  ;;  %v5416_v22 = vld [vmem:[#allocation4 + $0x1e4] sm:$0xf]  ;;  %v3858_v25 = vld [vmem:[#allocation4 + $0x378] sm:$0xf0]  ;;  %v4021_v26 = vor.u32 %v5472_v16, %v4018_v17 }
  0x4d   :  { %929 = vmatpush.bf16.msrb.mxu0 %v3977_v61  ;;  %v3885_v53 = vor.u32 %v5438_v45, %v3882_v46  ;;  %v3874_v61 = vld [vmem:[#allocation4 + $0x3d8] sm:$0xf0]  ;;  %v4010_v30 = vld [vmem:[#allocation4 + $0x708] sm:$0xf0]  ;;  %v5448_v35 = vld [vmem:[#allocation4 + $0x4e4] sm:$0xf] }
  0x4e   :  { %942 = vmatpush.bf16.msrb.mxu1 %v4041_v3  ;;  %v5474_v3 = vld [vmem:[#allocation4 + $0x754] sm:$0xf]  ;;  %v3922_v36 = vld [vmem:[#allocation4 + $0x4f8] sm:$0xf0]  ;;  %v3850_v40 = vld [vmem:[#allocation4 + $0x348] sm:$0xf0] }
  0x4f   :  { %955 = vmatpush.bf16.msrb.mxu2 %v4105_v4  ;;  %v4026_v4 = vld [vmem:[#allocation4 + $0x768] sm:$0xf0]  ;;  %v3925_v42 = vor.u32 %v5448_v35, %v3922_v36  ;;  %v4002_v44 = vld [vmem:[#allocation4 + $0x6d8] sm:$0xf0]  ;;  %v5446_v45 = vld [vmem:[#allocation4 + $0x4b4] sm:$0xf] }
  0x50   :  { %977 = vmatpush.bf16.msra.mxu3 %v3757_v60  ;;  %v5436_v60 = vld [vmem:[#allocation4 + $0x3c4] sm:$0xf]  ;;  %v4029_v14 = vor.u32 %v5474_v3, %v4026_v4  ;;  %v3914_v48 = vld [vmem:[#allocation4 + $0x4c8] sm:$0xf0]  ;;  %v3842_v54 = vld [vmem:[#allocation4 + $0x318] sm:$0xf0] }
  0x51   :  { %930 = vmatpush.bf16.msrb.mxu0 %v3969_v15  ;;  %v3877_v6 = vor.u32 %v5436_v60, %v3874_v61  ;;  %v3941_v15 = vor.u32 %v5452_v7, %v3938_v8  ;;  %v5490_v55 = vld [vmem:[#allocation4 + $0x8d4] sm:$0xf]  ;;  %v4154_v60 = vld [vmem:[#allocation4 + $0xa68] sm:$0xf0]  ;;  %v3917_v61 = vor.u32 %v5446_v45, %v3914_v48  ;;  %v5444_v4 = vld [vmem:[#allocation4 + $0x484] sm:$0xf] }
  0x52   :  { %943 = vmatpush.bf16.msrb.mxu1 %v4033_v19  ;;  %v3869_v19 = vor.u32 %v5434_v12, %v3866_v13  ;;  %v5506_v59 = vld [vmem:[#allocation4 + $0xa54] sm:$0xf]  ;;  %v3994_v63 = vld [vmem:[#allocation4 + $0x6a8] sm:$0xf0]  ;;  %v5488_v8 = vld [vmem:[#allocation4 + $0x8a4] sm:$0xf] }
  0x53   :  { %956 = vmatpush.bf16.msrb.mxu2 %v4097_v20  ;;  %v5450_v20 = vld [vmem:[#allocation4 + $0x514] sm:$0xf]  ;;  %v4157_v7 = vor.u32 %v5506_v59, %v4154_v60  ;;  %v4082_v12 = vld [vmem:[#allocation4 + $0x8b8] sm:$0xf0]  ;;  %v5504_v13 = vld [vmem:[#allocation4 + $0xa24] sm:$0xf] }
  0x54   :  { %978 = vmatpush.bf16.msra.mxu3 %v3749_v11  ;;  %931 = vmatmul.bf16.vlgmr.msrb.gmra.mxu0 %v5923_v29  ;;  %v3802_v11 = vld [vmem:[#allocation4 + $0x228] sm:$0xf0]  ;;  %v3933_v27 = vor.u32 %v5450_v20, %v3930_v21  ;;  %v5466_v62 = vld [vmem:[#allocation4 + $0x694] sm:$0xf]  ;;  %v5464_v16 = vld [vmem:[#allocation4 + $0x664] sm:$0xf] }
  0x55   :  { %988 = vmatpush.bf16.msra.mxu0 %v3837_v23  ;;  %944 = vmatmul.bf16.vlgmr.msrb.gmra.mxu1 %v5927_v34  ;;  %v3805_v18 = vor.u32 %v5418_v9, %v3802_v11  ;;  %v3794_v23 = vld [vmem:[#allocation4 + $0x1f8] sm:$0xf0]  ;;  %v5514_v9 = vld [vmem:[#allocation4 + $0xb14] sm:$0xf]  ;;  %v3997_v11 = vor.u32 %v5466_v62, %v3994_v63  ;;  %v5484_v36 = vld [vmem:[#allocation4 + $0x844] sm:$0xf] }
  0x56   :  { %1001 = vmatpush.bf16.msra.mxu1 %v3901_v24  ;;  %957 = vmatmul.bf16.vlgmr.msrb.gmra.mxu2 %v5925_v33  ;;  %v5432_v24 = vld [vmem:[#allocation4 + $0x364] sm:$0xf]  ;;  %v3797_v31 = vor.u32 %v5416_v22, %v3794_v23  ;;  %v3986_v17 = vld [vmem:[#allocation4 + $0x678] sm:$0xf0]  ;;  %v5486_v21 = vld [vmem:[#allocation4 + $0x874] sm:$0xf] }
  0x57   :  { %1014 = vmatpush.bf16.msra.mxu2 %v3965_v37  ;;  %v3861_v32 = vor.u32 %v5432_v24, %v3858_v25  ;;  %v5414_v37 = vld [vmem:[#allocation4 + $0x1b4] sm:$0xf]  ;;  %v5512_v22 = vld [vmem:[#allocation4 + $0xae4] sm:$0xf]  ;;  %v4178_v23 = vld [vmem:[#allocation4 + $0xaf8] sm:$0xf0]  ;;  %v3989_v24 = vor.u32 %v5464_v16, %v3986_v17 }
  0x58   :  { %979 = vmatpush.bf16.msra.mxu3 %v3741_v28  ;;  %v5470_v28 = vld [vmem:[#allocation4 + $0x6f4] sm:$0xf]  ;;  %v4074_v25 = vld [vmem:[#allocation4 + $0x888] sm:$0xf0] }
  0x59   :  { %989 = vmatpush.bf16.msra.mxu0 %v3829_v38  ;;  %v3786_v38 = vld [vmem:[#allocation4 + $0x1c8] sm:$0xf0]  ;;  %v4013_v41 = vor.u32 %v5470_v28, %v4010_v30  ;;  %v5462_v28 = vld [vmem:[#allocation4 + $0x634] sm:$0xf] }
  0x5a   :  { %1002 = vmatpush.bf16.msra.mxu1 %v3893_v39  ;;  %v5430_v39 = vld [vmem:[#allocation4 + $0x334] sm:$0xf]  ;;  %v3789_v46 = vor.u32 %v5414_v37, %v3786_v38  ;;  %v3978_v30 = vld [vmem:[#allocation4 + $0x648] sm:$0xf0] }
  0x5b   :  { %1015 = vmatpush.bf16.msra.mxu2 %v3957_v50  ;;  %v3853_v47 = vor.u32 %v5430_v39, %v3850_v40  ;;  %v5412_v50 = vld [vmem:[#allocation4 + $0x184] sm:$0xf]  ;;  %v5510_v37 = vld [vmem:[#allocation4 + $0xab4] sm:$0xf]  ;;  %v4170_v38 = vld [vmem:[#allocation4 + $0xac8] sm:$0xf0]  ;;  %v3981_v39 = vor.u32 %v5462_v28, %v3978_v30 }
  0x5c   :  { %980 = vmatpush.bf16.msra.mxu3 %v3733_v43  ;;  %v5468_v43 = vld [vmem:[#allocation4 + $0x6c4] sm:$0xf]  ;;  %v4066_v40 = vld [vmem:[#allocation4 + $0x858] sm:$0xf0]  ;;  %v4173_v45 = vor.u32 %v5510_v37, %v4170_v38  ;;  %v4122_v59 = vld [vmem:[#allocation4 + $0x9a8] sm:$0xf0] }
  0x5d   :  { %990 = vmatpush.bf16.msra.mxu0 %v3821_v52  ;;  %v3778_v52 = vld [vmem:[#allocation4 + $0x198] sm:$0xf0]  ;;  %v4005_v56 = vor.u32 %v5468_v43, %v4002_v44  ;;  %v5460_v43 = vld [vmem:[#allocation4 + $0x604] sm:$0xf]  ;;  %v4069_v48 = vor.u32 %v5484_v36, %v4066_v40  ;;  %v4362_v60 = vld [vmem:[#allocation7 + $0x150] sm:$0xf] }
  0x5e   :  { %1003 = vmatpush.bf16.msra.mxu1 %v3885_v53  ;;  %v5428_v53 = vld [vmem:[#allocation4 + $0x304] sm:$0xf]  ;;  %v3970_v44 = vld [vmem:[#allocation4 + $0x618] sm:$0xf0] }
  0x5f   :  { %1016 = vmatpush.bf16.msra.mxu2 %v3949_v2  ;;  %v3781_v2 = vor.u32 %v5412_v50, %v3778_v52  ;;  %v3845_v3 = vor.u32 %v5428_v53, %v3842_v54  ;;  %v5508_v52 = vld [vmem:[#allocation4 + $0xa84] sm:$0xf]  ;;  %v4162_v53 = vld [vmem:[#allocation4 + $0xa98] sm:$0xf0]  ;;  %v3973_v54 = vor.u32 %v5460_v43, %v3970_v44  ;;  %v4268_v44 = vld [vmem:[#allocation7 + $0xa8] sm:$0xf0] }
  0x60   :  { %981 = vmatpush.bf16.msra.mxu3 %v3725_v58  ;;  %v4090_v58 = vld [vmem:[#allocation4 + $0x8e8] sm:$0xf0]  ;;  %v4165_v63 = vor.u32 %v5508_v52, %v4162_v53  ;;  %v5476_v30 = vld [vmem:[#allocation4 + $0x784] sm:$0xf]  ;;  %v4098_v36 = vld [vmem:[#allocation4 + $0x918] sm:$0xf0] }
  0x61   :  { %991 = vmatpush.bf16.msra.mxu0 %v3813_v5  ;;  %v3906_v5 = vld [vmem:[#allocation4 + $0x498] sm:$0xf0]  ;;  %v4290_v38 = vld [vmem:[#allocation7 + $0xc0] sm:$0xf]  ;;  %v4266_v53 = vld [vmem:[#allocation7 + $0x90] sm:$0xf] }
  0x62   :  { %1004 = vmatpush.bf16.msra.mxu1 %v3877_v6  ;;  %v4093_v6 = vor.u32 %v5490_v55, %v4090_v58  ;;  %v5482_v55 = vld [vmem:[#allocation4 + $0x814] sm:$0xf]  ;;  %v4370_v40 = vld [vmem:[#allocation7 + $0x158] sm:$0xf]  ;;  %v5366_v43 = vld [vmem:[#allocation7 + $0x94] sm:$0xf] }
  0x63   :  { %1017 = vmatpush.bf16.msra.mxu2 %v3941_v15  ;;  %v3909_v15 = vor.u32 %v5444_v4, %v3906_v5  ;;  %v5498_v58 = vld [vmem:[#allocation4 + $0x994] sm:$0xf] }
  0x64   :  { %982 = vmatpush.bf16.msra.mxu3 %v3717_v10  ;;  %v4186_v10 = vld [vmem:[#allocation4 + $0xb28] sm:$0xf0]  ;;  %v4125_v5 = vor.u32 %v5498_v58, %v4122_v59  ;;  %v4244_v58 = vld [vmem:[#allocation7 + $0x78] sm:$0xf0] }
  0x65   :  { %992 = vmatpush.bf16.msra.mxu0 %v3805_v18  ;;  %v4189_v18 = vor.u32 %v5514_v9, %v4186_v10  ;;  %v5496_v9 = vld [vmem:[#allocation4 + $0x964] sm:$0xf]  ;;  %v4114_v10 = vld [vmem:[#allocation4 + $0x978] sm:$0xf0] }
  0x66   :  { %1005 = vmatpush.bf16.msra.mxu1 %v3869_v19  ;;  %v4085_v19 = vor.u32 %v5488_v8, %v4082_v12  ;;  %v4117_v17 = vor.u32 %v5496_v9, %v4114_v10  ;;  %v5357_v9 = vld [vmem:[#allocation7 + $0x44] sm:$0xf0] }
  0x67   :  { %983 = vmatmul.bf16.vlgmr.msra.gmra.mxu3 %v5911_v0  ;;  %1018 = vmatpush.bf16.msra.mxu2 %v3933_v27  ;;  %v4138_v27 = vld [vmem:[#allocation4 + $0xa08] sm:$0xf0] }
  0x68   :  { %1027 = vmatpush.bf16.msrb.mxu3 %v4029_v14  ;;  %v4146_v14 = vld [vmem:[#allocation4 + $0xa38] sm:$0xf0] }
  0x69   :  { %993 = vmatpush.bf16.msra.mxu0 %v3797_v31  ;;  %v4149_v20 = vor.u32 %v5504_v13, %v4146_v14  ;;  %v4181_v31 = vor.u32 %v5512_v22, %v4178_v23  ;;  %v5387_v13 = vld [vmem:[#allocation7 + $0x134] sm:$0xf0]  ;;  %v5378_v14 = vld [vmem:[#allocation7 + $0xf4] sm:$0xf]  ;;  %v4314_v23 = vld [vmem:[#allocation7 + $0xf0] sm:$0xf] }
  0x6a   :  { %1006 = vmatpush.bf16.msra.mxu1 %v3861_v32  ;;  %v4077_v32 = vor.u32 %v5486_v21, %v4074_v25  ;;  %v4106_v21 = vld [vmem:[#allocation4 + $0x948] sm:$0xf0] }
  0x6b   :  { %1019 = vmatpush.bf16.msra.mxu2 %v3925_v42  ;;  %v4130_v42 = vld [vmem:[#allocation4 + $0x9d8] sm:$0xf0]  ;;  %v5381_v25 = vld [vmem:[#allocation7 + $0x104] sm:$0xf0] }
  0x6c   :  { %1028 = vmatpush.bf16.msrb.mxu3 %v4021_v26  ;;  %v5502_v26 = vld [vmem:[#allocation4 + $0x9f4] sm:$0xf]  ;;  %v5953_v37 = vor.u32 %v5381_v25, %v4314_v23  ;;  %v4348_v23 = vld [vmem:[#allocation7 + $0x140] sm:$0xf0]  ;;  %v4378_v25 = vld [vmem:[#allocation7 + $0x160] sm:$0xf] }
  0x6d   :  { %994 = vmatpush.bf16.msra.mxu0 %v3789_v46  ;;  %v4141_v35 = vor.u32 %v5502_v26, %v4138_v27  ;;  %v5390_v46 = vld [vmem:[#allocation7 + $0x154] sm:$0xf]  ;;  %v5372_v26 = vld [vmem:[#allocation7 + $0xc4] sm:$0xf]  ;;  %v4292_v27 = vld [vmem:[#allocation7 + $0xd8] sm:$0xf0] }
  0x6e   :  { %1007 = vmatpush.bf16.msra.mxu1 %v3853_v47  ;;  %v4364_v47 = vld [vmem:[#allocation7 + $0x168] sm:$0xf0]  ;;  %6592 = vst [vmem:[#allocation22_spill] sm:$0xff] %v5953_v37 }
  0x6f   :  { %1020 = vmatpush.bf16.msra.mxu2 %v3917_v61  ;;  %v5393_v61 = vld [vmem:[#allocation7 + $0x164] sm:$0xf0]  ;;  %v5936_v62 = vor.u32 %v5390_v46, %v4364_v47  ;;  %v5391_v46 = vld [vmem:[#allocation7 + $0x15c] sm:$0xf]  ;;  %v4372_v47 = vld [vmem:[#allocation7 + $0x170] sm:$0xf0] }
  0x70   :  { %1029 = vmatpush.bf16.msrb.mxu3 %v4013_v41  ;;  %v5500_v41 = vld [vmem:[#allocation4 + $0x9c4] sm:$0xf]  ;;  %v5938_v8 = vor.u32 %v5393_v61, %v4362_v60  ;;  %v5966_v59 = vor.u32 %v5391_v46, %v4372_v47  ;;  %v5386_v46 = vld [vmem:[#allocation7 + $0x134] sm:$0xf]  ;;  %v4356_v47 = vld [vmem:[#allocation7 + $0x148] sm:$0xf0] }
  0x71   :  { %995 = vmatpush.bf16.msra.mxu0 %v3781_v2  ;;  %v4133_v50 = vor.u32 %v5500_v41, %v4130_v42  ;;  %6587 = vst [vmem:[#allocation17_spill] sm:$0xff] %v5936_v62  ;;  %v5384_v2 = vld [vmem:[#allocation7 + $0x124] sm:$0xf]  ;;  %v5394_v41 = vld [vmem:[#allocation7 + $0x16c] sm:$0xf0] }
  0x72   :  { %1008 = vmatpush.bf16.msra.mxu1 %v3845_v3  ;;  %v4340_v3 = vld [vmem:[#allocation7 + $0x138] sm:$0xf0]  ;;  %6588 = vst [vmem:[#allocation18_spill] sm:$0xff] %v5938_v8  ;;  %v5375_v42 = vld [vmem:[#allocation7 + $0xd4] sm:$0xf0] }
  0x73   :  { %1021 = vmatpush.bf16.msra.mxu2 %v3909_v15  ;;  %v5941_v12 = vor.u32 %v5384_v2, %v4340_v3  ;;  %v4316_v15 = vld [vmem:[#allocation7 + $0x108] sm:$0xf0]  ;;  %v5961_v52 = vor.u32 %v5375_v42, %v4290_v38  ;;  %v4242_v61 = vld [vmem:[#allocation7 + $0x60] sm:$0xf]  ;;  %v5363_v2 = vld [vmem:[#allocation7 + $0x74] sm:$0xf0] }
  0x74   :  { %1030 = vmatpush.bf16.msrb.mxu3 %v4005_v56  ;;  %996 = vmatmul.bf16.vlgmr.msra.gmra.mxu0 %v5913_v1  ;;  %v4058_v56 = vld [vmem:[#allocation4 + $0x828] sm:$0xf0]  ;;  %v5354_v3 = vld [vmem:[#allocation7 + $0x34] sm:$0xf]  ;;  %v5379_v38 = vld [vmem:[#allocation7 + $0xfc] sm:$0xf] }
  0x75   :  { %1040 = vmatpush.bf16.msrb.mxu0 %v4093_v6  ;;  %1009 = vmatmul.bf16.vlgmr.msra.gmra.mxu1 %v5907_v51  ;;  %v4061_v4 = vor.u32 %v5482_v55, %v4058_v56  ;;  %v5480_v6 = vld [vmem:[#allocation4 + $0x7e4] sm:$0xf]  ;;  %6589 = vst [vmem:[#allocation19_spill] sm:$0xff] %v5941_v12  ;;  %v5369_v55 = vld [vmem:[#allocation7 + $0xa4] sm:$0xf0] }
  0x76   :  { %1053 = vmatpush.bf16.msrb.mxu1 %v4157_v7  ;;  %1022 = vmatmul.bf16.vlgmr.msra.gmra.mxu2 %v5909_v57  ;;  %v4050_v7 = vld [vmem:[#allocation4 + $0x7f8] sm:$0xf0]  ;;  %6594 = vst [vmem:[#allocation24_spill] sm:$0xff] %v5961_v52  ;;  %v5360_v56 = vld [vmem:[#allocation7 + $0x64] sm:$0xf]  ;;  %v5970_v60 = vor.u32 %v5369_v55, %v4266_v53  ;;  %v6014_v53 = vor.u32 %v5386_v46, %v4356_v47 }
  0x77   :  { %1070 = vmatpush.bf16.msrb.mxu2 %v4189_v18  ;;  %v4053_v16 = vor.u32 %v5480_v6, %v4050_v7  ;;  %v5478_v18 = vld [vmem:[#allocation4 + $0x7b4] sm:$0xf]  ;;  %v5376_v55 = vld [vmem:[#allocation7 + $0xdc] sm:$0xf0]  ;;  %v4252_v46 = vld [vmem:[#allocation7 + $0x80] sm:$0xf0] }
  0x78   :  { %1031 = vmatpush.bf16.msrb.mxu3 %v3997_v11  ;;  %v4338_v11 = vld [vmem:[#allocation7 + $0x120] sm:$0xf]  ;;  %6596 = vst [vmem:[#allocation26_spill] sm:$0xff] %v5970_v60  ;;  %v4218_v7 = vld [vmem:[#allocation7 + $0x30] sm:$0xf] }
  0x79   :  { %1041 = vmatpush.bf16.msrb.mxu0 %v4085_v19  ;;  %v4042_v19 = vld [vmem:[#allocation4 + $0x7c8] sm:$0xf0]  ;;  %v5945_v22 = vor.u32 %v5387_v13, %v4338_v11  ;;  %v5985_v10 = vor.u32 %v5357_v9, %v4218_v7  ;;  %v4194_v11 = vld [vmem:[#allocation7] sm:$0xf]  ;;  %v5351_v13 = vld [vmem:[#allocation7 + $0x14] sm:$0xf0] }
  0x7a   :  { %1054 = vmatpush.bf16.msrb.mxu1 %v4149_v20  ;;  %v5494_v20 = vld [vmem:[#allocation4 + $0x934] sm:$0xf]  ;;  %v4045_v28 = vor.u32 %v5478_v18, %v4042_v19  ;;  %v5989_v18 = vor.u32 %v5351_v13, %v4194_v11  ;;  %6606 = vst [vmem:[#allocation36_spill] sm:$0xff] %v6014_v53  ;;  %v5380_v7 = vld [vmem:[#allocation7 + $0x104] sm:$0xf] }
  0x7b   :  { %1071 = vmatpush.bf16.msrb.mxu2 %v4181_v31  ;;  %6590 = vst [vmem:[#allocation20_spill] sm:$0xff] %v5945_v22  ;;  %v4109_v31 = vor.u32 %v5494_v20, %v4106_v21  ;;  %v5385_v21 = vld [vmem:[#allocation7 + $0x12c] sm:$0xf]  ;;  %v4354_v42 = vld [vmem:[#allocation7 + $0x130] sm:$0xf] }
  0x7c   :  { %1032 = vmatpush.bf16.msrb.mxu3 %v3989_v24  ;;  %v5948_v24 = vor.u32 %v5378_v14, %v4316_v15  ;;  %6600 = vst [vmem:[#allocation30_spill] sm:$0xff] %v5985_v10  ;;  %v5348_v14 = vld [vmem:[#allocation7 + $0x4] sm:$0xf]  ;;  %v4196_v15 = vld [vmem:[#allocation7 + $0x18] sm:$0xf0] }
  0x7d   :  { %1042 = vmatpush.bf16.msrb.mxu0 %v4077_v32  ;;  %v4034_v32 = vld [vmem:[#allocation4 + $0x798] sm:$0xf0]  ;;  %6601 = vst [vmem:[#allocation31_spill] sm:$0xff] %v5989_v18  ;;  %v5991_v19 = vor.u32 %v5348_v14, %v4196_v15  ;;  %v4332_v9 = vld [vmem:[#allocation7 + $0x118] sm:$0xf0] }
  0x7e   :  { %1055 = vmatpush.bf16.msrb.mxu1 %v4141_v35  ;;  %6591 = vst [vmem:[#allocation21_spill] sm:$0xff] %v5948_v24  ;;  %v5492_v35 = vld [vmem:[#allocation4 + $0x904] sm:$0xf]  ;;  %v6025_v13 = vor.u32 %v5380_v7, %v4332_v9  ;;  %v4274_v14 = vld [vmem:[#allocation7 + $0x98] sm:$0xf] }
  0x7f   :  { %1072 = vmatpush.bf16.msrb.mxu2 %v4173_v45  ;;  %v4037_v45 = vor.u32 %v5476_v30, %v4034_v32  ;;  %6602 = vst [vmem:[#allocation32_spill] sm:$0xff] %v5991_v19  ;;  %v4380_v30 = vld [vmem:[#allocation7 + $0x178] sm:$0xf0]  ;;  %v5370_v15 = vld [vmem:[#allocation7 + $0xac] sm:$0xf0] }
  0x80   :  { %1033 = vmatpush.bf16.msrb.mxu3 %v3981_v39  ;;  %v5956_v39 = vor.u32 %v5372_v26, %v4292_v27  ;;  %v5995_v26 = vor.u32 %v5385_v21, %v4348_v23  ;;  %v5395_v27 = vld [vmem:[#allocation7 + $0x174] sm:$0xf0]  ;;  %6608 = vst [vmem:[#allocation38_spill] sm:$0xff] %v6025_v13  ;;  %v4276_v21 = vld [vmem:[#allocation7 + $0xb0] sm:$0xf0] }
  0x81   :  { %1043 = vmatpush.bf16.msrb.mxu0 %v4069_v48  ;;  %v4101_v48 = vor.u32 %v5492_v35, %v4098_v36  ;;  %v4322_v35 = vld [vmem:[#allocation7 + $0xf8] sm:$0xf]  ;;  %v5382_v36 = vld [vmem:[#allocation7 + $0x10c] sm:$0xf0]  ;;  %v4282_v47 = vld [vmem:[#allocation7 + $0xa0] sm:$0xf] }
  0x82   :  { %1056 = vmatpush.bf16.msrb.mxu1 %v4133_v50  ;;  %6593 = vst [vmem:[#allocation23_spill] sm:$0xff] %v5956_v39  ;;  %v5958_v50 = vor.u32 %v5394_v41, %v4370_v40  ;;  %v6006_v40 = vor.u32 %v5382_v36, %v4322_v35  ;;  %v4324_v41 = vld [vmem:[#allocation7 + $0x110] sm:$0xf0]  ;;  %v4306_v23 = vld [vmem:[#allocation7 + $0xd0] sm:$0xf] }
  0x83   :  { %1073 = vmatpush.bf16.msrb.mxu2 %v4165_v63  ;;  %v5973_v63 = vor.u32 %v5360_v56, %v4244_v58  ;;  %v5373_v56 = vld [vmem:[#allocation7 + $0xcc] sm:$0xf]  ;;  %v4300_v58 = vld [vmem:[#allocation7 + $0xe0] sm:$0xf0] }
  0x84   :  { %1034 = vmatpush.bf16.msrb.mxu3 %v3973_v54  ;;  %v5964_v54 = vor.u32 %v5366_v43, %v4268_v44  ;;  %v5389_v43 = vld [vmem:[#allocation7 + $0x144] sm:$0xf0]  ;;  %v6009_v44 = vor.u32 %v5379_v38, %v4324_v41  ;;  %v5364_v41 = vld [vmem:[#allocation7 + $0x7c] sm:$0xf0] }
  0x85   :  { %1044 = vmatpush.bf16.msrb.mxu0 %v4061_v4  ;;  %6597 = vst [vmem:[#allocation27_spill] sm:$0xff] %v5973_v63  ;;  %v4220_v4 = vld [vmem:[#allocation7 + $0x48] sm:$0xf0]  ;;  %v4250_v38 = vld [vmem:[#allocation7 + $0x68] sm:$0xf] }
  0x86   :  { %1057 = vmatpush.bf16.msrb.mxu1 %v4125_v5  ;;  %4191 = vmatmul.msk.bf16.vlgmr.msrb.gmra.mxu2 %vm867_vm0, %v5919_v49  ;;  %6595 = vst [vmem:[#allocation25_spill] sm:$0xff] %v5964_v54  ;;  %v5979_v5 = vor.u32 %v5363_v2, %v4242_v61  ;;  %v5982_v6 = vor.u32 %v5354_v3, %v4220_v4  ;;  %v4330_v3 = vld [vmem:[#allocation7 + $0x100] sm:$0xf]  ;;  %v5383_v4 = vld [vmem:[#allocation7 + $0x114] sm:$0xf0] }
  0x87   :  { %1035 = vmatmul.bf16.vlgmr.msrb.gmra.mxu3 %v5923_v29  ;;  %1322 = vmatpush.bf16.msra.mxu2 %v5938_v8  ;;  %v6019_v2 = vor.u32 %v5373_v56, %v4300_v58  ;;  %v6023_v11 = vor.u32 %v5383_v4, %v4330_v3  ;;  %v5368_v58 = vld [vmem:[#allocation7 + $0xa4] sm:$0xf]  ;;  %v4284_v3 = vld [vmem:[#allocation7 + $0xb8] sm:$0xf0]  ;;  %v6073_v49 = vld [vmem:[#allocation6] sm:$0x3] }
  0x88   :  { %1335 = vmatpush.bf16.msra.mxu3 %v5936_v62  ;;  %6598 = vst [vmem:[#allocation28_spill] sm:$0xff] %v5979_v5  ;;  %v6050_v7 = vor.u32 %v5368_v58, %v4284_v3  ;;  %v5352_v58 = vld [vmem:[#allocation7 + $0x1c] sm:$0xf0]  ;;  %v5349_v3 = vld [vmem:[#allocation7 + $0xc] sm:$0xf] }
  0x89   :  { %1045 = vmatpush.bf16.msrb.mxu0 %v4053_v16  ;;  %6599 = vst [vmem:[#allocation29_spill] sm:$0xff] %v5982_v6  ;;  %v4346_v16 = vld [vmem:[#allocation7 + $0x128] sm:$0xf] }
  0x8a   :  { %1058 = vmatpush.bf16.msrb.mxu1 %v4117_v17  ;;  %v5388_v17 = vld [vmem:[#allocation7 + $0x13c] sm:$0xf0]  ;;  %6607 = vst [vmem:[#allocation37_spill] sm:$0xff] %v6023_v11 }
  0x8b   :  { %1323 = vmatpush.bf16.msra.mxu2 %v5945_v22  ;;  %v5993_v20 = vor.u32 %v5388_v17, %v4346_v16  ;;  %v5367_v16 = vld [vmem:[#allocation7 + $0x9c] sm:$0xf]  ;;  %v6028_v17 = vor.u32 %v5370_v15, %v4274_v14  ;;  %6612 = vst [vmem:[#allocation42_spill] sm:$0xff] %v6050_v7  ;;  %v4226_v14 = vld [vmem:[#allocation7 + $0x38] sm:$0xf] }
  0x8c   :  { %1336 = vmatpush.bf16.msra.mxu3 %v5941_v12  ;;  %v5358_v15 = vld [vmem:[#allocation7 + $0x4c] sm:$0xf0] }
  0x8d   :  { %1046 = vmatpush.bf16.msrb.mxu0 %v4045_v28  ;;  %v5392_v28 = vld [vmem:[#allocation7 + $0x164] sm:$0xf] }
  0x8e   :  { %1059 = vmatpush.bf16.msrb.mxu1 %v4109_v31  ;;  %v5999_v31 = vor.u32 %v5395_v27, %v4378_v25  ;;  %v6001_v32 = vor.u32 %v5392_v28, %v4380_v30  ;;  %v5377_v25 = vld [vmem:[#allocation7 + $0xe4] sm:$0xf0]  ;;  %v6031_v27 = vor.u32 %v5367_v16, %v4276_v21  ;;  %v5374_v28 = vld [vmem:[#allocation7 + $0xd4] sm:$0xf]  ;;  %v4308_v30 = vld [vmem:[#allocation7 + $0xe8] sm:$0xf0]  ;;  %v6055_v21 = vor.u32 %v5358_v15, %v4226_v14 }
  0x8f   :  { %1324 = vmatpush.bf16.msra.mxu2 %v5953_v37  ;;  %v6034_v35 = vor.u32 %v5374_v28, %v4308_v30  ;;  %v6037_v36 = vor.u32 %v5377_v25, %v4306_v23  ;;  %v5355_v16 = vld [vmem:[#allocation7 + $0x3c] sm:$0xf]  ;;  %v4228_v23 = vld [vmem:[#allocation7 + $0x50] sm:$0xf0]  ;;  %v4258_v25 = vld [vmem:[#allocation7 + $0x70] sm:$0xf] }
  0x90   :  { %1337 = vmatpush.bf16.msra.mxu3 %v5948_v24  ;;  %6603 = vst [vmem:[#allocation33_spill] sm:$0xff] %v5999_v31  ;;  %v5365_v28 = vld [vmem:[#allocation7 + $0x84] sm:$0xf0]  ;;  %v6057_v30 = vor.u32 %v5355_v16, %v4228_v23  ;;  %v4204_v16 = vld [vmem:[#allocation7 + $0x20] sm:$0xf0] }
  0x91   :  { %1047 = vmatpush.bf16.msrb.mxu0 %v4037_v45  ;;  %6604 = vst [vmem:[#allocation34_spill] sm:$0xff] %v6001_v32  ;;  %v6011_v45 = vor.u32 %v5389_v43, %v4354_v42  ;;  %v5361_v42 = vld [vmem:[#allocation7 + $0x6c] sm:$0xf]  ;;  %v6043_v43 = vor.u32 %v5364_v41, %v4250_v38  ;;  %v6059_v38 = vor.u32 %v5365_v28, %v4258_v25  ;;  %v5362_v41 = vld [vmem:[#allocation7 + $0x74] sm:$0xf] }
  0x92   :  { %1060 = vmatpush.bf16.msrb.mxu1 %v4101_v48  ;;  %v4298_v48 = vld [vmem:[#allocation7 + $0xc8] sm:$0xf]  ;;  %6609 = vst [vmem:[#allocation39_spill] sm:$0xff] %v6034_v35  ;;  %v4234_v23 = vld [vmem:[#allocation7 + $0x40] sm:$0xf]  ;;  %v6069_v28 = vor.u32 %v5349_v3, %v4204_v16 }
  0x93   :  { %1325 = vmatpush.bf16.msra.mxu2 %v5961_v52  ;;  %6605 = vst [vmem:[#allocation35_spill] sm:$0xff] %v6011_v45  ;;  %v6017_v61 = vor.u32 %v5376_v55, %v4298_v48  ;;  %v5371_v48 = vld [vmem:[#allocation7 + $0xb4] sm:$0xf0]  ;;  %v6045_v55 = vor.u32 %v5361_v42, %v4252_v46  ;;  %v4260_v42 = vld [vmem:[#allocation7 + $0x88] sm:$0xf0] }
  0x94   :  { %1338 = vmatpush.bf16.msra.mxu3 %v5956_v39  ;;  %1048 = vmatmul.bf16.vlgmr.msrb.gmra.mxu0 %v5927_v34  ;;  %6610 = vst [vmem:[#allocation40_spill] sm:$0xff] %v6037_v36  ;;  %v6047_v56 = vor.u32 %v5371_v48, %v4282_v47  ;;  %v6062_v46 = vor.u32 %v5362_v41, %v4260_v42  ;;  %v4202_v48 = vld [vmem:[#allocation7 + $0x8] sm:$0xf]  ;;  %v5359_v25 = vld [vmem:[#allocation7 + $0x54] sm:$0xf0] }
  0x95   :  { %1348 = vmatpush.bf16.msra.mxu0 %v5958_v50  ;;  %1061 = vmatmul.bf16.vlgmr.msrb.gmra.mxu1 %v5925_v33  ;;  %6613 = vst [vmem:[#allocation43_spill] sm:$0xff] %v6059_v38  ;;  %v6067_v15 = vor.u32 %v5352_v58, %v4202_v48  ;;  %v6071_v41 = vor.u32 %v5359_v25, %v4234_v23  ;;  %v5356_v42 = vld [vmem:[#allocation7 + $0x44] sm:$0xf]  ;;  %v4236_v33 = vld [vmem:[#allocation7 + $0x58] sm:$0xf0] }
  0x96   :  { %1361 = vmatpush.bf16.msra.mxu1 %v5966_v59  ;;  %6611 = vst [vmem:[#allocation41_spill] sm:$0xff] %v6047_v56  ;;  %v6076_v51 = vor.u32 %v5356_v42, %v4236_v33  ;;  %v4210_v48 = vld [vmem:[#allocation7 + $0x10] sm:$0xf]  ;;  %v5353_v58 = vld [vmem:[#allocation7 + $0x24] sm:$0xf0] }
  0x97   :  { %1326 = vmatpush.bf16.msra.mxu2 %v5970_v60  ;;  %6614 = vst [vmem:[#allocation44_spill] sm:$0xff] %v6062_v46  ;;  %v5350_v3 = vld [vmem:[#allocation7 + $0x14] sm:$0xf]  ;;  %v6082_v16 = vor.u32 %v5353_v58, %v4210_v48  ;;  %v4212_v23 = vld [vmem:[#allocation7 + $0x28] sm:$0xf0] }
  0x98   :  { %1339 = vmatpush.bf16.msra.mxu3 %v5964_v54  ;;  %6615 = vst [vmem:[#allocation45_spill] sm:$0xff] %v6071_v41 }
  0x99   :  { %1349 = vmatpush.bf16.msra.mxu0 %v5993_v20  ;;  %6616 = vst [vmem:[#allocation46_spill] sm:$0xff] %v6076_v51 }
  0x9a   :  { %1362 = vmatpush.bf16.msra.mxu1 %v5995_v26  ;;  %6617 = vst [vmem:[#allocation47_spill] sm:$0xff] %v6082_v16 }
  0x9b   :  { %1327 = vmatpush.bf16.msra.mxu2 %v5979_v5 }
  0x9c   :  { %1340 = vmatpush.bf16.msra.mxu3 %v5973_v63 }
  0x9d   :  { %1350 = vmatpush.bf16.msra.mxu0 %v6006_v40 }
  0x9e   :  { %1363 = vmatpush.bf16.msra.mxu1 %v6009_v44 }
  0x9f   :  { %1328 = vmatpush.bf16.msra.mxu2 %v5985_v10 }
  0xa0   :  { %1341 = vmatpush.bf16.msra.mxu3 %v5982_v6 }
  0xa1   :  { %1351 = vmatpush.bf16.msra.mxu0 %v6017_v61 }
  0xa2   :  { %1364 = vmatpush.bf16.msra.mxu1 %v6019_v2 }
  0xa3   :  { %1329 = vmatpush.bf16.msra.mxu2 %v5989_v18 }
  0xa4   :  { %1342 = vmatpush.bf16.msra.mxu3 %v5991_v19 }
  0xa5   :  { %1352 = vmatpush.bf16.msra.mxu0 %v6028_v17 }
  0xa6   :  { %1365 = vmatpush.bf16.msra.mxu1 %v6031_v27 }
  0xa7   :  { %1374 = vmatpush.bf16.msrb.mxu2 %v5999_v31 }
  0xa8   :  { %1387 = vmatpush.bf16.msrb.mxu3 %v6001_v32 }
  0xa9   :  { %1353 = vmatpush.bf16.msra.mxu0 %v6043_v43 }
  0xaa   :  { %1366 = vmatpush.bf16.msra.mxu1 %v6045_v55 }
  0xab   :  { %1375 = vmatpush.bf16.msrb.mxu2 %v6011_v45 }
  0xac   :  { %1388 = vmatpush.bf16.msrb.mxu3 %v6014_v53 }
  0xad   :  { %1354 = vmatpush.bf16.msra.mxu0 %v6055_v21 }
  0xae   :  { %1367 = vmatpush.bf16.msra.mxu1 %v6057_v30 }
  0xaf   :  { %1376 = vmatpush.bf16.msrb.mxu2 %v6023_v11 }
  0xb0   :  { %1389 = vmatpush.bf16.msrb.mxu3 %v6025_v13 }
  0xb1   :  { %v880_v4 = vpop.f32.mrf.mxu0  ;;  %1355 = vmatpush.bf16.msra.mxu0 %v6067_v15 }
  0xb2   :  { %v893_v9 = vpop.f32.mrf.mxu1  ;;  %1368 = vmatpush.bf16.msra.mxu1 %v6069_v28 }
  0xb3   :  { %1377 = vmatpush.bf16.msrb.mxu2 %v6037_v36 }
  0xb4   :  { %1390 = vmatpush.bf16.msrb.mxu3 %v6034_v35 }
  0xb5   :  { %1407 = vmatpush.bf16.msrb.mxu0 %v5938_v8 }
  0xb6   :  { %1420 = vmatpush.bf16.msrb.mxu1 %v5936_v62 }
  0xb7   :  { %1378 = vmatpush.bf16.msrb.mxu2 %v6047_v56 }
  0xb8   :  { %1391 = vmatpush.bf16.msrb.mxu3 %v6050_v7 }
  0xb9   :  { %v906_v47 = vpop.f32.mrf.mxu2  ;;  %v882_v34 = vpop.f32.mrf.mxu0  ;;  %1408 = vmatpush.bf16.msrb.mxu0 %v5945_v22 }
  0xba   :  { %v919_v14 = vpop.f32.mrf.mxu3  ;;  %v895_v29 = vpop.f32.mrf.mxu1  ;;  %v6085_v34 = vor.u32 %v5350_v3, %v4212_v23  ;;  %1421 = vmatpush.bf16.msrb.mxu1 %v5941_v12 }
  0xbb   :  { %1379 = vmatpush.bf16.msrb.mxu2 %v6059_v38  ;;  %v263_v29 = vperm.slane %v6073_v49, 0 }
  0xbc   :  { %1392 = vmatpush.bf16.msrb.mxu3 %v6062_v46  ;;  %6618 = vst [vmem:[#allocation48_spill] sm:$0xff] %v6085_v34 }
  0xbd   :  { %v881_v42 = vadd.f32 %v880_v4, %v263_v29  ;;  %1409 = vmatpush.bf16.msrb.mxu0 %v5953_v37 }
  0xbe   :  { %1422 = vmatpush.bf16.msrb.mxu1 %v5948_v24 }
  0xbf   :  { %1380 = vmatpush.bf16.msrb.mxu2 %v6071_v41  ;;  %v894_v48 = vadd.f32 %v893_v9, %v881_v42 }
  0xc0   :  { %1393 = vmatpush.bf16.msrb.mxu3 %v6076_v51 }
  0xc1   :  { %v908_v33 = vpop.f32.mrf.mxu2  ;;  %1410 = vmatpush.bf16.msrb.mxu0 %v5961_v52  ;;  %v907_v3 = vadd.f32 %v906_v47, %v894_v48 }
  0xc2   :  { %v921_v25 = vpop.f32.mrf.mxu3  ;;  %1423 = vmatpush.bf16.msrb.mxu1 %v5956_v39 }
  0xc3   :  { %1381 = vmatpush.bf16.msrb.mxu2 %v6082_v16  ;;  %v920_v23 = vadd.f32 %v919_v14, %v907_v3 }
  0xc4   :  { %1394 = vmatpush.bf16.msrb.mxu3 %v6085_v34 }
  0xc5   :  { %1411 = vmatpush.bf16.msrb.mxu0 %v5970_v60 }
  0xc6   :  { %1424 = vmatpush.bf16.msrb.mxu1 %v5964_v54 }
  0xc9   :  { %1412 = vmatpush.bf16.msrb.mxu0 %v5979_v5 }
  0xca   :  { %v971_v58 = vpop.f32.mrf.mxu3  ;;  %1425 = vmatpush.bf16.msrb.mxu1 %v5973_v63 }
  0xcd   :  { %1413 = vmatpush.bf16.msrb.mxu0 %v5985_v10  ;;  %v6623_v10 = vld [vmem:[#allocation15_spill] sm:$0xff] }
  0xce   :  { %1426 = vmatpush.bf16.msrb.mxu1 %v5982_v6 }
  0xd1   :  { %v932_v33 = vpop.f32.mrf.mxu0  ;;  %1414 = vmatpush.bf16.msrb.mxu0 %v5989_v18  ;;  %v4572_v18 = vld [vmem:[#allocation4 + $0x470] sm:$0xf0] }
  0xd2   :  { %v945_v25 = vpop.f32.mrf.mxu1  ;;  %v933_v22 = vadd.f32 %v932_v33, %v920_v23  ;;  %v973_v4 = vpop.f32.mrf.mxu3  ;;  %1427 = vmatpush.bf16.msrb.mxu1 %v5991_v19  ;;  %v4628_v19 = vld [vmem:[#allocation4 + $0x5c0] sm:$0xf0] }
  0xd4   :  { %v946_v9 = vadd.f32 %v945_v25, %v933_v22  ;;  %v264_v25 = vperm.slane %v6073_v49, 1 }
  0xd9   :  { %v958_v29 = vpop.f32.mrf.mxu2  ;;  %v934_v42 = vpop.f32.mrf.mxu0 }
  0xda   :  { %v959_v47 = vadd.f32 %v958_v29, %v946_v9  ;;  %v947_v48 = vpop.f32.mrf.mxu1  ;;  %v5531_v42 = vld [vmem:[#allocation4 + $0x16c] sm:$0xf0] }
  0xdb   :  { %v4506_v48 = vld [vmem:[#allocation4 + $0x2d8] sm:$0xf] }
  0xdc   :  { %v972_v60 = vadd.f32 %v971_v58, %v959_v47  ;;  %v4442_v47 = vld [vmem:[#allocation4 + $0x158] sm:$0xf] }
  0xdd   :  { %v4443_v49 = vor.u32 %v5531_v42, %v4442_v47  ;;  %v4426_v47 = vld [vmem:[#allocation4 + $0xf8] sm:$0xf]  ;;  %v5527_v42 = vld [vmem:[#allocation4 + $0x10c] sm:$0xf0] }
  0xde   :  { %v1079_v14 = vmax.f32 %v972_v60, 0.0 }
  0xe0   :  { %v1081_v3 = vpack.c.bf16 %v1079_v14, %v1079_v14  ;;  %v5547_v14 = vld [vmem:[#allocation4 + $0x2ec] sm:$0xf0] }
  0xe1   :  { %v960_v23 = vpop.f32.mrf.mxu2 }
  0xe2   :  { %1330 = vmatmul.bf16.vlgmr.msra.gmra.mxu2 %v1081_v3  ;;  %1343 = vmatmul.bf16.vlgmr.msra.gmra.mxu3 %v1081_v3  ;;  %v4507_v23 = vor.u32 %v5547_v14, %v4506_v48  ;;  %v4490_v48 = vld [vmem:[#allocation4 + $0x278] sm:$0xf]  ;;  %v5543_v14 = vld [vmem:[#allocation4 + $0x28c] sm:$0xf0] }
  0xe3   :  { %1356 = vmatmul.bf16.vlgmr.msra.gmra.mxu0 %v1081_v3  ;;  %1369 = vmatmul.bf16.vlgmr.msra.gmra.mxu1 %v1081_v3 }
  0xe4   :  { %1433 = vmatpush.bf16.msra.mxu2 %v5958_v50  ;;  %1446 = vmatpush.bf16.msra.mxu3 %v5966_v59 }
  0xe5   :  { %1459 = vmatpush.bf16.msra.mxu0 %v5999_v31  ;;  %1472 = vmatpush.bf16.msra.mxu1 %v6001_v32  ;;  %v5562_v31 = vld [vmem:[#allocation4 + $0x45c] sm:$0xf]  ;;  %v5625_v32 = vld [vmem:[#allocation4 + $0xa3c] sm:$0xf0] }
  0xe8   :  { %1434 = vmatpush.bf16.msra.mxu2 %v5993_v20  ;;  %1447 = vmatpush.bf16.msra.mxu3 %v5995_v26 }
  0xe9   :  { %1460 = vmatpush.bf16.msra.mxu0 %v6011_v45  ;;  %1473 = vmatpush.bf16.msra.mxu1 %v6014_v53  ;;  %v5609_v45 = vld [vmem:[#allocation4 + $0x8bc] sm:$0xf0]  ;;  %v5559_v53 = vld [vmem:[#allocation4 + $0x40c] sm:$0xf0] }
  0xea   :  { %v984_v22 = vpop.f32.mrf.mxu3 }
  0xec   :  { %1435 = vmatpush.bf16.msra.mxu2 %v6006_v40  ;;  %1448 = vmatpush.bf16.msra.mxu3 %v6009_v44 }
  0xed   :  { %1461 = vmatpush.bf16.msra.mxu0 %v6023_v11  ;;  %1474 = vmatpush.bf16.msra.mxu1 %v6025_v13  ;;  %v5595_v11 = vld [vmem:[#allocation4 + $0x76c] sm:$0xf0] }
  0xee   :  { %v5611_v13 = vld [vmem:[#allocation4 + $0x8ec] sm:$0xf0] }
  0xf0   :  { %1436 = vmatpush.bf16.msra.mxu2 %v6017_v61  ;;  %1449 = vmatpush.bf16.msra.mxu3 %v6019_v2 }
  0xf1   :  { %v997_v60 = vpop.f32.mrf.mxu0  ;;  %1462 = vmatpush.bf16.msra.mxu0 %v6037_v36  ;;  %1475 = vmatpush.bf16.msra.mxu1 %v6034_v35  ;;  %v4410_v36 = vld [vmem:[#allocation4 + $0x98] sm:$0xf] }
  0xf2   :  { %v986_v58 = vpop.f32.mrf.mxu3  ;;  %v1010_v33 = vpop.f32.mrf.mxu1  ;;  %1382 = vmatmul.bf16.vlgmr.msrb.gmra.mxu2 %v1081_v3  ;;  %1395 = vmatmul.bf16.vlgmr.msrb.gmra.mxu3 %v1081_v3  ;;  %v985_v3 = vadd.f32 %v984_v22, %v264_v25  ;;  %v4474_v35 = vld [vmem:[#allocation4 + $0x218] sm:$0xf] }
  0xf3   :  { %v4434_v58 = vld [vmem:[#allocation4 + $0x128] sm:$0xf] }
  0xf4   :  { %1437 = vmatpush.bf16.msra.mxu2 %v6028_v17  ;;  %1450 = vmatpush.bf16.msra.mxu3 %v6031_v27 }
  0xf5   :  { %1463 = vmatpush.bf16.msra.mxu0 %v6047_v56  ;;  %1476 = vmatpush.bf16.msra.mxu1 %v6050_v7  ;;  %v998_v56 = vadd.f32 %v997_v60, %v985_v3  ;;  %v4427_v60 = vor.u32 %v5527_v42, %v4426_v47  ;;  %v4491_v3 = vor.u32 %v5543_v14, %v4490_v48  ;;  %v4418_v7 = vld [vmem:[#allocation4 + $0xc8] sm:$0xf] }
  0xf6   :  { %v4402_v42 = vld [vmem:[#allocation4 + $0x68] sm:$0xf] }
  0xf8   :  { %1438 = vmatpush.bf16.msra.mxu2 %v6043_v43  ;;  %1451 = vmatpush.bf16.msra.mxu3 %v6045_v55 }
  0xf9   :  { %v999_v4 = vpop.f32.mrf.mxu0  ;;  %v1023_v9 = vpop.f32.mrf.mxu2  ;;  %1464 = vmatpush.bf16.msra.mxu0 %v6059_v38  ;;  %1477 = vmatpush.bf16.msra.mxu1 %v6062_v46  ;;  %v5545_v38 = vld [vmem:[#allocation4 + $0x2bc] sm:$0xf0] }
  0xfa   :  { %v1012_v29 = vpop.f32.mrf.mxu1  ;;  %v5529_v4 = vld [vmem:[#allocation4 + $0x13c] sm:$0xf0] }
  0xfb   :  { %v4498_v29 = vld [vmem:[#allocation4 + $0x2a8] sm:$0xf]  ;;  %v4435_v25 = vor.u32 %v5529_v4, %v4434_v58 }
  0xfc   :  { %1439 = vmatpush.bf16.msra.mxu2 %v6055_v21  ;;  %1452 = vmatpush.bf16.msra.mxu3 %v6057_v30  ;;  %v4499_v46 = vor.u32 %v5545_v38, %v4498_v29 }
  0xfd   :  { %1465 = vmatpush.bf16.msra.mxu0 %v6071_v41  ;;  %1478 = vmatpush.bf16.msra.mxu1 %v6076_v51  ;;  %v1011_v41 = vadd.f32 %v1010_v33, %v998_v56 }
  0xff   :  { %v1024_v58 = vadd.f32 %v1023_v9, %v1011_v41  ;;  %v5521_v41 = vld [vmem:[#allocation4 + $0x7c] sm:$0xf0]  ;;  %v4466_v9 = vld [vmem:[#allocation4 + $0x1e8] sm:$0xf] }
 0x100   :  { %1440 = vmatpush.bf16.msra.mxu2 %v6067_v15  ;;  %1453 = vmatpush.bf16.msra.mxu3 %v6069_v28 }
 0x101   :  { %v1025_v22 = vpop.f32.mrf.mxu2  ;;  %1466 = vmatpush.bf16.msra.mxu0 %v6082_v16  ;;  %1479 = vmatpush.bf16.msra.mxu1 %v6085_v34  ;;  %v5523_v16 = vld [vmem:[#allocation4 + $0xac] sm:$0xf0] }
 0x102   :  { %v5541_v22 = vld [vmem:[#allocation4 + $0x25c] sm:$0xf0]  ;;  %v5539_v34 = vld [vmem:[#allocation4 + $0x22c] sm:$0xf0] }
 0x103   :  { %v4475_v47 = vor.u32 %v5539_v34, %v4474_v35  ;;  %v5579_v34 = vld [vmem:[#allocation4 + $0x5ec] sm:$0xf0] }
 0x104   :  { %2217 = vmatpush.bf16.msrb.mxu2 %v4443_v49  ;;  %2230 = vmatpush.bf16.msrb.mxu3 %v4507_v23  ;;  %v5525_v49 = vld [vmem:[#allocation4 + $0xdc] sm:$0xf0]  ;;  %v4482_v23 = vld [vmem:[#allocation4 + $0x248] sm:$0xf] }
 0x105   :  { %v4419_v4 = vor.u32 %v5525_v49, %v4418_v7  ;;  %v4483_v29 = vor.u32 %v5541_v22, %v4482_v23  ;;  %v4403_v49 = vor.u32 %v5521_v41, %v4402_v42  ;;  %v4394_v22 = vld [vmem:[#allocation4 + $0x38] sm:$0xf] }
 0x108   :  { %2218 = vmatpush.bf16.msrb.mxu2 %v4435_v25  ;;  %2231 = vmatpush.bf16.msrb.mxu3 %v4499_v46  ;;  %v4411_v25 = vor.u32 %v5523_v16, %v4410_v36  ;;  %v5563_v36 = vld [vmem:[#allocation4 + $0x46c] sm:$0xf0]  ;;  %v4634_v16 = vld [vmem:[#allocation4 + $0x5d8] sm:$0xf] }
 0x109   :  { %v1075_v38 = vpop.f32.mrf.mxu2 }
 0x10a   :  { %v1036_v51 = vpop.f32.mrf.mxu3 }
 0x10b   :  { %v1037_v56 = vadd.f32 %v1036_v51, %v1024_v58  ;;  %v5519_v58 = vld [vmem:[#allocation4 + $0x4c] sm:$0xf0] }
 0x10c   :  { %2219 = vmatpush.bf16.msrb.mxu2 %v4427_v60  ;;  %2232 = vmatpush.bf16.msrb.mxu3 %v4491_v3  ;;  %v5537_v60 = vld [vmem:[#allocation4 + $0x1fc] sm:$0xf0] }
 0x10d   :  { %v4467_v23 = vor.u32 %v5537_v60, %v4466_v9  ;;  %v4562_v9 = vld [vmem:[#allocation4 + $0x428] sm:$0xf]  ;;  %v4698_v60 = vld [vmem:[#allocation4 + $0x758] sm:$0xf] }
 0x110   :  { %2220 = vmatpush.bf16.msrb.mxu2 %v4419_v4  ;;  %2233 = vmatpush.bf16.msrb.mxu3 %v4483_v29  ;;  %v4458_v4 = vld [vmem:[#allocation4 + $0x1b8] sm:$0xf]  ;;  %v5535_v29 = vld [vmem:[#allocation4 + $0x1cc] sm:$0xf0] }
 0x111   :  { %v1049_v46 = vpop.f32.mrf.mxu0  ;;  %v1077_v7 = vpop.f32.mrf.mxu2 }
 0x112   :  { %v1038_v33 = vpop.f32.mrf.mxu3  ;;  %v1050_v48 = vadd.f32 %v1049_v46, %v1037_v56  ;;  %v1062_v14 = vpop.f32.mrf.mxu1  ;;  %v4395_v46 = vor.u32 %v5519_v58, %v4394_v22  ;;  %v4635_v7 = vor.u32 %v5579_v34, %v4634_v16  ;;  %v5577_v22 = vld [vmem:[#allocation4 + $0x5bc] sm:$0xf0] }
 0x113   :  { %v4570_v33 = vld [vmem:[#allocation4 + $0x458] sm:$0xf] }
 0x114   :  { %v1063_v3 = vadd.f32 %v1062_v14, %v1050_v48  ;;  %2221 = vmatpush.bf16.msrb.mxu2 %v4411_v25  ;;  %2234 = vmatpush.bf16.msrb.mxu3 %v4475_v47  ;;  %v4459_v48 = vor.u32 %v5535_v29, %v4458_v4  ;;  %v4386_v25 = vld [vmem:[#allocation4 + $0x8] sm:$0xf]  ;;  %v5517_v47 = vld [vmem:[#allocation4 + $0x1c] sm:$0xf0]  ;;  %v4699_v29 = vor.u32 %v5595_v11, %v4698_v60  ;;  %v4746_v60 = vld [vmem:[#allocation4 + $0x878] sm:$0xf] }
 0x115   :  { %v4450_v14 = vld [vmem:[#allocation4 + $0x188] sm:$0xf]  ;;  %v4387_v58 = vor.u32 %v5517_v47, %v4386_v25 }
 0x116   :  { %v1076_v51 = vadd.f32 %v1075_v38, %v1063_v3  ;;  %v5533_v38 = vld [vmem:[#allocation4 + $0x19c] sm:$0xf0]  ;;  %v4571_v3 = vor.u32 %v5563_v36, %v4570_v33  ;;  %v4554_v36 = vld [vmem:[#allocation4 + $0x3f8] sm:$0xf]  ;;  %v4546_v11 = vld [vmem:[#allocation4 + $0x3c8] sm:$0xf] }
 0x117   :  { %v4451_v4 = vor.u32 %v5533_v38, %v4450_v14  ;;  %v4555_v14 = vor.u32 %v5559_v53, %v4554_v36  ;;  %v5605_v53 = vld [vmem:[#allocation4 + $0x85c] sm:$0xf0]  ;;  %v5555_v36 = vld [vmem:[#allocation4 + $0x3ac] sm:$0xf0] }
 0x118   :  { %v1080_v35 = vmax.f32 %v1076_v51, 0.0  ;;  %2222 = vmatpush.bf16.msrb.mxu2 %v4403_v49  ;;  %2235 = vmatpush.bf16.msrb.mxu3 %v4467_v23  ;;  %v4762_v51 = vld [vmem:[#allocation4 + $0x8d8] sm:$0xf]  ;;  %v5561_v49 = vld [vmem:[#allocation4 + $0x43c] sm:$0xf0] }
 0x119   :  { %v1051_v56 = vpop.f32.mrf.mxu0  ;;  %v4626_v23 = vld [vmem:[#allocation4 + $0x5a8] sm:$0xf]  ;;  %v4763_v33 = vor.u32 %v5611_v13, %v4762_v51  ;;  %v4563_v16 = vor.u32 %v5561_v49, %v4562_v9  ;;  %v4682_v13 = vld [vmem:[#allocation4 + $0x6f8] sm:$0xf]  ;;  %v5591_v9 = vld [vmem:[#allocation4 + $0x70c] sm:$0xf0] }
 0x11a   :  { %v6137_v42 = vpack.c.bf16 %v1080_v35, %v1080_v35  ;;  %v1064_v41 = vpop.f32.mrf.mxu1  ;;  %v4690_v35 = vld [vmem:[#allocation4 + $0x728] sm:$0xf]  ;;  %v4627_v34 = vor.u32 %v5577_v22, %v4626_v23  ;;  %v5593_v56 = vld [vmem:[#allocation4 + $0x73c] sm:$0xf0]  ;;  %v4683_v23 = vor.u32 %v5591_v9, %v4682_v13  ;;  %v5587_v13 = vld [vmem:[#allocation4 + $0x6ac] sm:$0xf0] }
 0x11b   :  { %v4754_v41 = vld [vmem:[#allocation4 + $0x8a8] sm:$0xf]  ;;  %v4691_v25 = vor.u32 %v5593_v56, %v4690_v35  ;;  %v5573_v49 = vld [vmem:[#allocation4 + $0x55c] sm:$0xf0] }
 0x11c   :  { %1415 = vmatmul.bf16.vlgmr.msrb.gmra.mxu0 %v6137_v42  ;;  %1428 = vmatmul.bf16.vlgmr.msrb.gmra.mxu1 %v6137_v42  ;;  %v4755_v47 = vor.u32 %v5609_v45, %v4754_v41  ;;  %v4610_v51 = vld [vmem:[#allocation4 + $0x548] sm:$0xf] }
 0x11d   :  { %2223 = vmatpush.bf16.msrb.mxu2 %v4395_v46  ;;  %2236 = vmatpush.bf16.msrb.mxu3 %v4459_v48  ;;  %v4618_v46 = vld [vmem:[#allocation4 + $0x578] sm:$0xf]  ;;  %v5575_v48 = vld [vmem:[#allocation4 + $0x58c] sm:$0xf0]  ;;  %v4738_v35 = vld [vmem:[#allocation4 + $0x848] sm:$0xf] }
 0x11e   :  { %1441 = vmatmul.bf16.vlgmr.msra.gmra.mxu2 %v6137_v42  ;;  %1454 = vmatmul.bf16.vlgmr.msra.gmra.mxu3 %v6137_v42  ;;  %v4619_v38 = vor.u32 %v5575_v48, %v4618_v46  ;;  %v4739_v41 = vor.u32 %v5605_v53, %v4738_v35  ;;  %v4530_v46 = vld [vmem:[#allocation4 + $0x368] sm:$0xf]  ;;  %v4666_v48 = vld [vmem:[#allocation4 + $0x698] sm:$0xf] }
 0x11f   :  { %2243 = vmatpush.bf16.msrb.mxu0 %v4571_v3  ;;  %2256 = vmatpush.bf16.msrb.mxu1 %v4635_v7  ;;  %v5607_v3 = vld [vmem:[#allocation4 + $0x88c] sm:$0xf0]  ;;  %v5557_v7 = vld [vmem:[#allocation4 + $0x3dc] sm:$0xf0]  ;;  %v4594_v9 = vld [vmem:[#allocation4 + $0x4e8] sm:$0xf] }
 0x120   :  { %v4747_v22 = vor.u32 %v5607_v3, %v4746_v60  ;;  %v4547_v45 = vor.u32 %v5557_v7, %v4546_v11  ;;  %v5603_v11 = vld [vmem:[#allocation4 + $0x82c] sm:$0xf0]  ;;  %v5569_v60 = vld [vmem:[#allocation4 + $0x4fc] sm:$0xf0]  ;;  %v4667_v3 = vor.u32 %v5587_v13, %v4666_v48  ;;  %v4714_v48 = vld [vmem:[#allocation4 + $0x7b8] sm:$0xf] }
 0x121   :  { %2224 = vmatpush.bf16.msrb.mxu2 %v4387_v58  ;;  %2237 = vmatpush.bf16.msrb.mxu3 %v4451_v4  ;;  %v4538_v58 = vld [vmem:[#allocation4 + $0x398] sm:$0xf]  ;;  %v4674_v4 = vld [vmem:[#allocation4 + $0x6c8] sm:$0xf]  ;;  %v5565_v13 = vld [vmem:[#allocation4 + $0x49c] sm:$0xf0] }
 0x123   :  { %2244 = vmatpush.bf16.msrb.mxu0 %v4563_v16  ;;  %2257 = vmatpush.bf16.msrb.mxu1 %v4627_v34  ;;  %v4602_v16 = vld [vmem:[#allocation4 + $0x518] sm:$0xf]  ;;  %v5571_v34 = vld [vmem:[#allocation4 + $0x52c] sm:$0xf0] }
 0x125   :  { %2269 = vmatpush.bf16.msra.mxu2 %v4699_v29  ;;  %2282 = vmatpush.bf16.msra.mxu3 %v4763_v33  ;;  %v4611_v29 = vor.u32 %v5573_v49, %v4610_v51  ;;  %v5589_v33 = vld [vmem:[#allocation4 + $0x6dc] sm:$0xf0]  ;;  %v4522_v51 = vld [vmem:[#allocation4 + $0x338] sm:$0xf]  ;;  %v4658_v49 = vld [vmem:[#allocation4 + $0x668] sm:$0xf] }
 0x126   :  { %v4675_v56 = vor.u32 %v5589_v33, %v4674_v4  ;;  %v4722_v4 = vld [vmem:[#allocation4 + $0x7e8] sm:$0xf]  ;;  %v5567_v33 = vld [vmem:[#allocation4 + $0x4cc] sm:$0xf0] }
 0x127   :  { %2245 = vmatpush.bf16.msrb.mxu0 %v4555_v14  ;;  %2258 = vmatpush.bf16.msrb.mxu1 %v4619_v38  ;;  %v4730_v14 = vld [vmem:[#allocation4 + $0x818] sm:$0xf]  ;;  %v5553_v38 = vld [vmem:[#allocation4 + $0x37c] sm:$0xf0] }
 0x128   :  { %v4731_v7 = vor.u32 %v5603_v11, %v4730_v14  ;;  %v4826_v14 = vld [vmem:[#allocation4 + $0xa58] sm:$0xf]  ;;  %v5627_v11 = vld [vmem:[#allocation4 + $0xa6c] sm:$0xf0] }
 0x129   :  { %2270 = vmatpush.bf16.msra.mxu2 %v4691_v25  ;;  %2283 = vmatpush.bf16.msra.mxu3 %v4755_v47  ;;  %v4539_v25 = vor.u32 %v5555_v36, %v4538_v58  ;;  %v4603_v47 = vor.u32 %v5571_v34, %v4602_v16  ;;  %v5585_v58 = vld [vmem:[#allocation4 + $0x67c] sm:$0xf0]  ;;  %v4514_v36 = vld [vmem:[#allocation4 + $0x308] sm:$0xf]  ;;  %v4650_v34 = vld [vmem:[#allocation4 + $0x638] sm:$0xf] }
 0x12a   :  { %v4659_v35 = vor.u32 %v5585_v58, %v4658_v49  ;;  %v5549_v16 = vld [vmem:[#allocation4 + $0x31c] sm:$0xf0]  ;;  %v4706_v58 = vld [vmem:[#allocation4 + $0x788] sm:$0xf] }
 0x12b   :  { %2246 = vmatpush.bf16.msrb.mxu0 %v4547_v45  ;;  %2259 = vmatpush.bf16.msrb.mxu1 %v4611_v29  ;;  %v5601_v45 = vld [vmem:[#allocation4 + $0x7fc] sm:$0xf0]  ;;  %v4586_v29 = vld [vmem:[#allocation4 + $0x4b8] sm:$0xf] }
 0x12c   :  { %1467 = vmatmul.bf16.vlgmr.msra.gmra.mxu0 %v6137_v42  ;;  %1480 = vmatmul.bf16.vlgmr.msra.gmra.mxu1 %v6137_v42  ;;  %v5551_v42 = vld [vmem:[#allocation4 + $0x34c] sm:$0xf0]  ;;  %v4723_v53 = vor.u32 %v5601_v45, %v4722_v4  ;;  %v5581_v49 = vld [vmem:[#allocation4 + $0x61c] sm:$0xf0]  ;;  %v4818_v4 = vld [vmem:[#allocation4 + $0xa28] sm:$0xf] }
 0x12d   :  { %2271 = vmatpush.bf16.msra.mxu2 %v4683_v23  ;;  %2284 = vmatpush.bf16.msra.mxu3 %v4747_v22  ;;  %v4531_v23 = vor.u32 %v5553_v38, %v4530_v46  ;;  %v4595_v22 = vor.u32 %v5569_v60, %v4594_v9  ;;  %v5583_v46 = vld [vmem:[#allocation4 + $0x64c] sm:$0xf0]  ;;  %v4858_v38 = vld [vmem:[#allocation4 + $0xb18] sm:$0xf]  ;;  %v5546_v45 = vld [vmem:[#allocation4 + $0x2dc] sm:$0xf] }
 0x12e   :  { %2225 = vmatmul.bf16.vlgmr.msrb.gmra.mxu2 %v5911_v0  ;;  %2238 = vmatmul.bf16.vlgmr.msrb.gmra.mxu3 %v5913_v1  ;;  %v5635_v9 = vld [vmem:[#allocation4 + $0xb2c] sm:$0xf0]  ;;  %v4651_v60 = vor.u32 %v5583_v46, %v4650_v34 }
 0x12f   :  { %2247 = vmatpush.bf16.msrb.mxu0 %v4539_v25  ;;  %2260 = vmatpush.bf16.msrb.mxu1 %v4603_v47  ;;  %v5599_v25 = vld [vmem:[#allocation4 + $0x7cc] sm:$0xf0]  ;;  %v4578_v47 = vld [vmem:[#allocation4 + $0x488] sm:$0xf] }
 0x131   :  { %2272 = vmatpush.bf16.msra.mxu2 %v4675_v56  ;;  %2285 = vmatpush.bf16.msra.mxu3 %v4739_v41  ;;  %v4523_v56 = vor.u32 %v5551_v42, %v4522_v51  ;;  %v4587_v41 = vor.u32 %v5567_v33, %v4586_v29  ;;  %v4515_v51 = vor.u32 %v5549_v16, %v4514_v36  ;;  %v4508_v33 = vld [vmem:[#allocation4 + $0x2f0] sm:$0xf0]  ;;  %v4810_v16 = vld [vmem:[#allocation4 + $0x9f8] sm:$0xf] }
 0x132   :  { %v4827_v42 = vor.u32 %v5627_v11, %v4826_v14  ;;  %v4859_v29 = vor.u32 %v5635_v9, %v4858_v38  ;;  %v4575_v36 = vor.u32 %v5562_v31, %v4572_v18  ;;  %v4564_v14 = vld [vmem:[#allocation4 + $0x440] sm:$0xf0]  ;;  %v5623_v11 = vld [vmem:[#allocation4 + $0xa0c] sm:$0xf0]  ;;  %v4842_v38 = vld [vmem:[#allocation4 + $0xab8] sm:$0xf] }
 0x133   :  { %2248 = vmatpush.bf16.msrb.mxu0 %v4531_v23  ;;  %2261 = vmatpush.bf16.msrb.mxu1 %v4595_v22  ;;  %v4579_v23 = vor.u32 %v5565_v13, %v4578_v47  ;;  %v5597_v22 = vld [vmem:[#allocation4 + $0x79c] sm:$0xf0]  ;;  %v4500_v47 = vld [vmem:[#allocation4 + $0x2c0] sm:$0xf0]  ;;  %v5560_v13 = vld [vmem:[#allocation4 + $0x42c] sm:$0xf]  ;;  %v4811_v31 = vor.u32 %v5623_v11, %v4810_v16 }
 0x134   :  { %v4707_v46 = vor.u32 %v5597_v22, %v4706_v58  ;;  %v5631_v9 = vld [vmem:[#allocation4 + $0xacc] sm:$0xf0]  ;;  %v5542_v18 = vld [vmem:[#allocation4 + $0x27c] sm:$0xf]  ;;  %v5621_v22 = vld [vmem:[#allocation4 + $0x9dc] sm:$0xf0] }
 0x135   :  { %2273 = vmatpush.bf16.msra.mxu2 %v4667_v3  ;;  %2286 = vmatpush.bf16.msra.mxu3 %v4731_v7  ;;  %v4715_v3 = vor.u32 %v5599_v25, %v4714_v48  ;;  %v4642_v7 = vld [vmem:[#allocation4 + $0x608] sm:$0xf]  ;;  %v4819_v48 = vor.u32 %v5625_v32, %v4818_v4  ;;  %v4492_v32 = vld [vmem:[#allocation4 + $0x290] sm:$0xf0]  ;;  %v5558_v58 = vld [vmem:[#allocation4 + $0x3fc] sm:$0xf] }
 0x136   :  { %v4643_v34 = vor.u32 %v5581_v49, %v4642_v7  ;;  %v4802_v7 = vld [vmem:[#allocation4 + $0x9c8] sm:$0xf]  ;;  %v4843_v49 = vor.u32 %v5631_v9, %v4842_v38  ;;  %v4484_v16 = vld [vmem:[#allocation4 + $0x260] sm:$0xf0] }
 0x137   :  { %2249 = vmatpush.bf16.msrb.mxu0 %v4523_v56  ;;  %2262 = vmatpush.bf16.msrb.mxu1 %v4587_v41  ;;  %v4511_v56 = vor.u32 %v5546_v45, %v4508_v33  ;;  %v5544_v41 = vld [vmem:[#allocation4 + $0x2ac] sm:$0xf]  ;;  %v4834_v4 = vld [vmem:[#allocation4 + $0xa88] sm:$0xf]  ;;  %v5629_v45 = vld [vmem:[#allocation4 + $0xa9c] sm:$0xf0] }
 0x138   :  { %v5530_v33 = vld [vmem:[#allocation4 + $0x15c] sm:$0xf]  ;;  %v4436_v11 = vld [vmem:[#allocation4 + $0x140] sm:$0xf0] }
 0x139   :  { %2274 = vmatpush.bf16.msra.mxu2 %v4659_v35  ;;  %2287 = vmatpush.bf16.msra.mxu3 %v4723_v53  ;;  %v4850_v35 = vld [vmem:[#allocation4 + $0xae8] sm:$0xf]  ;;  %v5633_v53 = vld [vmem:[#allocation4 + $0xafc] sm:$0xf0] }
 0x13a   :  { %v4851_v25 = vor.u32 %v5633_v53, %v4850_v35  ;;  %v4444_v35 = vld [vmem:[#allocation4 + $0x170] sm:$0xf0]  ;;  %v4495_v53 = vor.u32 %v5542_v18, %v4492_v32  ;;  %v4786_v32 = vld [vmem:[#allocation4 + $0x968] sm:$0xf] }
 0x13b   :  { %2250 = vmatpush.bf16.msrb.mxu0 %v4515_v51  ;;  %2263 = vmatpush.bf16.msrb.mxu1 %v4579_v23  ;;  %v4556_v51 = vld [vmem:[#allocation4 + $0x410] sm:$0xf0] }
 0x13c   :  { %v6619_v23 = vld [vmem:[#allocation14_spill] sm:$0xff] }
 0x13d   :  { %2275 = vmatpush.bf16.msra.mxu2 %v4651_v60  ;;  %2288 = vmatpush.bf16.msra.mxu3 %v4715_v3  ;;  %v4503_v60 = vor.u32 %v5544_v41, %v4500_v47  ;;  %v4567_v3 = vor.u32 %v5560_v13, %v4564_v14  ;;  %v5556_v41 = vld [vmem:[#allocation4 + $0x3cc] sm:$0xf]  ;;  %v4794_v47 = vld [vmem:[#allocation4 + $0x998] sm:$0xf]  ;;  %v5619_v13 = vld [vmem:[#allocation4 + $0x9ac] sm:$0xf0] }
 0x13e   :  { %2264 = vmatmul.bf16.vlgmr.msrb.gmra.mxu1 %v5909_v57  ;;  %v5528_v14 = vld [vmem:[#allocation4 + $0x12c] sm:$0xf]  ;;  %v4476_v18 = vld [vmem:[#allocation4 + $0x230] sm:$0xf0] }
 0x13f   :  { %2295 = vmatpush.bf16.msra.mxu0 %v4827_v42  ;;  %2312 = vmatpush.bf16.msra.mxu1 %v4859_v29  ;;  %v6620_v42 = vld [vmem:[#allocation12_spill] sm:$0xff] }
 0x140   :  { %2251 = vmatmul.bf16.vlgmr.msrb.gmra.mxu0 %v6620_v42  ;;  %v6621_v29 = vld [vmem:[#allocation16_spill] sm:$0xff] }
 0x141   :  { %2276 = vmatpush.bf16.msra.mxu2 %v4643_v34  ;;  %2289 = vmatpush.bf16.msra.mxu3 %v4707_v46  ;;  %v4559_v34 = vor.u32 %v5558_v58, %v4556_v51  ;;  %v5540_v46 = vld [vmem:[#allocation4 + $0x24c] sm:$0xf]  ;;  %v5617_v58 = vld [vmem:[#allocation4 + $0x97c] sm:$0xf0]  ;;  %v5526_v51 = vld [vmem:[#allocation4 + $0xfc] sm:$0xf] }
 0x142   :  { %v4487_v38 = vor.u32 %v5540_v46, %v4484_v16  ;;  %v4532_v46 = vld [vmem:[#allocation4 + $0x380] sm:$0xf0]  ;;  %v5615_v16 = vld [vmem:[#allocation4 + $0x94c] sm:$0xf0] }
 0x143   :  { %2296 = vmatpush.bf16.msra.mxu0 %v4819_v48  ;;  %2313 = vmatpush.bf16.msra.mxu1 %v4851_v25  ;;  %v4548_v48 = vld [vmem:[#allocation4 + $0x3e0] sm:$0xf0]  ;;  %v4447_v25 = vor.u32 %v5530_v33, %v4444_v35  ;;  %v5536_v33 = vld [vmem:[#allocation4 + $0x1ec] sm:$0xf]  ;;  %v4787_v35 = vor.u32 %v5617_v58, %v4786_v32  ;;  %v4636_v32 = vld [vmem:[#allocation4 + $0x5f0] sm:$0xf0] }
 0x144   :  { %2277 = vmatmul.bf16.vlgmr.msra.gmra.mxu2 %v6619_v23  ;;  %2290 = vmatmul.bf16.vlgmr.msra.gmra.mxu3 %v6621_v29  ;;  %v4551_v9 = vor.u32 %v5556_v41, %v4548_v48  ;;  %v5524_v41 = vld [vmem:[#allocation4 + $0xcc] sm:$0xf]  ;;  %v4420_v48 = vld [vmem:[#allocation4 + $0xe0] sm:$0xf0] }
 0x145   :  { %2334 = vmatpush.bf16.msrb.mxu2 %v4511_v56  ;;  %2347 = vmatpush.bf16.msrb.mxu3 %v4575_v36  ;;  %v4803_v56 = vor.u32 %v5621_v22, %v4802_v7  ;;  %v4835_v36 = vor.u32 %v5629_v45, %v4834_v4  ;;  %v4540_v7 = vld [vmem:[#allocation4 + $0x3b0] sm:$0xf0] }
 0x146   :  { %v4428_v22 = vld [vmem:[#allocation4 + $0x110] sm:$0xf0] }
 0x147   :  { %2297 = vmatpush.bf16.msra.mxu0 %v4811_v31  ;;  %2314 = vmatpush.bf16.msra.mxu1 %v4843_v49  ;;  %v5554_v31 = vld [vmem:[#allocation4 + $0x39c] sm:$0xf]  ;;  %v4439_v49 = vor.u32 %v5528_v14, %v4436_v11  ;;  %v4460_v11 = vld [vmem:[#allocation4 + $0x1d0] sm:$0xf0] }
 0x148   :  { %v4543_v45 = vor.u32 %v5554_v31, %v4540_v7  ;;  %v5522_v31 = vld [vmem:[#allocation4 + $0x9c] sm:$0xf]  ;;  %v4412_v7 = vld [vmem:[#allocation4 + $0xb0] sm:$0xf0] }
 0x149   :  { %2335 = vmatpush.bf16.msrb.mxu2 %v4503_v60  ;;  %2348 = vmatpush.bf16.msrb.mxu3 %v4567_v3  ;;  %v5538_v60 = vld [vmem:[#allocation4 + $0x21c] sm:$0xf]  ;;  %v4795_v3 = vor.u32 %v5619_v13, %v4794_v47  ;;  %v6622_v58 = vld [vmem:[#allocation13_spill] sm:$0xff] }
 0x14a   :  { %v4479_v4 = vor.u32 %v5538_v60, %v4476_v18  ;;  %v5534_v13 = vld [vmem:[#allocation4 + $0x1bc] sm:$0xf]  ;;  %v4423_v60 = vor.u32 %v5524_v41, %v4420_v48  ;;  %v5613_v18 = vld [vmem:[#allocation4 + $0x91c] sm:$0xf0]  ;;  %v4404_v41 = vld [vmem:[#allocation4 + $0x80] sm:$0xf0] }
 0x14b   :  { %2298 = vmatpush.bf16.msra.mxu0 %v4803_v56  ;;  %2315 = vmatpush.bf16.msra.mxu1 %v4835_v36  ;;  %v4431_v56 = vor.u32 %v5526_v51, %v4428_v22  ;;  %v4778_v36 = vld [vmem:[#allocation4 + $0x938] sm:$0xf]  ;;  %v4463_v51 = vor.u32 %v5534_v13, %v4460_v11  ;;  %v5576_v48 = vld [vmem:[#allocation4 + $0x5ac] sm:$0xf]  ;;  %v4828_v13 = vld [vmem:[#allocation4 + $0xa70] sm:$0xf0] }
 0x14c   :  { %v4779_v14 = vor.u32 %v5615_v16, %v4778_v36  ;;  %v5610_v36 = vld [vmem:[#allocation4 + $0x8dc] sm:$0xf]  ;;  %v4764_v16 = vld [vmem:[#allocation4 + $0x8f0] sm:$0xf0] }
 0x14d   :  { %2336 = vmatpush.bf16.msrb.mxu2 %v4495_v53  ;;  %2349 = vmatpush.bf16.msrb.mxu3 %v4559_v34  ;;  %v4468_v53 = vld [vmem:[#allocation4 + $0x200] sm:$0xf0]  ;;  %v5552_v34 = vld [vmem:[#allocation4 + $0x36c] sm:$0xf]  ;;  %v4767_v11 = vor.u32 %v5610_v36, %v4764_v16  ;;  %v5622_v16 = vld [vmem:[#allocation4 + $0x9fc] sm:$0xf] }
 0x14e   :  { %v4535_v47 = vor.u32 %v5552_v34, %v4532_v46  ;;  %4864 = vmatmul.msk.bf16.vlgmr.msra.gmra.mxu1 %vm867_vm0, %v6622_v58  ;;  %v4415_v34 = vor.u32 %v5522_v31, %v4412_v7  ;;  %v4396_v7 = vld [vmem:[#allocation4 + $0x50] sm:$0xf0]  ;;  %v4612_v36 = vld [vmem:[#allocation4 + $0x560] sm:$0xf0] }
 0x14f   :  { %2321 = vmatpush.bf16.msrb.mxu1 %v4447_v25  ;;  %2299 = vmatpush.bf16.msra.mxu0 %v4795_v3  ;;  %v4471_v25 = vor.u32 %v5536_v33, %v4468_v53  ;;  %v4770_v3 = vld [vmem:[#allocation4 + $0x908] sm:$0xf]  ;;  %v4452_v33 = vld [vmem:[#allocation4 + $0x1a0] sm:$0xf0] }
 0x150   :  { %v4516_v53 = vld [vmem:[#allocation4 + $0x320] sm:$0xf0] }
 0x151   :  { %2337 = vmatpush.bf16.msrb.mxu2 %v4487_v38  ;;  %2350 = vmatpush.bf16.msrb.mxu3 %v4551_v9  ;;  %v5550_v38 = vld [vmem:[#allocation4 + $0x33c] sm:$0xf]  ;;  %v4524_v9 = vld [vmem:[#allocation4 + $0x350] sm:$0xf0] }
 0x152   :  { %v4527_v22 = vor.u32 %v5550_v38, %v4524_v9  ;;  %v4631_v9 = vor.u32 %v5576_v48, %v4628_v19  ;;  %v5594_v48 = vld [vmem:[#allocation4 + $0x75c] sm:$0xf] }
 0x153   :  { %2322 = vmatpush.bf16.msrb.mxu1 %v4439_v49  ;;  %2300 = vmatpush.bf16.msra.mxu0 %v4787_v35  ;;  %v5578_v49 = vld [vmem:[#allocation4 + $0x5dc] sm:$0xf]  ;;  %v5548_v35 = vld [vmem:[#allocation4 + $0x30c] sm:$0xf] }
 0x154   :  { %v4639_v46 = vor.u32 %v5578_v49, %v4636_v32  ;;  %v5574_v49 = vld [vmem:[#allocation4 + $0x57c] sm:$0xf]  ;;  %v4620_v32 = vld [vmem:[#allocation4 + $0x590] sm:$0xf0] }
 0x155   :  { %2338 = vmatpush.bf16.msrb.mxu2 %v4479_v4  ;;  %2351 = vmatpush.bf16.msrb.mxu3 %v4543_v45  ;;  %v5532_v4 = vld [vmem:[#allocation4 + $0x18c] sm:$0xf]  ;;  %v4771_v45 = vor.u32 %v5613_v18, %v4770_v3  ;;  %v4756_v18 = vld [vmem:[#allocation4 + $0x8c0] sm:$0xf0]  ;;  %v4623_v19 = vor.u32 %v5574_v49, %v4620_v32 }
 0x156   :  { %v5608_v3 = vld [vmem:[#allocation4 + $0x8ac] sm:$0xf]  ;;  %v4692_v32 = vld [vmem:[#allocation4 + $0x740] sm:$0xf0] }
 0x157   :  { %2323 = vmatpush.bf16.msrb.mxu1 %v4431_v56  ;;  %2301 = vmatpush.bf16.msra.mxu0 %v4779_v14  ;;  %v5520_v56 = vld [vmem:[#allocation4 + $0x6c] sm:$0xf]  ;;  %v4519_v14 = vor.u32 %v5548_v35, %v4516_v53  ;;  %v4388_v35 = vld [vmem:[#allocation4 + $0x20] sm:$0xf0]  ;;  %v5606_v53 = vld [vmem:[#allocation4 + $0x87c] sm:$0xf] }
 0x158   :  { %v4407_v38 = vor.u32 %v5520_v56, %v4404_v41  ;;  %v5572_v56 = vld [vmem:[#allocation4 + $0x54c] sm:$0xf]  ;;  %v4812_v41 = vld [vmem:[#allocation4 + $0xa10] sm:$0xf0] }
 0x159   :  { %2339 = vmatpush.bf16.msrb.mxu2 %v4471_v25  ;;  %2352 = vmatpush.bf16.msrb.mxu3 %v4535_v47  ;;  %v4455_v25 = vor.u32 %v5532_v4, %v4452_v33  ;;  %v5626_v47 = vld [vmem:[#allocation4 + $0xa5c] sm:$0xf]  ;;  %v4759_v4 = vor.u32 %v5608_v3, %v4756_v18  ;;  %v4604_v18 = vld [vmem:[#allocation4 + $0x530] sm:$0xf0]  ;;  %v5592_v49 = vld [vmem:[#allocation4 + $0x72c] sm:$0xf] }
 0x15a   :  { %v4831_v31 = vor.u32 %v5626_v47, %v4828_v13  ;;  %v5570_v3 = vld [vmem:[#allocation4 + $0x51c] sm:$0xf] }
 0x15b   :  { %2324 = vmatpush.bf16.msrb.mxu1 %v4423_v60  ;;  %2302 = vmatpush.bf16.msra.mxu0 %v4771_v45  ;;  %v5518_v60 = vld [vmem:[#allocation4 + $0x3c] sm:$0xf]  ;;  %v5516_v45 = vld [vmem:[#allocation4 + $0xc] sm:$0xf] }
 0x15c   :  { %v4399_v33 = vor.u32 %v5518_v60, %v4396_v7  ;;  %v4391_v13 = vor.u32 %v5516_v45, %v4388_v35  ;;  %v4804_v7 = vld [vmem:[#allocation4 + $0x9e0] sm:$0xf0]  ;;  %v4607_v45 = vor.u32 %v5570_v3, %v4604_v18  ;;  %v4588_v3 = vld [vmem:[#allocation4 + $0x4d0] sm:$0xf0]  ;;  %v5616_v18 = vld [vmem:[#allocation4 + $0x96c] sm:$0xf] }
 0x15d   :  { %2340 = vmatpush.bf16.msrb.mxu2 %v4463_v51  ;;  %2353 = vmatpush.bf16.msrb.mxu3 %v4527_v22  ;;  %v5624_v51 = vld [vmem:[#allocation4 + $0xa2c] sm:$0xf]  ;;  %v4820_v22 = vld [vmem:[#allocation4 + $0xa40] sm:$0xf0] }
 0x15e   :  { %2303 = vmatmul.bf16.vlgmr.msra.gmra.mxu0 %v6623_v10 }
 0x15f   :  { %2325 = vmatpush.bf16.msrb.mxu1 %v4415_v34  ;;  %2360 = vmatpush.bf16.msrb.mxu0 %v4639_v46  ;;  %v4748_v34 = vld [vmem:[#allocation4 + $0x890] sm:$0xf0]  ;;  %v4823_v46 = vor.u32 %v5624_v51, %v4820_v22 }
 0x160   :  { %v4751_v47 = vor.u32 %v5606_v53, %v4748_v34  ;;  %v1357_v51 = vpop.f32.mrf.mxu0  ;;  %v1370_v22 = vpop.f32.mrf.mxu1  ;;  %v5568_v53 = vld [vmem:[#allocation4 + $0x4ec] sm:$0xf]  ;;  %v4695_v34 = vor.u32 %v5592_v49, %v4692_v32  ;;  %v4676_v49 = vld [vmem:[#allocation4 + $0x6e0] sm:$0xf0] }
 0x161   :  { %2341 = vmatpush.bf16.msrb.mxu2 %v4455_v25  ;;  %2354 = vmatpush.bf16.msrb.mxu3 %v4519_v14  ;;  %v4700_v25 = vld [vmem:[#allocation4 + $0x770] sm:$0xf0]  ;;  %v4615_v14 = vor.u32 %v5572_v56, %v4612_v36  ;;  %1402 = vst [vmem:[%s6493_s4 + $0x10] sm:$0xff] %v1357_v51  ;;  %v5618_v56 = vld [vmem:[#allocation4 + $0x99c] sm:$0xf] }
 0x162   :  { %v4703_v60 = vor.u32 %v5594_v48, %v4700_v25  ;;  %1403 = vst [vmem:[%s6493_s4 + $0x18] sm:$0xff] %v1370_v22  ;;  %v4796_v36 = vld [vmem:[#allocation4 + $0x9b0] sm:$0xf0] }
 0x163   :  { %2326 = vmatpush.bf16.msrb.mxu1 %v4407_v38  ;;  %2361 = vmatpush.bf16.msrb.mxu0 %v4631_v9  ;;  %v4740_v38 = vld [vmem:[#allocation4 + $0x860] sm:$0xf0]  ;;  %v4815_v9 = vor.u32 %v5622_v16, %v4812_v41  ;;  %v5590_v16 = vld [vmem:[#allocation4 + $0x6fc] sm:$0xf]  ;;  %v4684_v41 = vld [vmem:[#allocation4 + $0x710] sm:$0xf0] }
 0x164   :  { %2342 = vmatmul.bf16.vlgmr.msrb.gmra.mxu2 %v5913_v1  ;;  %2355 = vmatmul.bf16.vlgmr.msrb.gmra.mxu3 %v6620_v42 }
 0x165   :  { %2386 = vmatpush.bf16.msra.mxu2 %v4767_v11  ;;  %2399 = vmatpush.bf16.msra.mxu3 %v4831_v31  ;;  %v5604_v11 = vld [vmem:[#allocation4 + $0x84c] sm:$0xf]  ;;  %v1331_v25 = vpop.f32.mrf.mxu2 }
 0x166   :  { %v5620_v31 = vld [vmem:[#allocation4 + $0x9cc] sm:$0xf]  ;;  %1400 = vst [vmem:[%s6493_s4] sm:$0xff] %v1331_v25  ;;  %v4860_v25 = vld [vmem:[#allocation4 + $0xb30] sm:$0xf0] }
 0x167   :  { %2327 = vmatpush.bf16.msrb.mxu1 %v4399_v33  ;;  %2362 = vmatpush.bf16.msrb.mxu0 %v4623_v19  ;;  %v5602_v33 = vld [vmem:[#allocation4 + $0x81c] sm:$0xf]  ;;  %v4732_v19 = vld [vmem:[#allocation4 + $0x830] sm:$0xf0]  ;;  %v4807_v35 = vor.u32 %v5620_v31, %v4804_v7  ;;  %v4788_v31 = vld [vmem:[#allocation4 + $0x980] sm:$0xf0] }
 0x168   :  { %v4735_v48 = vor.u32 %v5602_v33, %v4732_v19  ;;  %v5588_v7 = vld [vmem:[#allocation4 + $0x6cc] sm:$0xf]  ;;  %v1359_v32 = vpop.f32.mrf.mxu0  ;;  %v1372_v51 = vpop.f32.mrf.mxu1  ;;  %v4791_v33 = vor.u32 %v5616_v18, %v4788_v31  ;;  %v4772_v18 = vld [vmem:[#allocation4 + $0x920] sm:$0xf0] }
 0x169   :  { %2387 = vmatpush.bf16.msra.mxu2 %v4759_v4  ;;  %2400 = vmatpush.bf16.msra.mxu3 %v4823_v46  ;;  %v4743_v4 = vor.u32 %v5604_v11, %v4740_v38  ;;  %v4596_v46 = vld [vmem:[#allocation4 + $0x500] sm:$0xf0]  ;;  %v5600_v11 = vld [vmem:[#allocation4 + $0x7ec] sm:$0xf]  ;;  %v4679_v19 = vor.u32 %v5588_v7, %v4676_v49 }
 0x16a   :  { %v4724_v38 = vld [vmem:[#allocation4 + $0x800] sm:$0xf0]  ;;  %v5584_v7 = vld [vmem:[#allocation4 + $0x66c] sm:$0xf] }
 0x16b   :  { %2328 = vmatpush.bf16.msrb.mxu1 %v4391_v13  ;;  %2363 = vmatpush.bf16.msrb.mxu0 %v4615_v14  ;;  %v4599_v13 = vor.u32 %v5568_v53, %v4596_v46  ;;  %v5566_v14 = vld [vmem:[#allocation4 + $0x4bc] sm:$0xf]  ;;  %v4727_v22 = vor.u32 %v5600_v11, %v4724_v38  ;;  %v5596_v11 = vld [vmem:[#allocation4 + $0x78c] sm:$0xf]  ;;  %v4708_v38 = vld [vmem:[#allocation4 + $0x7a0] sm:$0xf0] }
 0x16c   :  { %v5598_v53 = vld [vmem:[#allocation4 + $0x7bc] sm:$0xf]  ;;  %v4660_v49 = vld [vmem:[#allocation4 + $0x680] sm:$0xf0]  ;;  %v4711_v32 = vor.u32 %v5596_v11, %v4708_v38  ;;  %v5632_v51 = vld [vmem:[#allocation4 + $0xaec] sm:$0xf] }
 0x16d   :  { %2388 = vmatpush.bf16.msra.mxu2 %v4751_v47  ;;  %2401 = vmatpush.bf16.msra.mxu3 %v4815_v9  ;;  %v1344_v47 = vpop.f32.mrf.mxu3  ;;  %v4799_v9 = vor.u32 %v5618_v56, %v4796_v36  ;;  %v5614_v46 = vld [vmem:[#allocation4 + $0x93c] sm:$0xf]  ;;  %v4780_v56 = vld [vmem:[#allocation4 + $0x950] sm:$0xf0] }
 0x16e   :  { %2329 = vmatmul.bf16.vlgmr.msrb.gmra.mxu1 %v5911_v0  ;;  %1401 = vst [vmem:[%s6493_s4 + $0x8] sm:$0xff] %v1344_v47  ;;  %v5586_v36 = vld [vmem:[#allocation4 + $0x69c] sm:$0xf]  ;;  %v1333_v47 = vpop.f32.mrf.mxu2 }
 0x16f   :  { %2373 = vmatpush.bf16.msra.mxu1 %v4703_v60  ;;  %2364 = vmatpush.bf16.msrb.mxu0 %v4607_v45  ;;  %v4687_v60 = vor.u32 %v5590_v16, %v4684_v41  ;;  %v4716_v45 = vld [vmem:[#allocation4 + $0x7d0] sm:$0xf0]  ;;  %v4836_v47 = vld [vmem:[#allocation4 + $0xaa0] sm:$0xf0] }
 0x170   :  { %v4668_v16 = vld [vmem:[#allocation4 + $0x6b0] sm:$0xf0]  ;;  %v4719_v41 = vor.u32 %v5598_v53, %v4716_v45  ;;  %v4663_v53 = vor.u32 %v5584_v7, %v4660_v49  ;;  %v6627_v7 = vld [vmem:[#allocation32_spill] sm:$0xff] }
 0x171   :  { %2389 = vmatpush.bf16.msra.mxu2 %v4743_v4  ;;  %2402 = vmatpush.bf16.msra.mxu3 %v4807_v35  ;;  %v4591_v4 = vor.u32 %v5566_v14, %v4588_v3  ;;  %v5564_v35 = vld [vmem:[#allocation4 + $0x48c] sm:$0xf]  ;;  %v6628_v49 = vld [vmem:[#allocation34_spill] sm:$0xff] }
 0x172   :  { %v5612_v3 = vld [vmem:[#allocation4 + $0x90c] sm:$0xf] }
 0x173   :  { %2374 = vmatpush.bf16.msra.mxu1 %v4695_v34  ;;  %2365 = vmatpush.bf16.msrb.mxu0 %v4599_v13  ;;  %v4580_v34 = vld [vmem:[#allocation4 + $0x4a0] sm:$0xf0] }
 0x174   :  { %v4583_v14 = vor.u32 %v5564_v35, %v4580_v34  ;;  %v5630_v35 = vld [vmem:[#allocation4 + $0xabc] sm:$0xf]  ;;  %v4844_v34 = vld [vmem:[#allocation4 + $0xad0] sm:$0xf0] }
 0x175   :  { %2390 = vmatpush.bf16.msra.mxu2 %v4735_v48  ;;  %2403 = vmatpush.bf16.msra.mxu3 %v4799_v9  ;;  %v5634_v48 = vld [vmem:[#allocation4 + $0xb1c] sm:$0xf]  ;;  %v1346_v13 = vpop.f32.mrf.mxu3  ;;  %v4783_v9 = vor.u32 %v5614_v46, %v4780_v56 }
 0x176   :  { %v4863_v31 = vor.u32 %v5634_v48, %v4860_v25  ;;  %v1383_v46 = vpop.f32.mrf.mxu2  ;;  %v4644_v48 = vld [vmem:[#allocation4 + $0x620] sm:$0xf0]  ;;  %v5628_v25 = vld [vmem:[#allocation4 + $0xa8c] sm:$0xf] }
 0x177   :  { %2375 = vmatpush.bf16.msra.mxu1 %v4687_v60  ;;  %2366 = vmatpush.bf16.msrb.mxu0 %v4591_v4  ;;  %v4671_v60 = vor.u32 %v5586_v36, %v4668_v16  ;;  %v4775_v4 = vor.u32 %v5612_v3, %v4772_v18  ;;  %1404 = vst [vmem:[%s6493_s4 + $0x20] sm:$0xff] %v1383_v46 }
 0x178   :  { %v4847_v16 = vor.u32 %v5630_v35, %v4844_v34  ;;  %v6633_v35 = vld [vmem:[#allocation38_spill] sm:$0xff] }
 0x179   :  { %2391 = vmatpush.bf16.msra.mxu2 %v4727_v22  ;;  %2404 = vmatpush.bf16.msra.mxu3 %v4791_v33  ;;  %v4852_v22 = vld [vmem:[#allocation4 + $0xb00] sm:$0xf0]  ;;  %v5582_v33 = vld [vmem:[#allocation4 + $0x63c] sm:$0xf] }
 0x17a   :  { %v4855_v45 = vor.u32 %v5632_v51, %v4852_v22  ;;  %v6629_v22 = vld [vmem:[#allocation31_spill] sm:$0xff] }
 0x17b   :  { %2376 = vmatpush.bf16.msra.mxu1 %v4679_v19  ;;  %2367 = vmatpush.bf16.msrb.mxu0 %v4583_v14  ;;  %v4652_v19 = vld [vmem:[#allocation4 + $0x650] sm:$0xf0]  ;;  %v4839_v14 = vor.u32 %v5628_v25, %v4836_v47 }
 0x17c   :  { %v4655_v36 = vor.u32 %v5582_v33, %v4652_v19  ;;  %v6631_v33 = vld [vmem:[#allocation36_spill] sm:$0xff]  ;;  %v6632_v19 = vld [vmem:[#allocation35_spill] sm:$0xff]  ;;  %v6637_v25 = vld [vmem:[#allocation42_spill] sm:$0xff] }
 0x17d   :  { %2392 = vmatpush.bf16.msra.mxu2 %v4719_v41  ;;  %2405 = vmatpush.bf16.msra.mxu3 %v4783_v9  ;;  %v1396_v56 = vpop.f32.mrf.mxu3  ;;  %v5580_v41 = vld [vmem:[#allocation4 + $0x60c] sm:$0xf] }
 0x17e   :  { %2368 = vmatmul.bf16.vlgmr.msrb.gmra.mxu0 %v5909_v57  ;;  %1405 = vst [vmem:[%s6493_s4 + $0x28] sm:$0xff] %v1396_v56  ;;  %v4647_v13 = vor.u32 %v5580_v41, %v4644_v48  ;;  %v1385_v11 = vpop.f32.mrf.mxu2  ;;  %v6624_v9 = vld [vmem:[#allocation20_spill] sm:$0xff]  ;;  %v6635_v41 = vld [vmem:[#allocation39_spill] sm:$0xff] }
 0x17f   :  { %2377 = vmatpush.bf16.msra.mxu1 %v4671_v60  ;;  %2416 = vmatpush.bf16.msra.mxu0 %v4863_v31  ;;  %v6625_v60 = vld [vmem:[#allocation26_spill] sm:$0xff]  ;;  %v6636_v48 = vld [vmem:[#allocation40_spill] sm:$0xff] }
 0x180   :  { %v6626_v31 = vld [vmem:[#allocation30_spill] sm:$0xff] }
 0x181   :  { %2393 = vmatpush.bf16.msra.mxu2 %v4711_v32  ;;  %2406 = vmatpush.bf16.msra.mxu3 %v4775_v4 }
 0x183   :  { %2378 = vmatpush.bf16.msra.mxu1 %v4663_v53  ;;  %2417 = vmatpush.bf16.msra.mxu0 %v4855_v45  ;;  %v6630_v45 = vld [vmem:[#allocation33_spill] sm:$0xff] }
 0x184   :  { %2394 = vmatmul.bf16.vlgmr.msra.gmra.mxu2 %v6621_v29  ;;  %2407 = vmatmul.bf16.vlgmr.msra.gmra.mxu3 %v6623_v10 }
 0x185   :  { %2454 = vmatpush.bf16.msrb.mxu2 %v5958_v50  ;;  %2467 = vmatpush.bf16.msrb.mxu3 %v5966_v59  ;;  %v1398_v38 = vpop.f32.mrf.mxu3 }
 0x187   :  { %2379 = vmatpush.bf16.msra.mxu1 %v4655_v36  ;;  %2418 = vmatpush.bf16.msra.mxu0 %v4847_v16  ;;  %v6634_v16 = vld [vmem:[#allocation37_spill] sm:$0xff] }
 0x189   :  { %2455 = vmatpush.bf16.msrb.mxu2 %v5993_v20  ;;  %2468 = vmatpush.bf16.msrb.mxu3 %v5995_v26 }
 0x18b   :  { %2380 = vmatpush.bf16.msra.mxu1 %v4647_v13  ;;  %2419 = vmatpush.bf16.msra.mxu0 %v4839_v14  ;;  %v6638_v14 = vld [vmem:[#allocation41_spill] sm:$0xff] }
 0x18d   :  { %2456 = vmatpush.bf16.msrb.mxu2 %v6006_v40  ;;  %2469 = vmatpush.bf16.msrb.mxu3 %v6009_v44 }
 0x18e   :  { %2381 = vmatmul.bf16.vlgmr.msra.gmra.mxu1 %v6619_v23  ;;  %4865 = vmatmul.msk.bf16.vlgmr.msra.gmra.mxu0 %vm867_vm0, %v6622_v58 }
 0x18f   :  { %2441 = vmatpush.bf16.msrb.mxu1 %v5936_v62  ;;  %2428 = vmatpush.bf16.msrb.mxu0 %v5938_v8 }
 0x191   :  { %2457 = vmatpush.bf16.msrb.mxu2 %v6017_v61  ;;  %2470 = vmatpush.bf16.msrb.mxu3 %v6019_v2 }
 0x193   :  { %2442 = vmatpush.bf16.msrb.mxu1 %v5941_v12  ;;  %2429 = vmatpush.bf16.msrb.mxu0 %v6624_v9 }
 0x195   :  { %2458 = vmatpush.bf16.msrb.mxu2 %v6028_v17  ;;  %2471 = vmatpush.bf16.msrb.mxu3 %v6031_v27 }
 0x197   :  { %2443 = vmatpush.bf16.msrb.mxu1 %v5948_v24  ;;  %2430 = vmatpush.bf16.msrb.mxu0 %v5953_v37 }
 0x199   :  { %2459 = vmatpush.bf16.msrb.mxu2 %v6043_v43  ;;  %2472 = vmatpush.bf16.msrb.mxu3 %v6045_v55  ;;  %v1416_v3 = vpop.f32.mrf.mxu0  ;;  %v1429_v18 = vpop.f32.mrf.mxu1 }
 0x19a   :  { %1485 = vst [vmem:[%s6493_s4 + $0x30] sm:$0xff] %v1416_v3  ;;  %v6639_v3 = vld [vmem:[#allocation44_spill] sm:$0xff] }
 0x19b   :  { %2444 = vmatpush.bf16.msrb.mxu1 %v5956_v39  ;;  %2431 = vmatpush.bf16.msrb.mxu0 %v5961_v52  ;;  %1486 = vst [vmem:[%s6493_s4 + $0x38] sm:$0xff] %v1429_v18  ;;  %v6640_v18 = vld [vmem:[#allocation43_spill] sm:$0xff] }
 0x19d   :  { %2460 = vmatpush.bf16.msrb.mxu2 %v6055_v21  ;;  %2473 = vmatpush.bf16.msrb.mxu3 %v6057_v30 }
 0x19f   :  { %2445 = vmatpush.bf16.msrb.mxu1 %v5964_v54  ;;  %2432 = vmatpush.bf16.msrb.mxu0 %v6625_v60 }
 0x1a1   :  { %2461 = vmatpush.bf16.msrb.mxu2 %v6067_v15  ;;  %2474 = vmatpush.bf16.msrb.mxu3 %v6069_v28  ;;  %v1442_v32 = vpop.f32.mrf.mxu2  ;;  %v1455_v51 = vpop.f32.mrf.mxu3 }
 0x1a2   :  { %1487 = vst [vmem:[%s6493_s4 + $0x40] sm:$0xff] %v1442_v32  ;;  %v1418_v4 = vpop.f32.mrf.mxu0  ;;  %v1431_v53 = vpop.f32.mrf.mxu1  ;;  %v6641_v32 = vld [vmem:[#allocation46_spill] sm:$0xff] }
 0x1a3   :  { %2446 = vmatpush.bf16.msrb.mxu1 %v5973_v63  ;;  %2433 = vmatpush.bf16.msrb.mxu0 %v5979_v5  ;;  %1488 = vst [vmem:[%s6493_s4 + $0x48] sm:$0xff] %v1455_v51  ;;  %v6642_v51 = vld [vmem:[#allocation45_spill] sm:$0xff] }
 0x1a5   :  { %2513 = vmatpush.bf16.msra.mxu2 %v5938_v8  ;;  %2526 = vmatpush.bf16.msra.mxu3 %v5936_v62 }
 0x1a7   :  { %2447 = vmatpush.bf16.msrb.mxu1 %v5982_v6  ;;  %2434 = vmatpush.bf16.msrb.mxu0 %v6626_v31 }
 0x1a9   :  { %2514 = vmatpush.bf16.msra.mxu2 %v6624_v9  ;;  %2527 = vmatpush.bf16.msra.mxu3 %v5941_v12  ;;  %v1444_v34 = vpop.f32.mrf.mxu2  ;;  %v1457_v46 = vpop.f32.mrf.mxu3 }
 0x1aa   :  { %v1468_v56 = vpop.f32.mrf.mxu0  ;;  %v1481_v36 = vpop.f32.mrf.mxu1  ;;  %v1611_v34 = vld [vmem:[#allocation6 + $0x2] sm:$0x3]  ;;  %v6643_v46 = vld [vmem:[#allocation48_spill] sm:$0xff] }
 0x1ab   :  { %2448 = vmatpush.bf16.msrb.mxu1 %v6627_v7  ;;  %2435 = vmatpush.bf16.msrb.mxu0 %v6629_v22  ;;  %1489 = vst [vmem:[%s6493_s4 + $0x50] sm:$0xff] %v1468_v56 }
 0x1ac   :  { %1490 = vst [vmem:[%s6493_s4 + $0x58] sm:$0xff] %v1481_v36  ;;  %v6644_v36 = vld [vmem:[#allocation47_spill] sm:$0xff] }
 0x1ad   :  { %2515 = vmatpush.bf16.msra.mxu2 %v5953_v37  ;;  %2528 = vmatpush.bf16.msra.mxu3 %v5948_v24 }
 0x1af   :  { %2493 = vmatpush.bf16.msra.mxu1 %v6628_v49  ;;  %2480 = vmatpush.bf16.msra.mxu0 %v6630_v45 }
 0x1b1   :  { %2516 = vmatpush.bf16.msra.mxu2 %v5961_v52  ;;  %2529 = vmatpush.bf16.msra.mxu3 %v5956_v39  ;;  %v2226_v11 = vpop.f32.mrf.mxu2  ;;  %v2239_v38 = vpop.f32.mrf.mxu3 }
 0x1b2   :  { %v1470_v47 = vpop.f32.mrf.mxu0  ;;  %v1483_v13 = vpop.f32.mrf.mxu1 }
 0x1b3   :  { %2494 = vmatpush.bf16.msra.mxu1 %v6631_v33  ;;  %2481 = vmatpush.bf16.msra.mxu0 %v6632_v19  ;;  %v1613_v47 = vperm.slane %v1611_v34, 0 }
 0x1b5   :  { %2517 = vmatpush.bf16.msra.mxu2 %v6625_v60  ;;  %2530 = vmatpush.bf16.msra.mxu3 %v5964_v54 }
 0x1b7   :  { %2495 = vmatpush.bf16.msra.mxu1 %v6633_v35  ;;  %2482 = vmatpush.bf16.msra.mxu0 %v6634_v16 }
 0x1b9   :  { %2518 = vmatpush.bf16.msra.mxu2 %v5979_v5  ;;  %2531 = vmatpush.bf16.msra.mxu3 %v5973_v63  ;;  %v2228_v4 = vpop.f32.mrf.mxu2  ;;  %v2241_v53 = vpop.f32.mrf.mxu3 }
 0x1bb   :  { %2496 = vmatpush.bf16.msra.mxu1 %v6635_v41  ;;  %2483 = vmatpush.bf16.msra.mxu0 %v6636_v48  ;;  %v2265_v56 = vpop.f32.mrf.mxu1 }
 0x1bd   :  { %2519 = vmatpush.bf16.msra.mxu2 %v6626_v31  ;;  %2532 = vmatpush.bf16.msra.mxu3 %v5982_v6  ;;  %v2252_v13 = vpop.f32.mrf.mxu0 }
 0x1bf   :  { %2497 = vmatpush.bf16.msra.mxu1 %v6637_v25  ;;  %2484 = vmatpush.bf16.msra.mxu0 %v6638_v14 }
 0x1c1   :  { %2520 = vmatpush.bf16.msra.mxu2 %v6629_v22  ;;  %2533 = vmatpush.bf16.msra.mxu3 %v6627_v7  ;;  %v2227_v22 = vadd.f32 %v2226_v11, %v1613_v47 }
 0x1c3   :  { %2498 = vmatpush.bf16.msra.mxu1 %v6639_v3  ;;  %2485 = vmatpush.bf16.msra.mxu0 %v6640_v18  ;;  %v2267_v7 = vpop.f32.mrf.mxu1  ;;  %v2240_v63 = vadd.f32 %v2239_v38, %v2227_v22  ;;  %v5649_v38 = vld [vmem:[#allocation4 + $0x144] sm:$0xf0] }
 0x1c5   :  { %v2254_v5 = vpop.f32.mrf.mxu0  ;;  %v2253_v54 = vadd.f32 %v2252_v13, %v2240_v63 }
 0x1c7   :  { %2499 = vmatpush.bf16.msra.mxu1 %v6641_v32  ;;  %2486 = vmatpush.bf16.msra.mxu0 %v6642_v51  ;;  %v2278_v6 = vpop.f32.mrf.mxu2  ;;  %v2291_v31 = vpop.f32.mrf.mxu3  ;;  %v2266_v52 = vadd.f32 %v2265_v56, %v2253_v54  ;;  %v4924_v54 = vld [vmem:[#allocation4 + $0x160] sm:$0xf]  ;;  %v5665_v56 = vld [vmem:[#allocation4 + $0x2c4] sm:$0xf0] }
 0x1c9   :  { %v2279_v53 = vadd.f32 %v2278_v6, %v2266_v52  ;;  %v5651_v6 = vld [vmem:[#allocation4 + $0x174] sm:$0xf0] }
 0x1cb   :  { %2500 = vmatpush.bf16.msra.mxu1 %v6643_v46  ;;  %2487 = vmatpush.bf16.msra.mxu0 %v6644_v36  ;;  %v2317_v4 = vpop.f32.mrf.mxu1  ;;  %v2292_v24 = vadd.f32 %v2291_v31, %v2279_v53  ;;  %v4916_v31 = vld [vmem:[#allocation4 + $0x130] sm:$0xf] }
 0x1cf   :  { %v2280_v60 = vpop.f32.mrf.mxu2  ;;  %v2293_v39 = vpop.f32.mrf.mxu3 }
 0x1d3   :  { %v2319_v37 = vpop.f32.mrf.mxu1 }
 0x1db   :  { %v2304_v12 = vpop.f32.mrf.mxu0 }
 0x1dc   :  { %v2305_v9 = vadd.f32 %v2304_v12, %v2292_v24  ;;  %v1614_v24 = vperm.slane %v1611_v34, 1  ;;  %v4980_v34 = vld [vmem:[#allocation4 + $0x2b0] sm:$0xf] }
 0x1dd   :  { %v4981_v53 = vor.u32 %v5665_v56, %v4980_v34  ;;  %v4892_v56 = vld [vmem:[#allocation4 + $0xa0] sm:$0xf] }
 0x1de   :  { %v2318_v62 = vadd.f32 %v2317_v4, %v2305_v9  ;;  %v4925_v9 = vor.u32 %v5651_v6, %v4924_v54  ;;  %v4917_v4 = vor.u32 %v5649_v38, %v4916_v31 }
 0x1e0   :  { %v2425_v8 = vmax.f32 %v2318_v62, 0.0 }
 0x1e2   :  { %v2427_v10 = vpack.c.bf16 %v2425_v8, %v2425_v8 }
 0x1e3   :  { %v2306_v58 = vpop.f32.mrf.mxu0 }
 0x1e4   :  { %2436 = vmatmul.bf16.vlgmr.msrb.gmra.mxu0 %v2427_v10  ;;  %2449 = vmatmul.bf16.vlgmr.msrb.gmra.mxu1 %v2427_v10  ;;  %v5667_v58 = vld [vmem:[#allocation4 + $0x2f4] sm:$0xf0] }
 0x1e5   :  { %2462 = vmatmul.bf16.vlgmr.msrb.gmra.mxu2 %v2427_v10  ;;  %2475 = vmatmul.bf16.vlgmr.msrb.gmra.mxu3 %v2427_v10 }
 0x1e6   :  { %2539 = vmatpush.bf16.msrb.mxu0 %v5958_v50  ;;  %2552 = vmatpush.bf16.msrb.mxu1 %v5966_v59 }
 0x1e7   :  { %v2343_v11 = vpop.f32.mrf.mxu2  ;;  %v2356_v5 = vpop.f32.mrf.mxu3  ;;  %2565 = vmatpush.bf16.msrb.mxu2 %v6630_v45  ;;  %2578 = vmatpush.bf16.msrb.mxu3 %v6628_v49 }
 0x1ea   :  { %2540 = vmatpush.bf16.msrb.mxu0 %v5993_v20  ;;  %2553 = vmatpush.bf16.msrb.mxu1 %v5995_v26 }
 0x1eb   :  { %v2330_v37 = vpop.f32.mrf.mxu1  ;;  %2566 = vmatpush.bf16.msrb.mxu2 %v6632_v19  ;;  %2579 = vmatpush.bf16.msrb.mxu3 %v6631_v33 }
 0x1ec   :  { %v2331_v39 = vadd.f32 %v2330_v37, %v1614_v24 }
 0x1ee   :  { %2541 = vmatpush.bf16.msrb.mxu0 %v6006_v40  ;;  %2554 = vmatpush.bf16.msrb.mxu1 %v6009_v44  ;;  %v2344_v63 = vadd.f32 %v2343_v11, %v2331_v39  ;;  %v4908_v11 = vld [vmem:[#allocation4 + $0x100] sm:$0xf] }
 0x1ef   :  { %v2345_v62 = vpop.f32.mrf.mxu2  ;;  %v2358_v8 = vpop.f32.mrf.mxu3  ;;  %2567 = vmatpush.bf16.msrb.mxu2 %v6634_v16  ;;  %2580 = vmatpush.bf16.msrb.mxu3 %v6633_v35 }
 0x1f0   :  { %v2357_v7 = vadd.f32 %v2356_v5, %v2344_v63  ;;  %v5647_v62 = vld [vmem:[#allocation4 + $0x114] sm:$0xf0]  ;;  %v4972_v8 = vld [vmem:[#allocation4 + $0x280] sm:$0xf]  ;;  %v4900_v63 = vld [vmem:[#allocation4 + $0xd0] sm:$0xf] }
 0x1f1   :  { %v4909_v39 = vor.u32 %v5647_v62, %v4908_v11  ;;  %v5683_v11 = vld [vmem:[#allocation4 + $0x474] sm:$0xf0]  ;;  %v5116_v62 = vld [vmem:[#allocation4 + $0x5e0] sm:$0xf] }
 0x1f2   :  { %2542 = vmatpush.bf16.msrb.mxu0 %v6017_v61  ;;  %2555 = vmatpush.bf16.msrb.mxu1 %v6019_v2 }
 0x1f3   :  { %v2332_v12 = vpop.f32.mrf.mxu1  ;;  %2568 = vmatpush.bf16.msrb.mxu2 %v6636_v48  ;;  %2581 = vmatpush.bf16.msrb.mxu3 %v6635_v41 }
 0x1f4   :  { %2488 = vmatmul.bf16.vlgmr.msra.gmra.mxu0 %v2427_v10  ;;  %2501 = vmatmul.bf16.vlgmr.msra.gmra.mxu1 %v2427_v10  ;;  %v4988_v10 = vld [vmem:[#allocation4 + $0x2e0] sm:$0xf]  ;;  %v5663_v12 = vld [vmem:[#allocation4 + $0x294] sm:$0xf0] }
 0x1f5   :  { %v4989_v60 = vor.u32 %v5667_v58, %v4988_v10  ;;  %v4973_v54 = vor.u32 %v5663_v12, %v4972_v8  ;;  %v5645_v58 = vld [vmem:[#allocation4 + $0xe4] sm:$0xf0]  ;;  %v5699_v8 = vld [vmem:[#allocation4 + $0x5f4] sm:$0xf0]  ;;  %v4956_v12 = vld [vmem:[#allocation4 + $0x220] sm:$0xf] }
 0x1f6   :  { %2543 = vmatpush.bf16.msrb.mxu0 %v6028_v17  ;;  %2556 = vmatpush.bf16.msrb.mxu1 %v6031_v27 }
 0x1f7   :  { %2569 = vmatpush.bf16.msrb.mxu2 %v6638_v14  ;;  %2582 = vmatpush.bf16.msrb.mxu3 %v6637_v25  ;;  %v5238_v25 = vld [vmem:[#allocation4 + $0x8c8] sm:$0xf0] }
 0x1fa   :  { %2544 = vmatpush.bf16.msrb.mxu0 %v6043_v43  ;;  %2557 = vmatpush.bf16.msrb.mxu1 %v6045_v55 }
 0x1fb   :  { %v2369_v52 = vpop.f32.mrf.mxu0  ;;  %2570 = vmatpush.bf16.msrb.mxu2 %v6640_v18  ;;  %2583 = vmatpush.bf16.msrb.mxu3 %v6639_v3  ;;  %v5728_v18 = vld [vmem:[#allocation4 + $0x8b4] sm:$0xf] }
 0x1fc   :  { %v2370_v37 = vadd.f32 %v2369_v52, %v2357_v7 }
 0x1fe   :  { %2545 = vmatpush.bf16.msrb.mxu0 %v6055_v21  ;;  %2558 = vmatpush.bf16.msrb.mxu1 %v6057_v30 }
 0x1ff   :  { %2571 = vmatpush.bf16.msrb.mxu2 %v6642_v51  ;;  %2584 = vmatpush.bf16.msrb.mxu3 %v6641_v32  ;;  %v4982_v51 = vld [vmem:[#allocation4 + $0x2c8] sm:$0xf0] }
 0x202   :  { %2546 = vmatpush.bf16.msrb.mxu0 %v6067_v15  ;;  %2559 = vmatpush.bf16.msrb.mxu1 %v6069_v28 }
 0x203   :  { %v2371_v22 = vpop.f32.mrf.mxu0  ;;  %2572 = vmatpush.bf16.msrb.mxu2 %v6644_v36  ;;  %2585 = vmatpush.bf16.msrb.mxu3 %v6643_v46  ;;  %v5713_v36 = vld [vmem:[#allocation4 + $0x744] sm:$0xf0] }
 0x204   :  { %v4901_v22 = vor.u32 %v5645_v58, %v4900_v63  ;;  %v4884_v63 = vld [vmem:[#allocation4 + $0x70] sm:$0xf] }
 0x206   :  { %3323 = vmatpush.bf16.msra.mxu0 %v4925_v9  ;;  %3336 = vmatpush.bf16.msra.mxu1 %v4989_v60  ;;  %v4964_v9 = vld [vmem:[#allocation4 + $0x250] sm:$0xf]  ;;  %v5661_v60 = vld [vmem:[#allocation4 + $0x264] sm:$0xf0] }
 0x207   :  { %v2395_v47 = vpop.f32.mrf.mxu2  ;;  %v2408_v13 = vpop.f32.mrf.mxu3  ;;  %v4965_v38 = vor.u32 %v5661_v60, %v4964_v9  ;;  %v5044_v9 = vld [vmem:[#allocation4 + $0x430] sm:$0xf]  ;;  %v5681_v60 = vld [vmem:[#allocation4 + $0x444] sm:$0xf0] }
 0x20a   :  { %3324 = vmatpush.bf16.msra.mxu0 %v4917_v4  ;;  %3337 = vmatpush.bf16.msra.mxu1 %v4981_v53  ;;  %v5052_v4 = vld [vmem:[#allocation4 + $0x460] sm:$0xf] }
 0x20b   :  { %v2382_v5 = vpop.f32.mrf.mxu1  ;;  %v2421_v10 = vpop.f32.mrf.mxu0 }
 0x20c   :  { %v2383_v24 = vadd.f32 %v2382_v5, %v2370_v37  ;;  %v5643_v37 = vld [vmem:[#allocation4 + $0xb4] sm:$0xf0] }
 0x20d   :  { %v5659_v5 = vld [vmem:[#allocation4 + $0x234] sm:$0xf0] }
 0x20e   :  { %v2396_v6 = vadd.f32 %v2395_v47, %v2383_v24  ;;  %3325 = vmatpush.bf16.msra.mxu0 %v4909_v39  ;;  %3338 = vmatpush.bf16.msra.mxu1 %v4973_v54  ;;  %v4893_v39 = vor.u32 %v5643_v37, %v4892_v56  ;;  %v5053_v54 = vor.u32 %v5683_v11, %v5052_v4  ;;  %v4876_v56 = vld [vmem:[#allocation4 + $0x40] sm:$0xf]  ;;  %v5639_v37 = vld [vmem:[#allocation4 + $0x54] sm:$0xf0] }
 0x20f   :  { %v2397_v52 = vpop.f32.mrf.mxu2  ;;  %v2410_v7 = vpop.f32.mrf.mxu3  ;;  %v4957_v58 = vor.u32 %v5659_v5, %v4956_v12  ;;  %v5036_v11 = vld [vmem:[#allocation4 + $0x400] sm:$0xf]  ;;  %v5655_v5 = vld [vmem:[#allocation4 + $0x1d4] sm:$0xf0] }
 0x210   :  { %v2409_v31 = vadd.f32 %v2408_v13, %v2396_v6  ;;  %v5641_v6 = vld [vmem:[#allocation4 + $0x84] sm:$0xf0]  ;;  %v5108_v52 = vld [vmem:[#allocation4 + $0x5b0] sm:$0xf]  ;;  %v4940_v12 = vld [vmem:[#allocation4 + $0x1c0] sm:$0xf] }
 0x211   :  { %v4948_v7 = vld [vmem:[#allocation4 + $0x1f0] sm:$0xf] }
 0x212   :  { %v2422_v34 = vadd.f32 %v2421_v10, %v2409_v31  ;;  %3326 = vmatpush.bf16.msra.mxu0 %v4901_v22  ;;  %3339 = vmatpush.bf16.msra.mxu1 %v4965_v38  ;;  %v5117_v10 = vor.u32 %v5699_v8, %v5116_v62  ;;  %v5697_v31 = vld [vmem:[#allocation4 + $0x5c4] sm:$0xf0]  ;;  %v4885_v38 = vor.u32 %v5641_v6, %v4884_v63  ;;  %v5679_v62 = vld [vmem:[#allocation4 + $0x414] sm:$0xf0]  ;;  %v5100_v8 = vld [vmem:[#allocation4 + $0x580] sm:$0xf] }
 0x213   :  { %v2384_v53 = vpop.f32.mrf.mxu1  ;;  %v2423_v13 = vpop.f32.mrf.mxu0  ;;  %v5657_v22 = vld [vmem:[#allocation4 + $0x204] sm:$0xf0]  ;;  %v5109_v4 = vor.u32 %v5697_v31, %v5108_v52  ;;  %v5037_v46 = vor.u32 %v5679_v62, %v5036_v11  ;;  %v4941_v6 = vor.u32 %v5655_v5, %v4940_v12  ;;  %v5180_v52 = vld [vmem:[#allocation4 + $0x760] sm:$0xf]  ;;  %v5715_v31 = vld [vmem:[#allocation4 + $0x774] sm:$0xf0] }
 0x214   :  { %v2426_v47 = vmax.f32 %v2422_v34, 0.0  ;;  %v5045_v34 = vor.u32 %v5681_v60, %v5044_v9  ;;  %v4949_v53 = vor.u32 %v5657_v22, %v4948_v7  ;;  %v4877_v13 = vor.u32 %v5639_v37, %v4876_v56  ;;  %v5092_v9 = vld [vmem:[#allocation4 + $0x550] sm:$0xf]  ;;  %v5693_v60 = vld [vmem:[#allocation4 + $0x564] sm:$0xf0] }
 0x215   :  { %v4932_v7 = vld [vmem:[#allocation4 + $0x190] sm:$0xf]  ;;  %v5653_v22 = vld [vmem:[#allocation4 + $0x1a4] sm:$0xf0]  ;;  %v5244_v56 = vld [vmem:[#allocation4 + $0x8e0] sm:$0xf] }
 0x216   :  { %v6295_v24 = vpack.c.bf16 %v2426_v47, %v2426_v47  ;;  %3327 = vmatpush.bf16.msra.mxu0 %v4893_v39  ;;  %3340 = vmatpush.bf16.msra.mxu1 %v4957_v58  ;;  %v5695_v47 = vld [vmem:[#allocation4 + $0x594] sm:$0xf0]  ;;  %v4868_v39 = vld [vmem:[#allocation4 + $0x10] sm:$0xf]  ;;  %v5677_v58 = vld [vmem:[#allocation4 + $0x3e4] sm:$0xf0] }
 0x217   :  { %v5101_v63 = vor.u32 %v5695_v47, %v5100_v8  ;;  %v5731_v37 = vld [vmem:[#allocation4 + $0x8f4] sm:$0xf0]  ;;  %v5020_v11 = vld [vmem:[#allocation4 + $0x3a0] sm:$0xf]  ;;  %v4933_v47 = vor.u32 %v5653_v22, %v4932_v7  ;;  %v5172_v5 = vld [vmem:[#allocation4 + $0x730] sm:$0xf] }
 0x218   :  { %2521 = vmatmul.bf16.vlgmr.msra.gmra.mxu2 %v6295_v24  ;;  %2534 = vmatmul.bf16.vlgmr.msra.gmra.mxu3 %v6295_v24  ;;  %v5675_v62 = vld [vmem:[#allocation4 + $0x3b4] sm:$0xf0]  ;;  %v5084_v8 = vld [vmem:[#allocation4 + $0x520] sm:$0xf]  ;;  %v5245_v32 = vor.u32 %v5731_v37, %v5244_v56 }
 0x219   :  { %2547 = vmatmul.bf16.vlgmr.msrb.gmra.mxu0 %v6295_v24  ;;  %2560 = vmatmul.bf16.vlgmr.msrb.gmra.mxu1 %v6295_v24  ;;  %v5691_v12 = vld [vmem:[#allocation4 + $0x534] sm:$0xf0]  ;;  %v5228_v22 = vld [vmem:[#allocation4 + $0x880] sm:$0xf] }
 0x21a   :  { %3349 = vmatpush.bf16.msra.mxu2 %v5053_v54  ;;  %3362 = vmatpush.bf16.msra.mxu3 %v5117_v10  ;;  %v5637_v54 = vld [vmem:[#allocation4 + $0x24] sm:$0xf0]  ;;  %v5028_v10 = vld [vmem:[#allocation4 + $0x3d0] sm:$0xf]  ;;  %v5004_v56 = vld [vmem:[#allocation4 + $0x340] sm:$0xf] }
 0x21b   :  { %3328 = vmatpush.bf16.msra.mxu0 %v4885_v38  ;;  %3341 = vmatpush.bf16.msra.mxu1 %v4949_v53  ;;  %v4869_v38 = vor.u32 %v5637_v54, %v4868_v39  ;;  %v5181_v53 = vor.u32 %v5715_v31, %v5180_v52  ;;  %v5729_v39 = vld [vmem:[#allocation4 + $0x8c4] sm:$0xf0]  ;;  %v5085_v54 = vor.u32 %v5691_v12, %v5084_v8  ;;  %v5711_v52 = vld [vmem:[#allocation4 + $0x714] sm:$0xf0]  ;;  %v5220_v8 = vld [vmem:[#allocation4 + $0x850] sm:$0xf] }
 0x21c   :  { %v5671_v37 = vld [vmem:[#allocation4 + $0x354] sm:$0xf0]  ;;  %v4996_v12 = vld [vmem:[#allocation4 + $0x310] sm:$0xf] }
 0x21e   :  { %3350 = vmatpush.bf16.msra.mxu2 %v5045_v34  ;;  %3363 = vmatpush.bf16.msra.mxu3 %v5109_v4  ;;  %v5029_v34 = vor.u32 %v5677_v58, %v5028_v10  ;;  %v5093_v4 = vor.u32 %v5693_v60, %v5092_v9  ;;  %v5673_v10 = vld [vmem:[#allocation4 + $0x384] sm:$0xf0]  ;;  %v5076_v58 = vld [vmem:[#allocation4 + $0x4f0] sm:$0xf]  ;;  %v5164_v60 = vld [vmem:[#allocation4 + $0x700] sm:$0xf] }
 0x21f   :  { %3329 = vmatpush.bf16.msra.mxu0 %v4877_v13  ;;  %3342 = vmatpush.bf16.msra.mxu1 %v4941_v6  ;;  %v5021_v13 = vor.u32 %v5675_v62, %v5020_v11  ;;  %v5012_v6 = vld [vmem:[#allocation4 + $0x370] sm:$0xf]  ;;  %v5689_v9 = vld [vmem:[#allocation4 + $0x504] sm:$0xf0] }
 0x220   :  { %v5013_v7 = vor.u32 %v5673_v10, %v5012_v6  ;;  %v5156_v11 = vld [vmem:[#allocation4 + $0x6d0] sm:$0xf]  ;;  %v5709_v62 = vld [vmem:[#allocation4 + $0x6e4] sm:$0xf0]  ;;  %v5707_v6 = vld [vmem:[#allocation4 + $0x6b4] sm:$0xf0] }
 0x221   :  { %v5308_v10 = vld [vmem:[#allocation4 + $0xa60] sm:$0xf] }
 0x222   :  { %3351 = vmatpush.bf16.msra.mxu2 %v5037_v46  ;;  %3364 = vmatpush.bf16.msra.mxu3 %v5101_v63  ;;  %v5236_v46 = vld [vmem:[#allocation4 + $0x8b0] sm:$0xf]  ;;  %v5173_v63 = vor.u32 %v5713_v36, %v5172_v5  ;;  %v5077_v36 = vor.u32 %v5689_v9, %v5076_v58  ;;  %v5747_v9 = vld [vmem:[#allocation4 + $0xa74] sm:$0xf0] }
 0x223   :  { %3330 = vmatpush.bf16.msra.mxu0 %v4869_v38  ;;  %3343 = vmatpush.bf16.msra.mxu1 %v4933_v47  ;;  %v5237_v31 = vor.u32 %v5729_v39, %v5236_v46  ;;  %v5727_v38 = vld [vmem:[#allocation4 + $0x894] sm:$0xf0]  ;;  %v5725_v47 = vld [vmem:[#allocation4 + $0x864] sm:$0xf0]  ;;  %v5060_v39 = vld [vmem:[#allocation4 + $0x490] sm:$0xf] }
 0x224   :  { %v5669_v46 = vld [vmem:[#allocation4 + $0x324] sm:$0xf0]  ;;  %v5221_v58 = vor.u32 %v5725_v47, %v5220_v8  ;;  %v5204_v47 = vld [vmem:[#allocation4 + $0x7f0] sm:$0xf] }
 0x225   :  { %v5753_v8 = vld [vmem:[#allocation4 + $0xb04] sm:$0xf0] }
 0x226   :  { %3352 = vmatpush.bf16.msra.mxu2 %v5029_v34  ;;  %3365 = vmatpush.bf16.msra.mxu3 %v5093_v4  ;;  %v5165_v34 = vor.u32 %v5711_v52, %v5164_v60  ;;  %v5068_v4 = vld [vmem:[#allocation4 + $0x4c0] sm:$0xf]  ;;  %v5755_v52 = vld [vmem:[#allocation4 + $0xb34] sm:$0xf0] }
 0x227   :  { %3375 = vmatpush.bf16.msrb.mxu0 %v5181_v53  ;;  %3388 = vmatpush.bf16.msrb.mxu1 %v5245_v32  ;;  %v5687_v53 = vld [vmem:[#allocation4 + $0x4d4] sm:$0xf0]  ;;  %v5229_v32 = vor.u32 %v5727_v38, %v5228_v22  ;;  %v5340_v60 = vld [vmem:[#allocation4 + $0xb20] sm:$0xf] }
 0x228   :  { %2573 = vmatmul.bf16.vlgmr.msrb.gmra.mxu2 %v6295_v24  ;;  %2586 = vmatmul.bf16.vlgmr.msrb.gmra.mxu3 %v6295_v24  ;;  %v5005_v24 = vor.u32 %v5671_v37, %v5004_v56  ;;  %v5069_v5 = vor.u32 %v5687_v53, %v5068_v4  ;;  %v5723_v22 = vld [vmem:[#allocation4 + $0x834] sm:$0xf0]  ;;  %v5341_v56 = vor.u32 %v5755_v52, %v5340_v60  ;;  %v5140_v37 = vld [vmem:[#allocation4 + $0x670] sm:$0xf]  ;;  %v5705_v4 = vld [vmem:[#allocation4 + $0x684] sm:$0xf0] }
 0x229   :  { %3331 = vmatmul.bf16.vlgmr.msra.gmra.mxu0 %v5911_v0  ;;  %3344 = vmatmul.bf16.vlgmr.msra.gmra.mxu1 %v5913_v1  ;;  %v5300_v53 = vld [vmem:[#allocation4 + $0xa30] sm:$0xf]  ;;  %v5719_v60 = vld [vmem:[#allocation4 + $0x7d4] sm:$0xf0] }
 0x22a   :  { %3353 = vmatpush.bf16.msra.mxu2 %v5021_v13  ;;  %3366 = vmatpush.bf16.msra.mxu3 %v5085_v54  ;;  %v5157_v13 = vor.u32 %v5709_v62, %v5156_v11  ;;  %v5685_v54 = vld [vmem:[#allocation4 + $0x4a4] sm:$0xf0] }
 0x22b   :  { %3376 = vmatpush.bf16.msrb.mxu0 %v5173_v63  ;;  %3389 = vmatpush.bf16.msrb.mxu1 %v5237_v31  ;;  %v5148_v63 = vld [vmem:[#allocation4 + $0x6a0] sm:$0xf]  ;;  %v4997_v31 = vor.u32 %v5669_v46, %v4996_v12  ;;  %v5061_v38 = vor.u32 %v5685_v54, %v5060_v39  ;;  %v5745_v62 = vld [vmem:[#allocation4 + $0xa44] sm:$0xf0]  ;;  %v5141_v12 = vor.u32 %v5705_v4, %v5140_v37  ;;  %v5703_v39 = vld [vmem:[#allocation4 + $0x654] sm:$0xf0] }
 0x22c   :  { %v5132_v46 = vld [vmem:[#allocation4 + $0x640] sm:$0xf]  ;;  %v5316_v37 = vld [vmem:[#allocation4 + $0xa90] sm:$0xf]  ;;  %v5749_v4 = vld [vmem:[#allocation4 + $0xaa4] sm:$0xf0] }
 0x22d   :  { %v5292_v54 = vld [vmem:[#allocation4 + $0xa00] sm:$0xf]  ;;  %v5133_v52 = vor.u32 %v5703_v39, %v5132_v46  ;;  %v5054_v46 = vld [vmem:[#allocation4 + $0x478] sm:$0xf0] }
 0x22e   :  { %3354 = vmatpush.bf16.msra.mxu2 %v5013_v7  ;;  %3367 = vmatpush.bf16.msra.mxu3 %v5077_v36  ;;  %v5212_v7 = vld [vmem:[#allocation4 + $0x820] sm:$0xf]  ;;  %v5149_v36 = vor.u32 %v5707_v6, %v5148_v63  ;;  %v5743_v6 = vld [vmem:[#allocation4 + $0xa14] sm:$0xf0] }
 0x22f   :  { %3377 = vmatpush.bf16.msrb.mxu0 %v5165_v34  ;;  %3390 = vmatpush.bf16.msrb.mxu1 %v5229_v32  ;;  %v5309_v34 = vor.u32 %v5747_v9, %v5308_v10  ;;  %v5213_v11 = vor.u32 %v5723_v22, %v5212_v7  ;;  %v5332_v32 = vld [vmem:[#allocation4 + $0xaf0] sm:$0xf]  ;;  %v5324_v10 = vld [vmem:[#allocation4 + $0xac0] sm:$0xf]  ;;  %v5293_v7 = vor.u32 %v5743_v6, %v5292_v54  ;;  %v5739_v6 = vld [vmem:[#allocation4 + $0x9b4] sm:$0xf0] }
 0x230   :  { %v5196_v9 = vld [vmem:[#allocation4 + $0x7c0] sm:$0xf] }
 0x232   :  { %3355 = vmatpush.bf16.msra.mxu2 %v5005_v24  ;;  %3368 = vmatpush.bf16.msra.mxu3 %v5069_v5  ;;  %v5721_v24 = vld [vmem:[#allocation4 + $0x804] sm:$0xf0]  ;;  %v5301_v5 = vor.u32 %v5745_v62, %v5300_v53  ;;  %v5650_v53 = vld [vmem:[#allocation4 + $0x164] sm:$0xf] }
 0x233   :  { %3378 = vmatpush.bf16.msrb.mxu0 %v5157_v13  ;;  %3391 = vmatpush.bf16.msrb.mxu1 %v5221_v58  ;;  %v5333_v13 = vor.u32 %v5753_v8, %v5332_v32  ;;  %v5205_v63 = vor.u32 %v5721_v24, %v5204_v47  ;;  %v5751_v58 = vld [vmem:[#allocation4 + $0xad4] sm:$0xf0]  ;;  %v5666_v62 = vld [vmem:[#allocation4 + $0x2e4] sm:$0xf]  ;;  %v4990_v32 = vld [vmem:[#allocation4 + $0x2f8] sm:$0xf0] }
 0x234   :  { %v5325_v22 = vor.u32 %v5751_v58, %v5324_v10  ;;  %v5188_v47 = vld [vmem:[#allocation4 + $0x790] sm:$0xf]  ;;  %v5717_v24 = vld [vmem:[#allocation4 + $0x7a4] sm:$0xf0]  ;;  %v4993_v54 = vor.u32 %v5666_v62, %v4990_v32  ;;  %v5648_v10 = vld [vmem:[#allocation4 + $0x134] sm:$0xf] }
 0x235   :  { %v5189_v58 = vor.u32 %v5717_v24, %v5188_v47  ;;  %v5038_v47 = vld [vmem:[#allocation4 + $0x418] sm:$0xf0] }
 0x236   :  { %3356 = vmatpush.bf16.msra.mxu2 %v4997_v31  ;;  %3369 = vmatpush.bf16.msra.mxu3 %v5061_v38  ;;  %v5124_v31 = vld [vmem:[#allocation4 + $0x610] sm:$0xf]  ;;  %v5701_v38 = vld [vmem:[#allocation4 + $0x624] sm:$0xf0] }
 0x237   :  { %3379 = vmatpush.bf16.msrb.mxu0 %v5149_v36  ;;  %3392 = vmatpush.bf16.msrb.mxu1 %v5213_v11  ;;  %v5284_v36 = vld [vmem:[#allocation4 + $0x9d0] sm:$0xf]  ;;  %v4926_v11 = vld [vmem:[#allocation4 + $0x178] sm:$0xf0]  ;;  %v5125_v8 = vor.u32 %v5701_v38, %v5124_v31 }
 0x238   :  { %v4929_v39 = vor.u32 %v5650_v53, %v4926_v11  ;;  %v5662_v53 = vld [vmem:[#allocation4 + $0x284] sm:$0xf]  ;;  %v4974_v11 = vld [vmem:[#allocation4 + $0x298] sm:$0xf0] }
 0x239   :  { %3357 = vmatmul.bf16.vlgmr.msra.gmra.mxu2 %v6620_v42  ;;  %3370 = vmatmul.bf16.vlgmr.msra.gmra.mxu3 %v5909_v57 }
 0x23a   :  { %3401 = vmatpush.bf16.msrb.mxu2 %v5309_v34  ;;  %3418 = vmatpush.bf16.msrb.mxu3 %v5341_v56  ;;  %v5741_v34 = vld [vmem:[#allocation4 + $0x9e4] sm:$0xf0]  ;;  %v5197_v56 = vor.u32 %v5719_v60, %v5196_v9  ;;  %v4918_v9 = vld [vmem:[#allocation4 + $0x148] sm:$0xf0]  ;;  %v5664_v60 = vld [vmem:[#allocation4 + $0x2b4] sm:$0xf] }
 0x23b   :  { %3380 = vmatpush.bf16.msrb.mxu0 %v5141_v12  ;;  %3393 = vmatpush.bf16.msrb.mxu1 %v5205_v63  ;;  %v5285_v12 = vor.u32 %v5741_v34, %v5284_v36  ;;  %v5276_v63 = vld [vmem:[#allocation4 + $0x9a0] sm:$0xf]  ;;  %v4921_v38 = vor.u32 %v5648_v10, %v4918_v9  ;;  %v4985_v36 = vor.u32 %v5664_v60, %v4982_v51  ;;  %v5268_v34 = vld [vmem:[#allocation4 + $0x970] sm:$0xf]  ;;  %v5030_v9 = vld [vmem:[#allocation4 + $0x3e8] sm:$0xf0] }
 0x23c   :  { %v5277_v31 = vor.u32 %v5739_v6, %v5276_v63  ;;  %v5260_v51 = vld [vmem:[#allocation4 + $0x940] sm:$0xf]  ;;  %v6645_v63 = vld [vmem:[#allocation13_spill] sm:$0xff] }
 0x23e   :  { %3402 = vmatpush.bf16.msrb.mxu2 %v5301_v5  ;;  %3419 = vmatpush.bf16.msrb.mxu3 %v5333_v13  ;;  %v5317_v5 = vor.u32 %v5749_v4, %v5316_v37  ;;  %v5682_v13 = vld [vmem:[#allocation4 + $0x464] sm:$0xf]  ;;  %v4910_v4 = vld [vmem:[#allocation4 + $0x118] sm:$0xf0] }
 0x23f   :  { %3381 = vmatpush.bf16.msrb.mxu0 %v5133_v52  ;;  %3394 = vmatpush.bf16.msrb.mxu1 %v5197_v56  ;;  %v5057_v52 = vor.u32 %v5682_v13, %v5054_v46  ;;  %v5737_v56 = vld [vmem:[#allocation4 + $0x984] sm:$0xf0]  ;;  %v5646_v37 = vld [vmem:[#allocation4 + $0x104] sm:$0xf]  ;;  %v5644_v13 = vld [vmem:[#allocation4 + $0xd4] sm:$0xf] }
 0x240   :  { %v5269_v32 = vor.u32 %v5737_v56, %v5268_v34  ;;  %v4913_v24 = vor.u32 %v5646_v37, %v4910_v4  ;;  %v4902_v46 = vld [vmem:[#allocation4 + $0xe8] sm:$0xf0]  ;;  %v4958_v34 = vld [vmem:[#allocation4 + $0x238] sm:$0xf0]  ;;  %v5698_v37 = vld [vmem:[#allocation4 + $0x5e4] sm:$0xf] }
 0x241   :  { %v4905_v60 = vor.u32 %v5644_v13, %v4902_v46  ;;  %v5118_v4 = vld [vmem:[#allocation4 + $0x5f8] sm:$0xf0]  ;;  %v5696_v46 = vld [vmem:[#allocation4 + $0x5b4] sm:$0xf] }
 0x242   :  { %3403 = vmatpush.bf16.msrb.mxu2 %v5293_v7  ;;  %3420 = vmatpush.bf16.msrb.mxu3 %v5325_v22  ;;  %v5680_v7 = vld [vmem:[#allocation4 + $0x434] sm:$0xf]  ;;  %v5046_v22 = vld [vmem:[#allocation4 + $0x448] sm:$0xf0] }
 0x243   :  { %3382 = vmatpush.bf16.msrb.mxu0 %v5125_v8  ;;  %3395 = vmatpush.bf16.msrb.mxu1 %v5189_v58  ;;  %v5049_v62 = vor.u32 %v5680_v7, %v5046_v22  ;;  %v5678_v8 = vld [vmem:[#allocation4 + $0x404] sm:$0xf]  ;;  %v5676_v58 = vld [vmem:[#allocation4 + $0x3d4] sm:$0xf]  ;;  %v5733_v7 = vld [vmem:[#allocation4 + $0x924] sm:$0xf0] }
 0x244   :  { %v5041_v6 = vor.u32 %v5678_v8, %v5038_v47  ;;  %v5642_v22 = vld [vmem:[#allocation4 + $0xa4] sm:$0xf]  ;;  %v5033_v56 = vor.u32 %v5676_v58, %v5030_v9  ;;  %v5640_v47 = vld [vmem:[#allocation4 + $0x74] sm:$0xf] }
 0x245   :  { %v5638_v9 = vld [vmem:[#allocation4 + $0x44] sm:$0xf] }
 0x246   :  { %3404 = vmatpush.bf16.msrb.mxu2 %v5285_v12  ;;  %3421 = vmatpush.bf16.msrb.mxu3 %v5317_v5  ;;  %v4977_v12 = vor.u32 %v5662_v53, %v4974_v11  ;;  %v5735_v5 = vld [vmem:[#allocation4 + $0x954] sm:$0xf0]  ;;  %v5674_v11 = vld [vmem:[#allocation4 + $0x3a4] sm:$0xf] }
 0x247   :  { %3440 = vmatpush.bf16.msra.mxu0 %v4993_v54  ;;  %3453 = vmatpush.bf16.msra.mxu1 %v5057_v52  ;;  %v4966_v54 = vld [vmem:[#allocation4 + $0x268] sm:$0xf0]  ;;  %v5261_v10 = vor.u32 %v5735_v5, %v5260_v51  ;;  %v5656_v51 = vld [vmem:[#allocation4 + $0x1f4] sm:$0xf] }
 0x248   :  { %3383 = vmatmul.bf16.vlgmr.msrb.gmra.mxu0 %v6619_v23  ;;  %3396 = vmatmul.bf16.vlgmr.msrb.gmra.mxu1 %v6621_v29  ;;  %v4950_v5 = vld [vmem:[#allocation4 + $0x208] sm:$0xf0] }
 0x249   :  { %5346 = vmatmul.msk.bf16.vlgmr.msrb.gmra.mxu3 %vm867_vm0, %v6645_v63  ;;  %v4953_v58 = vor.u32 %v5656_v51, %v4950_v5  ;;  %v5714_v5 = vld [vmem:[#allocation4 + $0x764] sm:$0xf] }
 0x24a   :  { %3427 = vmatpush.bf16.msra.mxu3 %v4929_v39  ;;  %3405 = vmatpush.bf16.msrb.mxu2 %v5277_v31  ;;  %v5660_v39 = vld [vmem:[#allocation4 + $0x254] sm:$0xf]  ;;  %v5252_v31 = vld [vmem:[#allocation4 + $0x910] sm:$0xf] }
 0x24b   :  { %3441 = vmatpush.bf16.msra.mxu0 %v4985_v36  ;;  %3454 = vmatpush.bf16.msra.mxu1 %v5049_v62  ;;  %v4969_v52 = vor.u32 %v5660_v39, %v4966_v54  ;;  %v5658_v36 = vld [vmem:[#allocation4 + $0x224] sm:$0xf]  ;;  %v5253_v53 = vor.u32 %v5733_v7, %v5252_v31  ;;  %v5022_v62 = vld [vmem:[#allocation4 + $0x3b8] sm:$0xf0]  ;;  %v5110_v39 = vld [vmem:[#allocation4 + $0x5c8] sm:$0xf0] }
 0x24c   :  { %v4961_v8 = vor.u32 %v5658_v36, %v4958_v34  ;;  %v5025_v13 = vor.u32 %v5674_v11, %v5022_v62  ;;  %v5672_v54 = vld [vmem:[#allocation4 + $0x374] sm:$0xf]  ;;  %v5654_v31 = vld [vmem:[#allocation4 + $0x1c4] sm:$0xf]  ;;  %v4942_v7 = vld [vmem:[#allocation4 + $0x1d8] sm:$0xf0] }
 0x24d   :  { %v5694_v36 = vld [vmem:[#allocation4 + $0x584] sm:$0xf]  ;;  %v5102_v34 = vld [vmem:[#allocation4 + $0x598] sm:$0xf0]  ;;  %v5636_v11 = vld [vmem:[#allocation4 + $0x14] sm:$0xf] }
 0x24e   :  { %3428 = vmatpush.bf16.msra.mxu3 %v4921_v38  ;;  %3406 = vmatpush.bf16.msrb.mxu2 %v5269_v32  ;;  %v4894_v38 = vld [vmem:[#allocation4 + $0xb8] sm:$0xf0]  ;;  %v4870_v62 = vld [vmem:[#allocation4 + $0x28] sm:$0xf0] }
 0x24f   :  { %3442 = vmatpush.bf16.msra.mxu0 %v4977_v12  ;;  %3455 = vmatpush.bf16.msra.mxu1 %v5041_v6  ;;  %v4897_v32 = vor.u32 %v5642_v22, %v4894_v38  ;;  %v4886_v12 = vld [vmem:[#allocation4 + $0x88] sm:$0xf0]  ;;  %v6646_v22 = vld [vmem:[#allocation15_spill] sm:$0xff] }
 0x250   :  { %v5014_v6 = vld [vmem:[#allocation4 + $0x388] sm:$0xf0] }
 0x251   :  { %v5017_v38 = vor.u32 %v5672_v54, %v5014_v6  ;;  %v5668_v54 = vld [vmem:[#allocation4 + $0x314] sm:$0xf]  ;;  %v4998_v6 = vld [vmem:[#allocation4 + $0x328] sm:$0xf0] }
 0x252   :  { %3429 = vmatpush.bf16.msra.mxu3 %v4913_v24  ;;  %3407 = vmatpush.bf16.msrb.mxu2 %v5261_v10  ;;  %v5121_v24 = vor.u32 %v5698_v37, %v5118_v4  ;;  %v4889_v10 = vor.u32 %v5640_v47, %v4886_v12  ;;  %v5006_v37 = vld [vmem:[#allocation4 + $0x358] sm:$0xf0]  ;;  %v4934_v47 = vld [vmem:[#allocation4 + $0x1a8] sm:$0xf0] }
 0x253   :  { %3443 = vmatpush.bf16.msra.mxu0 %v4969_v52  ;;  %3456 = vmatpush.bf16.msra.mxu1 %v5033_v56  ;;  %v4878_v52 = vld [vmem:[#allocation4 + $0x58] sm:$0xf0]  ;;  %v5670_v56 = vld [vmem:[#allocation4 + $0x344] sm:$0xf]  ;;  %v5094_v12 = vld [vmem:[#allocation4 + $0x568] sm:$0xf0] }
 0x254   :  { %v4881_v4 = vor.u32 %v5638_v9, %v4878_v52  ;;  %v5009_v51 = vor.u32 %v5670_v56, %v5006_v37  ;;  %v5746_v9 = vld [vmem:[#allocation4 + $0xa64] sm:$0xf]  ;;  %v5310_v52 = vld [vmem:[#allocation4 + $0xa78] sm:$0xf0]  ;;  %v5712_v56 = vld [vmem:[#allocation4 + $0x734] sm:$0xf] }
 0x255   :  { %v5174_v37 = vld [vmem:[#allocation4 + $0x748] sm:$0xf0]  ;;  %v5313_v3 = vor.u32 %v5746_v9, %v5310_v52  ;;  %v5070_v9 = vld [vmem:[#allocation4 + $0x4d8] sm:$0xf0] }
 0x256   :  { %3430 = vmatpush.bf16.msra.mxu3 %v4905_v60  ;;  %3408 = vmatpush.bf16.msrb.mxu2 %v5253_v53  ;;  %v5113_v60 = vor.u32 %v5696_v46, %v5110_v39  ;;  %v4945_v53 = vor.u32 %v5654_v31, %v4942_v7  ;;  %v5730_v46 = vld [vmem:[#allocation4 + $0x8e4] sm:$0xf]  ;;  %v5246_v39 = vld [vmem:[#allocation4 + $0x8f8] sm:$0xf0]  ;;  %v5158_v52 = vld [vmem:[#allocation4 + $0x6e8] sm:$0xf0] }
 0x257   :  { %3444 = vmatpush.bf16.msra.mxu0 %v4961_v8  ;;  %3457 = vmatpush.bf16.msra.mxu1 %v5025_v13  ;;  %v5105_v8 = vor.u32 %v5694_v36, %v5102_v34  ;;  %v5182_v13 = vld [vmem:[#allocation4 + $0x778] sm:$0xf0]  ;;  %v5690_v7 = vld [vmem:[#allocation4 + $0x524] sm:$0xf]  ;;  %v5249_v36 = vor.u32 %v5730_v46, %v5246_v39 }
 0x258   :  { %v5185_v31 = vor.u32 %v5714_v5, %v5182_v13  ;;  %v5086_v34 = vld [vmem:[#allocation4 + $0x538] sm:$0xf0]  ;;  %v5726_v5 = vld [vmem:[#allocation4 + $0x884] sm:$0xf] }
 0x259   :  { %3409 = vmatmul.bf16.vlgmr.msrb.gmra.mxu2 %v6646_v22  ;;  %v5230_v13 = vld [vmem:[#allocation4 + $0x898] sm:$0xf0]  ;;  %v5742_v46 = vld [vmem:[#allocation4 + $0xa04] sm:$0xf] }
 0x25a   :  { %3431 = vmatpush.bf16.msra.mxu3 %v4897_v32  ;;  %3466 = vmatpush.bf16.msra.mxu2 %v5121_v24  ;;  %v5652_v32 = vld [vmem:[#allocation4 + $0x194] sm:$0xf]  ;;  %v5294_v39 = vld [vmem:[#allocation4 + $0xa18] sm:$0xf0] }
 0x25b   :  { %3445 = vmatpush.bf16.msra.mxu0 %v4953_v58  ;;  %v5692_v24 = vld [vmem:[#allocation4 + $0x554] sm:$0xf]  ;;  %3458 = vmatpush.bf16.msra.mxu1 %v5017_v38  ;;  %v4937_v58 = vor.u32 %v5652_v32, %v4934_v47  ;;  %v5001_v38 = vor.u32 %v5668_v54, %v4998_v6  ;;  %v5078_v47 = vld [vmem:[#allocation4 + $0x508] sm:$0xf0] }
 0x25c   :  { %v5688_v32 = vld [vmem:[#allocation4 + $0x4f4] sm:$0xf] }
 0x25d   :  { %v5081_v54 = vor.u32 %v5688_v32, %v5078_v47  ;;  %v5754_v32 = vld [vmem:[#allocation4 + $0xb24] sm:$0xf] }
 0x25e   :  { %3432 = vmatpush.bf16.msra.mxu3 %v4889_v10  ;;  %3467 = vmatpush.bf16.msra.mxu2 %v5113_v60  ;;  %v4873_v10 = vor.u32 %v5636_v11, %v4870_v62  ;;  %v5097_v60 = vor.u32 %v5692_v24, %v5094_v12  ;;  %v5089_v11 = vor.u32 %v5690_v7, %v5086_v34  ;;  %v5710_v24 = vld [vmem:[#allocation4 + $0x704] sm:$0xf]  ;;  %v5166_v12 = vld [vmem:[#allocation4 + $0x718] sm:$0xf0]  ;;  %v5286_v7 = vld [vmem:[#allocation4 + $0x9e8] sm:$0xf0] }
 0x25f   :  { %3446 = vmatpush.bf16.msra.mxu0 %v4945_v53  ;;  %3459 = vmatpush.bf16.msra.mxu1 %v5009_v51  ;;  %v5302_v53 = vld [vmem:[#allocation4 + $0xa48] sm:$0xf0]  ;;  %v5177_v62 = vor.u32 %v5712_v56, %v5174_v37  ;;  %v5169_v6 = vor.u32 %v5710_v24, %v5166_v12  ;;  %v5684_v34 = vld [vmem:[#allocation4 + $0x494] sm:$0xf]  ;;  %v5706_v37 = vld [vmem:[#allocation4 + $0x6a4] sm:$0xf] }
 0x260   :  { %v5738_v47 = vld [vmem:[#allocation4 + $0x9a4] sm:$0xf]  ;;  %v5278_v24 = vld [vmem:[#allocation4 + $0x9b8] sm:$0xf0] }
 0x262   :  { %3433 = vmatpush.bf16.msra.mxu3 %v4881_v4  ;;  %3468 = vmatpush.bf16.msra.mxu2 %v5105_v8  ;;  %v5744_v4 = vld [vmem:[#allocation4 + $0xa34] sm:$0xf]  ;;  %v5241_v8 = vor.u32 %v5728_v18, %v5238_v25  ;;  %v2437_v25 = vpop.f32.mrf.mxu0  ;;  %v2450_v18 = vpop.f32.mrf.mxu1 }
 0x263   :  { %3447 = vmatpush.bf16.msra.mxu0 %v4937_v58  ;;  %3460 = vmatpush.bf16.msra.mxu1 %v5001_v38  ;;  %v5305_v51 = vor.u32 %v5744_v4, %v5302_v53  ;;  %v5233_v58 = vor.u32 %v5726_v5, %v5230_v13  ;;  %2506 = vst [vmem:[%s6493_s4 + $0x60] sm:$0xff] %v2437_v25  ;;  %v5150_v4 = vld [vmem:[#allocation4 + $0x6b8] sm:$0xf0]  ;;  %v5722_v53 = vld [vmem:[#allocation4 + $0x824] sm:$0xf] }
 0x264   :  { %2507 = vst [vmem:[%s6493_s4 + $0x68] sm:$0xff] %v2450_v18  ;;  %v5153_v13 = vor.u32 %v5706_v37, %v5150_v4  ;;  %v5720_v18 = vld [vmem:[#allocation4 + $0x7f4] sm:$0xf]  ;;  %v5750_v37 = vld [vmem:[#allocation4 + $0xac4] sm:$0xf] }
 0x265   :  { %v5326_v4 = vld [vmem:[#allocation4 + $0xad8] sm:$0xf0] }
 0x266   :  { %3434 = vmatpush.bf16.msra.mxu3 %v4873_v10  ;;  %3469 = vmatpush.bf16.msra.mxu2 %v5097_v60  ;;  %v5686_v10 = vld [vmem:[#allocation4 + $0x4c4] sm:$0xf]  ;;  %v5222_v60 = vld [vmem:[#allocation4 + $0x868] sm:$0xf0] }
 0x267   :  { %3492 = vmatpush.bf16.msrb.mxu0 %v5249_v36  ;;  %3505 = vmatpush.bf16.msrb.mxu1 %v5313_v3  ;;  %v5708_v3 = vld [vmem:[#allocation4 + $0x6d4] sm:$0xf]  ;;  %v5073_v36 = vor.u32 %v5686_v10, %v5070_v9  ;;  %v5281_v9 = vor.u32 %v5738_v47, %v5278_v24 }
 0x268   :  { %3448 = vmatmul.bf16.vlgmr.msra.gmra.mxu0 %v5913_v1  ;;  %3461 = vmatmul.bf16.vlgmr.msra.gmra.mxu1 %v6620_v42  ;;  %v5724_v1 = vld [vmem:[#allocation4 + $0x854] sm:$0xf]  ;;  %v5161_v38 = vor.u32 %v5708_v3, %v5158_v52  ;;  %v5062_v42 = vld [vmem:[#allocation4 + $0x4a8] sm:$0xf0]  ;;  %v2463_v12 = vpop.f32.mrf.mxu2 }
 0x269   :  { %3435 = vmatmul.bf16.vlgmr.msra.gmra.mxu3 %v5911_v0  ;;  %v5297_v0 = vor.u32 %v5742_v46, %v5294_v39  ;;  %v5225_v56 = vor.u32 %v5724_v1, %v5222_v60  ;;  %v5065_v5 = vor.u32 %v5684_v34, %v5062_v42  ;;  %v5704_v46 = vld [vmem:[#allocation4 + $0x674] sm:$0xf]  ;;  %v5142_v39 = vld [vmem:[#allocation4 + $0x688] sm:$0xf0]  ;;  %2508 = vst [vmem:[%s6493_s4 + $0x70] sm:$0xff] %v2463_v12 }
 0x26a   :  { %3479 = vmatpush.bf16.msrb.mxu3 %v5185_v31  ;;  %3470 = vmatpush.bf16.msra.mxu2 %v5089_v11  ;;  %v5740_v31 = vld [vmem:[#allocation4 + $0x9d4] sm:$0xf]  ;;  %v5334_v52 = vld [vmem:[#allocation4 + $0xb08] sm:$0xf0]  ;;  %v5145_v60 = vor.u32 %v5704_v46, %v5142_v39  ;;  %v5718_v34 = vld [vmem:[#allocation4 + $0x7c4] sm:$0xf] }
 0x26b   :  { %3493 = vmatpush.bf16.msrb.mxu0 %v5241_v8  ;;  %3506 = vmatpush.bf16.msrb.mxu1 %v5305_v51  ;;  %v5289_v11 = vor.u32 %v5740_v31, %v5286_v7  ;;  %v5342_v8 = vld [vmem:[#allocation4 + $0xb38] sm:$0xf0]  ;;  %v2476_v51 = vpop.f32.mrf.mxu3  ;;  %v5752_v3 = vld [vmem:[#allocation4 + $0xaf4] sm:$0xf]  ;;  %v5270_v1 = vld [vmem:[#allocation4 + $0x988] sm:$0xf0] }
 0x26c   :  { %v5345_v25 = vor.u32 %v5754_v32, %v5342_v8  ;;  %2509 = vst [vmem:[%s6493_s4 + $0x78] sm:$0xff] %v2476_v51  ;;  %v5337_v7 = vor.u32 %v5752_v3, %v5334_v52  ;;  %v5700_v47 = vld [vmem:[#allocation4 + $0x614] sm:$0xf]  ;;  %v5190_v39 = vld [vmem:[#allocation4 + $0x7a8] sm:$0xf0] }
 0x26d   :  { %v5716_v46 = vld [vmem:[#allocation4 + $0x794] sm:$0xf] }
 0x26e   :  { %3480 = vmatpush.bf16.msrb.mxu3 %v5177_v62  ;;  %3471 = vmatpush.bf16.msra.mxu2 %v5081_v54  ;;  %v5214_v62 = vld [vmem:[#allocation4 + $0x838] sm:$0xf0]  ;;  %v2439_v54 = vpop.f32.mrf.mxu0 }
 0x26f   :  { %3494 = vmatpush.bf16.msrb.mxu0 %v5233_v58  ;;  %3507 = vmatpush.bf16.msrb.mxu1 %v5297_v0  ;;  %v5217_v10 = vor.u32 %v5722_v53, %v5214_v62  ;;  %v5206_v58 = vld [vmem:[#allocation4 + $0x808] sm:$0xf0]  ;;  %v5736_v0 = vld [vmem:[#allocation4 + $0x974] sm:$0xf]  ;;  %v5734_v53 = vld [vmem:[#allocation4 + $0x944] sm:$0xf] }
 0x270   :  { %v5209_v31 = vor.u32 %v5720_v18, %v5206_v58  ;;  %v5273_v42 = vor.u32 %v5736_v0, %v5270_v1  ;;  %v2465_v62 = vpop.f32.mrf.mxu2  ;;  %v5748_v54 = vld [vmem:[#allocation4 + $0xa94] sm:$0xf]  ;;  %v5193_v58 = vor.u32 %v5716_v46, %v5190_v39 }
 0x271   :  { %v6647_v1 = vld [vmem:[#allocation18_spill] sm:$0xff] }
 0x272   :  { %3481 = vmatpush.bf16.msrb.mxu3 %v5169_v6  ;;  %3472 = vmatpush.bf16.msra.mxu2 %v5073_v36  ;;  %v2452_v6 = vpop.f32.mrf.mxu1  ;;  %v5702_v36 = vld [vmem:[#allocation4 + $0x644] sm:$0xf] }
 0x273   :  { %3495 = vmatpush.bf16.msrb.mxu0 %v5225_v56  ;;  %3508 = vmatpush.bf16.msrb.mxu1 %v5289_v11  ;;  %v5198_v56 = vld [vmem:[#allocation4 + $0x7d8] sm:$0xf0]  ;;  %v2478_v32 = vpop.f32.mrf.mxu3  ;;  %v5318_v6 = vld [vmem:[#allocation4 + $0xaa8] sm:$0xf0] }
 0x274   :  { %v5262_v11 = vld [vmem:[#allocation4 + $0x958] sm:$0xf0]  ;;  %v5201_v51 = vor.u32 %v5718_v34, %v5198_v56  ;;  %v6657_v34 = vld [vmem:[#allocation28_spill] sm:$0xff] }
 0x275   :  { %v6661_v32 = vld [vmem:[#allocation31_spill] sm:$0xff] }
 0x276   :  { %3482 = vmatpush.bf16.msrb.mxu3 %v5161_v38  ;;  %3473 = vmatpush.bf16.msra.mxu2 %v5065_v5  ;;  %v5134_v38 = vld [vmem:[#allocation4 + $0x658] sm:$0xf0]  ;;  %v2489_v24 = vpop.f32.mrf.mxu0  ;;  %v5329_v5 = vor.u32 %v5750_v37, %v5326_v4 }
 0x277   :  { %3496 = vmatpush.bf16.msrb.mxu0 %v5217_v10  ;;  %3509 = vmatpush.bf16.msrb.mxu1 %v5281_v9  ;;  %v5137_v8 = vor.u32 %v5702_v36, %v5134_v38  ;;  %2510 = vst [vmem:[%s6493_s4 + $0x80] sm:$0xff] %v2489_v24  ;;  %v5732_v10 = vld [vmem:[#allocation4 + $0x914] sm:$0xf]  ;;  %v5321_v9 = vor.u32 %v5748_v54, %v5318_v6  ;;  %v6654_v36 = vld [vmem:[#allocation23_spill] sm:$0xff]  ;;  %v6662_v24 = vld [vmem:[#allocation32_spill] sm:$0xff] }
 0x278   :  { %v6656_v38 = vld [vmem:[#allocation25_spill] sm:$0xff]  ;;  %v6658_v37 = vld [vmem:[#allocation27_spill] sm:$0xff]  ;;  %v6659_v4 = vld [vmem:[#allocation30_spill] sm:$0xff] }
 0x279   :  { %3474 = vmatmul.bf16.vlgmr.msra.gmra.mxu2 %v5909_v57  ;;  %v5265_v57 = vor.u32 %v5734_v53, %v5262_v11  ;;  %v6660_v53 = vld [vmem:[#allocation29_spill] sm:$0xff]  ;;  %v6663_v54 = vld [vmem:[#allocation42_spill] sm:$0xff] }
 0x27a   :  { %3483 = vmatpush.bf16.msrb.mxu3 %v5153_v13  ;;  %3522 = vmatpush.bf16.msrb.mxu2 %v5345_v25  ;;  %v2502_v12 = vpop.f32.mrf.mxu1  ;;  %v5126_v13 = vld [vmem:[#allocation4 + $0x628] sm:$0xf0] }
 0x27b   :  { %3497 = vmatpush.bf16.msrb.mxu0 %v5209_v31  ;;  %3510 = vmatpush.bf16.msrb.mxu1 %v5273_v42  ;;  %2511 = vst [vmem:[%s6493_s4 + $0x88] sm:$0xff] %v2502_v12  ;;  %v5254_v25 = vld [vmem:[#allocation4 + $0x928] sm:$0xf0]  ;;  %v5129_v18 = vor.u32 %v5700_v47, %v5126_v13 }
 0x27c   :  { %v5257_v3 = vor.u32 %v5732_v10, %v5254_v25  ;;  %v6649_v31 = vld [vmem:[#allocation20_spill] sm:$0xff]  ;;  %v6664_v10 = vld [vmem:[#allocation43_spill] sm:$0xff] }
 0x27e   :  { %3484 = vmatpush.bf16.msrb.mxu3 %v5145_v60  ;;  %3523 = vmatpush.bf16.msrb.mxu2 %v5337_v7  ;;  %v2491_v52 = vpop.f32.mrf.mxu0  ;;  %v6648_v60 = vld [vmem:[#allocation17_spill] sm:$0xff]  ;;  %v6650_v7 = vld [vmem:[#allocation19_spill] sm:$0xff] }
 0x27f   :  { %3498 = vmatpush.bf16.msrb.mxu0 %v5201_v51  ;;  %3511 = vmatpush.bf16.msrb.mxu1 %v5265_v57  ;;  %v6668_v52 = vld [vmem:[#allocation47_spill] sm:$0xff] }
 0x282   :  { %3485 = vmatpush.bf16.msrb.mxu3 %v5137_v8  ;;  %3524 = vmatpush.bf16.msrb.mxu2 %v5329_v5  ;;  %v2504_v0 = vpop.f32.mrf.mxu1 }
 0x283   :  { %3499 = vmatpush.bf16.msrb.mxu0 %v5193_v58  ;;  %3512 = vmatpush.bf16.msrb.mxu1 %v5257_v3  ;;  %v6667_v3 = vld [vmem:[#allocation46_spill] sm:$0xff]  ;;  %v6669_v0 = vld [vmem:[#allocation48_spill] sm:$0xff] }
 0x286   :  { %3486 = vmatpush.bf16.msrb.mxu3 %v5129_v18  ;;  %3525 = vmatpush.bf16.msrb.mxu2 %v5321_v9  ;;  %v6665_v18 = vld [vmem:[#allocation44_spill] sm:$0xff]  ;;  %v6666_v9 = vld [vmem:[#allocation45_spill] sm:$0xff] }
 0x287   :  { %3560 = vmatpush.bf16.msra.mxu0 %v5958_v50  ;;  %3513 = vmatmul.bf16.vlgmr.msrb.gmra.mxu1 %v6646_v22  ;;  %v6653_v22 = vld [vmem:[#allocation24_spill] sm:$0xff] }
 0x288   :  { %3500 = vmatmul.bf16.vlgmr.msrb.gmra.mxu0 %v6621_v29  ;;  %3573 = vmatpush.bf16.msra.mxu1 %v5966_v59  ;;  %v6652_v29 = vld [vmem:[#allocation21_spill] sm:$0xff] }
 0x289   :  { %3487 = vmatmul.bf16.vlgmr.msrb.gmra.mxu3 %v6619_v23  ;;  %5347 = vmatmul.msk.bf16.vlgmr.msrb.gmra.mxu2 %vm867_vm0, %v6645_v63  ;;  %v6651_v23 = vld [vmem:[#allocation22_spill] sm:$0xff] }
 0x28a   :  { %3534 = vmatpush.bf16.msra.mxu2 %v6647_v1  ;;  %3547 = vmatpush.bf16.msra.mxu3 %v6648_v60  ;;  %v6655_v63 = vld [vmem:[#allocation26_spill] sm:$0xff] }
 0x28b   :  { %3561 = vmatpush.bf16.msra.mxu0 %v5993_v20 }
 0x28c   :  { %3574 = vmatpush.bf16.msra.mxu1 %v5995_v26 }
 0x28e   :  { %3535 = vmatpush.bf16.msra.mxu2 %v6649_v31  ;;  %3548 = vmatpush.bf16.msra.mxu3 %v6650_v7 }
 0x28f   :  { %3562 = vmatpush.bf16.msra.mxu0 %v6006_v40 }
 0x290   :  { %3575 = vmatpush.bf16.msra.mxu1 %v6009_v44 }
 0x292   :  { %3536 = vmatpush.bf16.msra.mxu2 %v6651_v23  ;;  %3549 = vmatpush.bf16.msra.mxu3 %v6652_v29 }
 0x293   :  { %3563 = vmatpush.bf16.msra.mxu0 %v6017_v61 }
 0x294   :  { %3576 = vmatpush.bf16.msra.mxu1 %v6019_v2 }
 0x296   :  { %3537 = vmatpush.bf16.msra.mxu2 %v6653_v22  ;;  %3550 = vmatpush.bf16.msra.mxu3 %v6654_v36  ;;  %v2548_v42 = vpop.f32.mrf.mxu0  ;;  %v2561_v56 = vpop.f32.mrf.mxu1 }
 0x297   :  { %3564 = vmatpush.bf16.msra.mxu0 %v6028_v17  ;;  %2593 = vst [vmem:[%s6493_s4 + $0xa0] sm:$0xff] %v2548_v42 }
 0x298   :  { %3577 = vmatpush.bf16.msra.mxu1 %v6031_v27  ;;  %2594 = vst [vmem:[%s6493_s4 + $0xa8] sm:$0xff] %v2561_v56 }
 0x29a   :  { %3538 = vmatpush.bf16.msra.mxu2 %v6655_v63  ;;  %3551 = vmatpush.bf16.msra.mxu3 %v6656_v38 }
 0x29b   :  { %3565 = vmatpush.bf16.msra.mxu0 %v6043_v43  ;;  %v2522_v11 = vpop.f32.mrf.mxu2  ;;  %v2535_v62 = vpop.f32.mrf.mxu3 }
 0x29c   :  { %3578 = vmatpush.bf16.msra.mxu1 %v6045_v55  ;;  %2591 = vst [vmem:[%s6493_s4 + $0x90] sm:$0xff] %v2522_v11 }
 0x29d   :  { %2592 = vst [vmem:[%s6493_s4 + $0x98] sm:$0xff] %v2535_v62 }
 0x29e   :  { %3539 = vmatpush.bf16.msra.mxu2 %v6657_v34  ;;  %3552 = vmatpush.bf16.msra.mxu3 %v6658_v37  ;;  %v2550_v8 = vpop.f32.mrf.mxu0  ;;  %v2563_v47 = vpop.f32.mrf.mxu1 }
 0x29f   :  { %3566 = vmatpush.bf16.msra.mxu0 %v6055_v21 }
 0x2a0   :  { %3579 = vmatpush.bf16.msra.mxu1 %v6057_v30 }
 0x2a2   :  { %3540 = vmatpush.bf16.msra.mxu2 %v6659_v4  ;;  %3553 = vmatpush.bf16.msra.mxu3 %v6660_v53 }
 0x2a3   :  { %3567 = vmatpush.bf16.msra.mxu0 %v6067_v15  ;;  %v2524_v12 = vpop.f32.mrf.mxu2  ;;  %v2537_v51 = vpop.f32.mrf.mxu3 }
 0x2a4   :  { %3580 = vmatpush.bf16.msra.mxu1 %v6069_v28 }
 0x2a6   :  { %3541 = vmatpush.bf16.msra.mxu2 %v6661_v32  ;;  %3554 = vmatpush.bf16.msra.mxu3 %v6662_v24  ;;  %v3332_v5 = vpop.f32.mrf.mxu0  ;;  %v3345_v13 = vpop.f32.mrf.mxu1 }
 0x2a7   :  { %3619 = vmatpush.bf16.msrb.mxu0 %v6647_v1 }
 0x2a8   :  { %3632 = vmatpush.bf16.msrb.mxu1 %v6648_v60 }
 0x2aa   :  { %3586 = vmatpush.bf16.msrb.mxu2 %v6630_v45  ;;  %3599 = vmatpush.bf16.msrb.mxu3 %v6628_v49 }
 0x2ab   :  { %3620 = vmatpush.bf16.msrb.mxu0 %v6649_v31  ;;  %v2574_v46 = vpop.f32.mrf.mxu2  ;;  %v2587_v39 = vpop.f32.mrf.mxu3  ;;  %v2717_v31 = vld [vmem:[#allocation6 + $0x4] sm:$0x3] }
 0x2ac   :  { %3633 = vmatpush.bf16.msrb.mxu1 %v6650_v7  ;;  %2595 = vst [vmem:[%s6493_s4 + $0xb0] sm:$0xff] %v2574_v46  ;;  %v2719_v7 = vperm.slane %v2717_v31, 0 }
 0x2ad   :  { %2596 = vst [vmem:[%s6493_s4 + $0xb8] sm:$0xff] %v2587_v39 }
 0x2ae   :  { %3587 = vmatpush.bf16.msrb.mxu2 %v6632_v19  ;;  %3600 = vmatpush.bf16.msrb.mxu3 %v6631_v33  ;;  %v3334_v57 = vpop.f32.mrf.mxu0  ;;  %v3347_v6 = vpop.f32.mrf.mxu1 }
 0x2af   :  { %3621 = vmatpush.bf16.msrb.mxu0 %v6651_v23 }
 0x2b0   :  { %3634 = vmatpush.bf16.msrb.mxu1 %v6652_v29 }
 0x2b2   :  { %3588 = vmatpush.bf16.msrb.mxu2 %v6634_v16  ;;  %3601 = vmatpush.bf16.msrb.mxu3 %v6633_v35 }
 0x2b3   :  { %3622 = vmatpush.bf16.msrb.mxu0 %v6653_v22  ;;  %v2576_v25 = vpop.f32.mrf.mxu2  ;;  %v2589_v58 = vpop.f32.mrf.mxu3  ;;  %v3333_v22 = vadd.f32 %v3332_v5, %v2719_v7 }
 0x2b4   :  { %3635 = vmatpush.bf16.msrb.mxu1 %v6654_v36 }
 0x2b6   :  { %3589 = vmatpush.bf16.msrb.mxu2 %v6636_v48  ;;  %3602 = vmatpush.bf16.msrb.mxu3 %v6635_v41 }
 0x2b7   :  { %3623 = vmatpush.bf16.msrb.mxu0 %v6655_v63 }
 0x2b8   :  { %3636 = vmatpush.bf16.msrb.mxu1 %v6656_v38  ;;  %v3346_v38 = vadd.f32 %v3345_v13, %v3333_v22 }
 0x2ba   :  { %3590 = vmatpush.bf16.msrb.mxu2 %v6638_v14  ;;  %3603 = vmatpush.bf16.msrb.mxu3 %v6663_v54 }
 0x2bb   :  { %3624 = vmatpush.bf16.msrb.mxu0 %v6657_v34 }
 0x2bc   :  { %3637 = vmatpush.bf16.msrb.mxu1 %v6658_v37  ;;  %v3358_v1 = vpop.f32.mrf.mxu2  ;;  %v3371_v60 = vpop.f32.mrf.mxu3 }
 0x2bd   :  { %v3359_v42 = vadd.f32 %v3358_v1, %v3346_v38 }
 0x2be   :  { %3591 = vmatpush.bf16.msrb.mxu2 %v6664_v10  ;;  %3604 = vmatpush.bf16.msrb.mxu3 %v6665_v18 }
 0x2bf   :  { %3625 = vmatpush.bf16.msrb.mxu0 %v6659_v4  ;;  %v3372_v4 = vadd.f32 %v3371_v60, %v3359_v42 }
 0x2c0   :  { %3638 = vmatpush.bf16.msrb.mxu1 %v6660_v53 }
 0x2c2   :  { %3592 = vmatpush.bf16.msrb.mxu2 %v6666_v9  ;;  %3605 = vmatpush.bf16.msrb.mxu3 %v6667_v3 }
 0x2c3   :  { %3626 = vmatpush.bf16.msrb.mxu0 %v6661_v32 }
 0x2c4   :  { %3639 = vmatpush.bf16.msrb.mxu1 %v6662_v24  ;;  %v3360_v29 = vpop.f32.mrf.mxu2  ;;  %v3373_v36 = vpop.f32.mrf.mxu3 }
 0x2c5   :  { %v3384_v23 = vpop.f32.mrf.mxu0  ;;  %v3397_v63 = vpop.f32.mrf.mxu1 }
 0x2c6   :  { %3593 = vmatpush.bf16.msrb.mxu2 %v6668_v52  ;;  %3606 = vmatpush.bf16.msrb.mxu3 %v6669_v0  ;;  %v3385_v53 = vadd.f32 %v3384_v23, %v3372_v4 }
 0x2c8   :  { %v3398_v62 = vadd.f32 %v3397_v63, %v3385_v53 }
 0x2cc   :  { %v3423_v56 = vpop.f32.mrf.mxu3 }
 0x2cd   :  { %v3386_v34 = vpop.f32.mrf.mxu0  ;;  %v3399_v37 = vpop.f32.mrf.mxu1 }
 0x2d4   :  { %v3425_v11 = vpop.f32.mrf.mxu3 }
 0x2dc   :  { %v3410_v32 = vpop.f32.mrf.mxu2 }
 0x2dd   :  { %v3411_v8 = vadd.f32 %v3410_v32, %v3398_v62 }
 0x2df   :  { %v3424_v47 = vadd.f32 %v3423_v56, %v3411_v8 }
 0x2e1   :  { %v3531_v24 = vmax.f32 %v3424_v47, 0.0 }
 0x2e3   :  { %v3533_v12 = vpack.c.bf16 %v3531_v24, %v3531_v24 }
 0x2e4   :  { %v3412_v51 = vpop.f32.mrf.mxu2 }
 0x2e5   :  { %v3449_v46 = vpop.f32.mrf.mxu0  ;;  %3542 = vmatmul.bf16.vlgmr.msra.gmra.mxu2 %v3533_v12  ;;  %3555 = vmatmul.bf16.vlgmr.msra.gmra.mxu3 %v3533_v12  ;;  %v3462_v5 = vpop.f32.mrf.mxu1 }
 0x2e6   :  { %3568 = vmatmul.bf16.vlgmr.msra.gmra.mxu0 %v3533_v12  ;;  %3581 = vmatmul.bf16.vlgmr.msra.gmra.mxu1 %v3533_v12 }
 0x2e7   :  { %3645 = vmatpush.bf16.msra.mxu2 %v5958_v50  ;;  %3658 = vmatpush.bf16.msra.mxu3 %v5966_v59  ;;  %v2720_v59 = vperm.slane %v2717_v31, 1 }
 0x2e8   :  { %3671 = vmatpush.bf16.msra.mxu0 %v6630_v45  ;;  %3684 = vmatpush.bf16.msra.mxu1 %v6628_v49 }
 0x2eb   :  { %3646 = vmatpush.bf16.msra.mxu2 %v5993_v20  ;;  %3659 = vmatpush.bf16.msra.mxu3 %v5995_v26 }
 0x2ec   :  { %v3436_v13 = vpop.f32.mrf.mxu3  ;;  %3672 = vmatpush.bf16.msra.mxu0 %v6632_v19  ;;  %3685 = vmatpush.bf16.msra.mxu1 %v6631_v33 }
 0x2ed   :  { %v3451_v39 = vpop.f32.mrf.mxu0  ;;  %v3464_v57 = vpop.f32.mrf.mxu1  ;;  %v3437_v20 = vadd.f32 %v3436_v13, %v2720_v59 }
 0x2ef   :  { %3647 = vmatpush.bf16.msra.mxu2 %v6006_v40  ;;  %3660 = vmatpush.bf16.msra.mxu3 %v6009_v44  ;;  %v3450_v40 = vadd.f32 %v3449_v46, %v3437_v20 }
 0x2f0   :  { %3673 = vmatpush.bf16.msra.mxu0 %v6634_v16  ;;  %3686 = vmatpush.bf16.msra.mxu1 %v6633_v35 }
 0x2f1   :  { %v3463_v44 = vadd.f32 %v3462_v5, %v3450_v40 }
 0x2f3   :  { %3648 = vmatpush.bf16.msra.mxu2 %v6017_v61  ;;  %3661 = vmatpush.bf16.msra.mxu3 %v6019_v2 }
 0x2f4   :  { %v3438_v50 = vpop.f32.mrf.mxu3  ;;  %3674 = vmatpush.bf16.msra.mxu0 %v6636_v48  ;;  %3687 = vmatpush.bf16.msra.mxu1 %v6635_v41 }
 0x2f5   :  { %3594 = vmatmul.bf16.vlgmr.msrb.gmra.mxu2 %v3533_v12  ;;  %3607 = vmatmul.bf16.vlgmr.msrb.gmra.mxu3 %v3533_v12 }
 0x2f7   :  { %3649 = vmatpush.bf16.msra.mxu2 %v6028_v17  ;;  %3662 = vmatpush.bf16.msra.mxu3 %v6031_v27 }
 0x2f8   :  { %3675 = vmatpush.bf16.msra.mxu0 %v6638_v14  ;;  %3688 = vmatpush.bf16.msra.mxu1 %v6663_v54 }
 0x2fb   :  { %3650 = vmatpush.bf16.msra.mxu2 %v6043_v43  ;;  %3663 = vmatpush.bf16.msra.mxu3 %v6045_v55 }
 0x2fc   :  { %v3475_v26 = vpop.f32.mrf.mxu2  ;;  %3676 = vmatpush.bf16.msra.mxu0 %v6664_v10  ;;  %3689 = vmatpush.bf16.msra.mxu1 %v6665_v18 }
 0x2fd   :  { %v3476_v27 = vadd.f32 %v3475_v26, %v3463_v44 }
 0x2ff   :  { %3651 = vmatpush.bf16.msra.mxu2 %v6055_v21  ;;  %3664 = vmatpush.bf16.msra.mxu3 %v6057_v30 }
 0x300   :  { %3677 = vmatpush.bf16.msra.mxu0 %v6666_v9  ;;  %3690 = vmatpush.bf16.msra.mxu1 %v6667_v3 }
 0x303   :  { %3652 = vmatpush.bf16.msra.mxu2 %v6067_v15  ;;  %3665 = vmatpush.bf16.msra.mxu3 %v6069_v28 }
 0x304   :  { %v3477_v2 = vpop.f32.mrf.mxu2  ;;  %v3514_v17 = vpop.f32.mrf.mxu1  ;;  %3678 = vmatpush.bf16.msra.mxu0 %v6668_v52  ;;  %3691 = vmatpush.bf16.msra.mxu1 %v6669_v0 }
 0x305   :  { %v3501_v61 = vpop.f32.mrf.mxu0 }
 0x30c   :  { %v3488_v43 = vpop.f32.mrf.mxu3  ;;  %v3527_v49 = vpop.f32.mrf.mxu2 }
 0x30d   :  { %v3489_v55 = vadd.f32 %v3488_v43, %v3476_v27  ;;  %v3503_v30 = vpop.f32.mrf.mxu0  ;;  %v3516_v45 = vpop.f32.mrf.mxu1 }
 0x30f   :  { %v3502_v21 = vadd.f32 %v3501_v61, %v3489_v55 }
 0x311   :  { %v3515_v33 = vadd.f32 %v3514_v17, %v3502_v21 }
 0x313   :  { %v3528_v19 = vadd.f32 %v3527_v49, %v3515_v33 }
 0x314   :  { %v3490_v35 = vpop.f32.mrf.mxu3  ;;  %v3529_v48 = vpop.f32.mrf.mxu2 }
 0x315   :  { %v3532_v16 = vmax.f32 %v3528_v19, 0.0 }
 0x317   :  { %v3618_v41 = vpack.c.bf16 %v3532_v16, %v3532_v16 }
 0x319   :  { %3627 = vmatmul.bf16.vlgmr.msrb.gmra.mxu0 %v3618_v41  ;;  %3640 = vmatmul.bf16.vlgmr.msrb.gmra.mxu1 %v3618_v41 }
 0x31a   :  { %3653 = vmatmul.bf16.vlgmr.msra.gmra.mxu2 %v3618_v41  ;;  %3666 = vmatmul.bf16.vlgmr.msra.gmra.mxu3 %v3618_v41 }
 0x329   :  { %3679 = vmatmul.bf16.vlgmr.msra.gmra.mxu0 %v3618_v41  ;;  %3692 = vmatmul.bf16.vlgmr.msra.gmra.mxu1 %v3618_v41 }
 0x363   :  { %v3569_v15 = vpop.f32.mrf.mxu0  ;;  %v3582_v28 = vpop.f32.mrf.mxu1 }
 0x364   :  { %3614 = vst [vmem:[%s6493_s4 + $0xd0] sm:$0xff] %v3569_v15 }
 0x365   :  { %3615 = vst [vmem:[%s6493_s4 + $0xd8] sm:$0xff] %v3582_v28 }
 0x368   :  { %v3543_v14 = vpop.f32.mrf.mxu2  ;;  %v3556_v54 = vpop.f32.mrf.mxu3 }
 0x369   :  { %3612 = vst [vmem:[%s6493_s4 + $0xc0] sm:$0xff] %v3543_v14 }
 0x36a   :  { %3613 = vst [vmem:[%s6493_s4 + $0xc8] sm:$0xff] %v3556_v54 }
 0x36b   :  { %v3571_v6 = vpop.f32.mrf.mxu0  ;;  %v3584_v10 = vpop.f32.mrf.mxu1 }
 0x370   :  { %v3545_v25 = vpop.f32.mrf.mxu2  ;;  %v3558_v18 = vpop.f32.mrf.mxu3 }
 0x378   :  { %v3595_v58 = vpop.f32.mrf.mxu2  ;;  %v3608_v9 = vpop.f32.mrf.mxu3 }
 0x379   :  { %3616 = vst [vmem:[%s6493_s4 + $0xe0] sm:$0xff] %v3595_v58 }
 0x37a   :  { %3617 = vst [vmem:[%s6493_s4 + $0xe8] sm:$0xff] %v3608_v9 }
 0x380   :  { %v3597_v3 = vpop.f32.mrf.mxu2  ;;  %v3610_v52 = vpop.f32.mrf.mxu3 }
 0x396   :  { %v3628_v0 = vpop.f32.mrf.mxu0  ;;  %v3641_v1 = vpop.f32.mrf.mxu1 }
 0x397   :  { %3697 = vst [vmem:[%s6493_s4 + $0xf0] sm:$0xff] %v3628_v0 }
 0x398   :  { %3698 = vst [vmem:[%s6493_s4 + $0xf8] sm:$0xff] %v3641_v1 }
 0x39d   :  { %v3654_v60 = vpop.f32.mrf.mxu2  ;;  %v3667_v31 = vpop.f32.mrf.mxu3 }
 0x39e   :  { %3699 = vst [vmem:[%s6493_s4 + $0x100] sm:$0xff] %v3654_v60  ;;  %v3630_v7 = vpop.f32.mrf.mxu0  ;;  %v3643_v23 = vpop.f32.mrf.mxu1 }
 0x39f   :  { %3700 = vst [vmem:[%s6493_s4 + $0x108] sm:$0xff] %v3667_v31 }
 0x3a5   :  { %v3656_v29 = vpop.f32.mrf.mxu2  ;;  %v3669_v22 = vpop.f32.mrf.mxu3 }
 0x3a6   :  { %v3680_v36 = vpop.f32.mrf.mxu0  ;;  %v3693_v63 = vpop.f32.mrf.mxu1 }
 0x3a7   :  { %3701 = vst [vmem:[%s6493_s4 + $0x110] sm:$0xff] %v3680_v36 }
 0x3a8   :  { %3702 = vst [vmem:[%s6493_s4 + $0x118] sm:$0xff] %v3693_v63 }
 0x3ae   :  { %v3682_v38 = vpop.f32.mrf.mxu0  ;;  %v3695_v34 = vpop.f32.mrf.mxu1 }
 0x3af   :  { %3707 = vsyncpa [#allocation3], 1 }
 0x3b0   :  { %3708 = vsyncpa [#allocation5], 1 }
 0x3b1   :  { %3709 = vsyncpa [#allocation8], 1 }

</bundles_post_ra>
